<compile_context>
chip_gen: v5e
topology: v5e:2x2
jax: 0.10.0
libtpu: 0.0.40
codegen_flags: <defaults>
</compile_context>

<pallas_src>
import functools

import jax
import jax.numpy as jnp
from jax.experimental import pallas as pl
from jax.experimental.pallas import tpu as pltpu


H_PAD = 128  # padded hidden width (real hidden sizes 20 / 10, zero-padded)


def _sigmoid(v):
    # exp lands on the EUP slot.  Exact reciprocal keeps us within tolerance of
    # jax.nn.sigmoid; pl.reciprocal(..., approx=True) is a free swap if the caller's
    # tolerance budget allows (review: neutral while HBM-bound).
    return pl.reciprocal(1.0 + jnp.exp(-v))


def sae_kernel(x_ref,
               w1_ref, b1_ref,
               w2_ref, b2_ref,
               w3_ref, b3_ref,
               w4_ref, b4_ref,
               o_ref):
    # fc1: (TB, M_pad) bf16 x (M_pad, H) bf16 -> f32 accumulation (no in-kernel cast
    # of x: it arrives from HBM already in bf16).
    h = _sigmoid(
        jnp.dot(x_ref[...], w1_ref[...], preferred_element_type=jnp.float32)
        + b1_ref[...])

    # fc2 / fc3: tiny (H, H) f32 matmuls (elementwise/bias work stays f32 for v5e).
    h = _sigmoid(
        jnp.dot(h, w2_ref[...], preferred_element_type=jnp.float32) + b2_ref[...])
    h = _sigmoid(
        jnp.dot(h, w3_ref[...], preferred_element_type=jnp.float32) + b3_ref[...])

    # fc4: (TB, H) bf16 x (H, M_pad) bf16 -> f32 accumulation, no activation.
    y = jnp.dot(h.astype(jnp.bfloat16), w4_ref[...],
                preferred_element_type=jnp.float32) + b4_ref[...]

    # bf16 store: halves the output HBM stream and the output double buffer.
    o_ref[...] = y.astype(o_ref.dtype)


def _round_up(n, m):
    return (n + m - 1) // m * m


def _pad2d(a, rows, cols):
    r, c = a.shape
    return jnp.pad(a, ((0, rows - r), (0, cols - c)))


def init_params(key, nb_movies, h1=20, h2=10):
    """torch.nn.Linear-style init: U(-1/sqrt(fan_in), 1/sqrt(fan_in)).
    Weights stored as (in, out) = transpose of torch's (out, in).
    w1 / w4 (the large weights) are stored in bf16; biases / small weights in f32."""
    ks = jax.random.split(key, 8)

    def linear(kw, kb, fan_in, fan_out, w_dtype):
        bound = 1.0 / (fan_in ** 0.5)
        w = jax.random.uniform(kw, (fan_in, fan_out), jnp.float32,
                               -bound, bound).astype(w_dtype)
        b = jax.random.uniform(kb, (1, fan_out), jnp.float32, -bound, bound)
        return w, b

    w1, b1 = linear(ks[0], ks[1], nb_movies, h1, jnp.bfloat16)
    w2, b2 = linear(ks[2], ks[3], h1, h2, jnp.float32)
    w3, b3 = linear(ks[4], ks[5], h2, h1, jnp.float32)
    w4, b4 = linear(ks[6], ks[7], h1, nb_movies, jnp.bfloat16)
    return dict(w1=w1, b1=b1, w2=w2, b2=b2, w3=w3, b3=b3, w4=w4, b4=b4)


def prepare_params(params, nb_movies):
    """Pad (and dtype-fix) the weights/biases ONCE.  The result is reused across
    every forward call, so no per-call jnp.pad traffic for the static operands."""
    M_pad = _round_up(nb_movies, 128)
    H = H_PAD
    return dict(
        w1=_pad2d(params["w1"].astype(jnp.bfloat16), M_pad, H),
        b1=_pad2d(params["b1"].astype(jnp.float32), 1, H),
        w2=_pad2d(params["w2"].astype(jnp.float32), H, H),
        b2=_pad2d(params["b2"].astype(jnp.float32), 1, H),
        w3=_pad2d(params["w3"].astype(jnp.float32), H, H),
        b3=_pad2d(params["b3"].astype(jnp.float32), 1, H),
        w4=_pad2d(params["w4"].astype(jnp.bfloat16), H, M_pad),
        b4=_pad2d(params["b4"].astype(jnp.float32), 1, M_pad),
    )


def _vmem_budget_bytes(tb, m_pad, h):
    """Explicit scoped-VMEM budget: 2x bf16 x tile + 2x bf16 out tile + (double-
    buffered) weights + in-kernel f32 temporaries + headroom.  Floored at the 16 MiB
    v5e default, capped at v7x's 64 MiB physical VMEM."""
    bf16, f32 = 2, 4
    x_tile = tb * m_pad * bf16
    out_tile = tb * m_pad * bf16
    weights = ((m_pad * h + h * m_pad) * bf16          # w1, w4 (bf16)
               + 2 * h * h * f32                       # w2, w3
               + (3 * h + m_pad) * f32)                # biases
    need = 2 * x_tile + 2 * out_tile + 2 * weights
    need += tb * m_pad * f32 + 4 * tb * h * f32        # f32 fc4 accum + activations
    need += 4 << 20                                    # Mosaic internal scratch headroom
    return int(min(max(need, 16 << 20), 64 << 20))


@functools.partial(jax.jit, static_argnames=("tb",))
def sae_forward(x, padded, *, tb=256):
    """x: (B, nb_movies) float32.  padded: output of prepare_params.
    Returns (B, nb_movies) bfloat16 (upcast after the slice if f32 is required)."""
    B, nb_movies = x.shape
    M_pad, H = padded["w1"].shape

    # Keep >= 8 sublanes per tile and avoid inflating tiny batches.
    tb = max(8, min(tb, _round_up(B, 8)))
    B_pad = _round_up(B, tb)

    # Pad + cast x in one fused pass (we are under jit); bf16 halves the x HBM stream.
    x_p = _pad2d(x, B_pad, M_pad).astype(jnp.bfloat16)

    args = (x_p,
            padded["w1"], padded["b1"],
            padded["w2"], padded["b2"],
            padded["w3"], padded["b3"],
            padded["w4"], padded["b4"])

    grid = (B_pad // tb,)

    # Weights/biases: constant block index -> VMEM-resident across grid steps.
    # NOTE(v7x, production M_pad): add pipeline_mode=pl.Buffered(1) to these specs to
    # single-buffer the resident weights and free ~half their VMEM footprint.
    const = lambda i: (0, 0)
    in_specs = [
        pl.BlockSpec((tb, M_pad), lambda i: (i, 0)),   # x tile (bf16)
        pl.BlockSpec((M_pad, H), const),               # w1 (bf16)
        pl.BlockSpec((1, H), const),                   # b1
        pl.BlockSpec((H, H), const),                   # w2
        pl.BlockSpec((1, H), const),                   # b2
        pl.BlockSpec((H, H), const),                   # w3
        pl.BlockSpec((1, H), const),                   # b3
        pl.BlockSpec((H, M_pad), const),               # w4 (bf16)
        pl.BlockSpec((1, M_pad), const),               # b4
    ]
    out_specs = pl.BlockSpec((tb, M_pad), lambda i: (i, 0))

    flops = 2 * B_pad * (M_pad * H + H * H + H * H + H * M_pad)
    transcendentals = B_pad * 3 * H
    bytes_accessed = (sum(int(a.size) * a.dtype.itemsize for a in args)
                      + B_pad * M_pad * 2)             # bf16 output

    out_p = pl.pallas_call(
        sae_kernel,
        out_shape=jax.ShapeDtypeStruct((B_pad, M_pad), jnp.bfloat16),
        grid=grid,
        in_specs=in_specs,
        out_specs=out_specs,
        compiler_params=pltpu.CompilerParams(
            dimension_semantics=("parallel",),
            vmem_limit_bytes=_vmem_budget_bytes(tb, M_pad, H)),
        cost_estimate=pl.CostEstimate(flops=int(flops),
                                      transcendentals=int(transcendentals),
                                      bytes_accessed=int(bytes_accessed)),
    )(*args)

    return out_p[:B, :nb_movies]


def sae_reference(x, p):
    """Pure-JAX reference mirroring the kernel's precision choices
    (bf16 operands into fc1/fc4, f32 accumulation and elementwise)."""
    h = jax.nn.sigmoid(
        jnp.dot(x.astype(jnp.bfloat16), p["w1"],
                preferred_element_type=jnp.float32) + p["b1"])
    h = jax.nn.sigmoid(jnp.dot(h, p["w2"], preferred_element_type=jnp.float32) + p["b2"])
    h = jax.nn.sigmoid(jnp.dot(h, p["w3"], preferred_element_type=jnp.float32) + p["b3"])
    return (jnp.dot(h.astype(jnp.bfloat16), p["w4"],
                    preferred_element_type=jnp.float32) + p["b4"])


if __name__ == "__main__":
    nb_movies = 300   # not a multiple of 128 -> exercises lane padding
    batch = 1024      # 4 grid steps at tb=256 -> >=2 steps per TensorCore on v7x

    key = jax.random.PRNGKey(0)
    k_params, k_x = jax.random.split(key)

    params = init_params(k_params, nb_movies)
    prepared = prepare_params(params, nb_movies)   # padded once, reused every call

    # synthetic ratings in [0, 5], with zeros sprinkled in (like unrated movies)
    x = jax.random.uniform(k_x, (batch, nb_movies), jnp.float32, 0.0, 5.0)
    x = jnp.where(x < 2.0, 0.0, x)

    out = jax.block_until_ready(sae_forward(x, prepared, tb=256))

    ref = sae_reference(x, params)
    assert out.shape == (batch, nb_movies)
    assert out.dtype == jnp.bfloat16
    # bf16 operands into fc1/fc4 in both paths + bf16 output rounding (~0.4% rel).
    assert jnp.allclose(out.astype(jnp.float32), ref, atol=2e-2, rtol=2e-2), \
        "mismatch vs reference"

    print("KERNEL_OK")
</pallas_src>

<mosaic_0001>
module attributes {stable_mosaic.version = 11 : i64} {
  func.func @sae_kernel(%arg0: i32, %arg1: memref<256x384xbf16, #tpu.memory_space<vmem>>, %arg2: memref<384x128xbf16, #tpu.memory_space<vmem>>, %arg3: memref<1x128xf32, #tpu.memory_space<vmem>>, %arg4: memref<128x128xf32, #tpu.memory_space<vmem>>, %arg5: memref<1x128xf32, #tpu.memory_space<vmem>>, %arg6: memref<128x128xf32, #tpu.memory_space<vmem>>, %arg7: memref<1x128xf32, #tpu.memory_space<vmem>>, %arg8: memref<128x384xbf16, #tpu.memory_space<vmem>>, %arg9: memref<1x384xf32, #tpu.memory_space<vmem>>, %arg10: memref<256x384xbf16, #tpu.memory_space<vmem>>) attributes {dimension_semantics = [#tpu.dimension_semantics<parallel>], iteration_bounds = array<i64: 4>, scalar_prefetch = 0 : i64, scratch_operands = 0 : i64, tpu.core_type = #tpu.core_type<tc>, window_params = [{transform_indices = @transform_0, window_bounds = array<i64: 256, 384>}, {pipeline_mode = #tpu.pipeline_mode<synchronous>, transform_indices = @transform_1, window_bounds = array<i64: 384, 128>}, {pipeline_mode = #tpu.pipeline_mode<synchronous>, transform_indices = @transform_2, window_bounds = array<i64: 1, 128>}, {pipeline_mode = #tpu.pipeline_mode<synchronous>, transform_indices = @transform_3, window_bounds = array<i64: 128, 128>}, {pipeline_mode = #tpu.pipeline_mode<synchronous>, transform_indices = @transform_4, window_bounds = array<i64: 1, 128>}, {pipeline_mode = #tpu.pipeline_mode<synchronous>, transform_indices = @transform_5, window_bounds = array<i64: 128, 128>}, {pipeline_mode = #tpu.pipeline_mode<synchronous>, transform_indices = @transform_6, window_bounds = array<i64: 1, 128>}, {pipeline_mode = #tpu.pipeline_mode<synchronous>, transform_indices = @transform_7, window_bounds = array<i64: 128, 384>}, {pipeline_mode = #tpu.pipeline_mode<synchronous>, transform_indices = @transform_8, window_bounds = array<i64: 1, 384>}, {transform_indices = @transform_9, window_bounds = array<i64: 256, 384>}]} {
    %c0 = arith.constant 0 : index
    %c0_0 = arith.constant 0 : index
    %0 = vector.load %arg1[%c0, %c0_0] : memref<256x384xbf16, #tpu.memory_space<vmem>>, vector<256x384xbf16>
    %c0_1 = arith.constant 0 : index
    %c0_2 = arith.constant 0 : index
    %1 = vector.load %arg2[%c0_1, %c0_2] : memref<384x128xbf16, #tpu.memory_space<vmem>>, vector<384x128xbf16>
    %cst = arith.constant dense<0.000000e+00> : vector<256x128xf32>
    %2 = tpu.matmul %0, %1, %cst {dimension_numbers = #tpu.dot_dimension_numbers<[1], [0], [0], [1], [0, 0, 1, 1], [], []>} : vector<256x384xbf16>, vector<384x128xbf16>, vector<256x128xf32> -> vector<256x128xf32>
    %c0_3 = arith.constant 0 : index
    %c0_4 = arith.constant 0 : index
    %3 = vector.load %arg3[%c0_3, %c0_4] : memref<1x128xf32, #tpu.memory_space<vmem>>, vector<1x128xf32>
    %4 = vector.broadcast %3 : vector<1x128xf32> to vector<256x128xf32>
    %5 = arith.addf %2, %4 : vector<256x128xf32>
    %cst_5 = arith.constant 0.000000e+00 : f32
    %6 = vector.broadcast %cst_5 : f32 to vector<256x128xf32>
    %7 = arith.subf %6, %5 : vector<256x128xf32>
    %8 = math.exp %7 : vector<256x128xf32>
    %cst_6 = arith.constant 1.000000e+00 : f32
    %9 = vector.broadcast %cst_6 : f32 to vector<256x128xf32>
    %10 = arith.addf %9, %8 : vector<256x128xf32>
    %11 = tpu.reciprocal %10 : vector<256x128xf32> -> vector<256x128xf32>
    %c0_7 = arith.constant 0 : index
    %c0_8 = arith.constant 0 : index
    %12 = vector.load %arg4[%c0_7, %c0_8] : memref<128x128xf32, #tpu.memory_space<vmem>>, vector<128x128xf32>
    %cst_9 = arith.constant dense<0.000000e+00> : vector<256x128xf32>
    %13 = tpu.matmul %11, %12, %cst_9 {dimension_numbers = #tpu.dot_dimension_numbers<[1], [0], [0], [1], [0, 0, 1, 1], [], []>} : vector<256x128xf32>, vector<128x128xf32>, vector<256x128xf32> -> vector<256x128xf32>
    %c0_10 = arith.constant 0 : index
    %c0_11 = arith.constant 0 : index
    %14 = vector.load %arg5[%c0_10, %c0_11] : memref<1x128xf32, #tpu.memory_space<vmem>>, vector<1x128xf32>
    %15 = vector.broadcast %14 : vector<1x128xf32> to vector<256x128xf32>
    %16 = arith.addf %13, %15 : vector<256x128xf32>
    %cst_12 = arith.constant 0.000000e+00 : f32
    %17 = vector.broadcast %cst_12 : f32 to vector<256x128xf32>
    %18 = arith.subf %17, %16 : vector<256x128xf32>
    %19 = math.exp %18 : vector<256x128xf32>
    %cst_13 = arith.constant 1.000000e+00 : f32
    %20 = vector.broadcast %cst_13 : f32 to vector<256x128xf32>
    %21 = arith.addf %20, %19 : vector<256x128xf32>
    %22 = tpu.reciprocal %21 : vector<256x128xf32> -> vector<256x128xf32>
    %c0_14 = arith.constant 0 : index
    %c0_15 = arith.constant 0 : index
    %23 = vector.load %arg6[%c0_14, %c0_15] : memref<128x128xf32, #tpu.memory_space<vmem>>, vector<128x128xf32>
    %cst_16 = arith.constant dense<0.000000e+00> : vector<256x128xf32>
    %24 = tpu.matmul %22, %23, %cst_16 {dimension_numbers = #tpu.dot_dimension_numbers<[1], [0], [0], [1], [0, 0, 1, 1], [], []>} : vector<256x128xf32>, vector<128x128xf32>, vector<256x128xf32> -> vector<256x128xf32>
    %c0_17 = arith.constant 0 : index
    %c0_18 = arith.constant 0 : index
    %25 = vector.load %arg7[%c0_17, %c0_18] : memref<1x128xf32, #tpu.memory_space<vmem>>, vector<1x128xf32>
    %26 = vector.broadcast %25 : vector<1x128xf32> to vector<256x128xf32>
    %27 = arith.addf %24, %26 : vector<256x128xf32>
    %cst_19 = arith.constant 0.000000e+00 : f32
    %28 = vector.broadcast %cst_19 : f32 to vector<256x128xf32>
    %29 = arith.subf %28, %27 : vector<256x128xf32>
    %30 = math.exp %29 : vector<256x128xf32>
    %cst_20 = arith.constant 1.000000e+00 : f32
    %31 = vector.broadcast %cst_20 : f32 to vector<256x128xf32>
    %32 = arith.addf %31, %30 : vector<256x128xf32>
    %33 = tpu.reciprocal %32 : vector<256x128xf32> -> vector<256x128xf32>
    %34 = arith.truncf %33 : vector<256x128xf32> to vector<256x128xbf16>
    %c0_21 = arith.constant 0 : index
    %c0_22 = arith.constant 0 : index
    %35 = vector.load %arg8[%c0_21, %c0_22] : memref<128x384xbf16, #tpu.memory_space<vmem>>, vector<128x384xbf16>
    %cst_23 = arith.constant dense<0.000000e+00> : vector<256x384xf32>
    %36 = tpu.matmul %34, %35, %cst_23 {dimension_numbers = #tpu.dot_dimension_numbers<[1], [0], [0], [1], [0, 0, 1, 1], [], []>} : vector<256x128xbf16>, vector<128x384xbf16>, vector<256x384xf32> -> vector<256x384xf32>
    %c0_24 = arith.constant 0 : index
    %c0_25 = arith.constant 0 : index
    %37 = vector.load %arg9[%c0_24, %c0_25] : memref<1x384xf32, #tpu.memory_space<vmem>>, vector<1x384xf32>
    %38 = vector.broadcast %37 : vector<1x384xf32> to vector<256x384xf32>
    %39 = arith.addf %36, %38 : vector<256x384xf32>
    %40 = arith.truncf %39 : vector<256x384xf32> to vector<256x384xbf16>
    %c0_26 = arith.constant 0 : index
    %c0_27 = arith.constant 0 : index
    %41 = vector.load %arg10[%c0_26, %c0_27] : memref<256x384xbf16, #tpu.memory_space<vmem>>, vector<256x384xbf16>
    tpu.vector_store %arg10[%c0_26, %c0_27], %40 {strides = array<i32>} : memref<256x384xbf16, #tpu.memory_space<vmem>>, vector<256x384xbf16>,
    return
  }
  func.func @transform_0(%arg0: i32) -> (i32, i32) {
    %c0_i32 = arith.constant 0 : i32
    %c0_i32_0 = arith.constant 0 : i32
    return %arg0, %c0_i32 : i32, i32
  }
  func.func @transform_1(%arg0: i32) -> (i32, i32) {
    %c0_i32 = arith.constant 0 : i32
    %c0_i32_0 = arith.constant 0 : i32
    %c0_i32_1 = arith.constant 0 : i32
    return %c0_i32, %c0_i32_0 : i32, i32
  }
  func.func @transform_2(%arg0: i32) -> (i32, i32) {
    %c0_i32 = arith.constant 0 : i32
    %c0_i32_0 = arith.constant 0 : i32
    %c0_i32_1 = arith.constant 0 : i32
    return %c0_i32, %c0_i32_0 : i32, i32
  }
  func.func @transform_3(%arg0: i32) -> (i32, i32) {
    %c0_i32 = arith.constant 0 : i32
    %c0_i32_0 = arith.constant 0 : i32
    %c0_i32_1 = arith.constant 0 : i32
    return %c0_i32, %c0_i32_0 : i32, i32
  }
  func.func @transform_4(%arg0: i32) -> (i32, i32) {
    %c0_i32 = arith.constant 0 : i32
    %c0_i32_0 = arith.constant 0 : i32
    %c0_i32_1 = arith.constant 0 : i32
    return %c0_i32, %c0_i32_0 : i32, i32
  }
  func.func @transform_5(%arg0: i32) -> (i32, i32) {
    %c0_i32 = arith.constant 0 : i32
    %c0_i32_0 = arith.constant 0 : i32
    %c0_i32_1 = arith.constant 0 : i32
    return %c0_i32, %c0_i32_0 : i32, i32
  }
  func.func @transform_6(%arg0: i32) -> (i32, i32) {
    %c0_i32 = arith.constant 0 : i32
    %c0_i32_0 = arith.constant 0 : i32
    %c0_i32_1 = arith.constant 0 : i32
    return %c0_i32, %c0_i32_0 : i32, i32
  }
  func.func @transform_7(%arg0: i32) -> (i32, i32) {
    %c0_i32 = arith.constant 0 : i32
    %c0_i32_0 = arith.constant 0 : i32
    %c0_i32_1 = arith.constant 0 : i32
    return %c0_i32, %c0_i32_0 : i32, i32
  }
  func.func @transform_8(%arg0: i32) -> (i32, i32) {
    %c0_i32 = arith.constant 0 : i32
    %c0_i32_0 = arith.constant 0 : i32
    %c0_i32_1 = arith.constant 0 : i32
    return %c0_i32, %c0_i32_0 : i32, i32
  }
  func.func @transform_9(%arg0: i32) -> (i32, i32) {
    %c0_i32 = arith.constant 0 : i32
    %c0_i32_0 = arith.constant 0 : i32
    return %arg0, %c0_i32 : i32, i32
  }
}

</mosaic_0001>

<bundles_post_ra>
// kernel: sae_forward.1
= control target key start
LH: loop header
LB: loop body
LE: loop exit
PB: predicated region body
PF: predicated region fallthrough
CT: control target
= control target key end

     0   :  { %s4706_s30 = smov 0   ;;  %s6966_s0 = inlined_call_operand.vmem [shape: bf16[1024,384], index: 0, kind: input, shape index: {}]   ;;  %s6967_s1 = inlined_call_operand.vmem [shape: bf16[384,128], index: 1, kind: input, shape index: {}]   ;;  %s6968_s2 = inlined_call_operand.vmem [shape: f32[1,128], index: 2, kind: input, shape index: {}]   ;;  %s6969_s3 = inlined_call_operand.vmem [shape: f32[128,128], index: 3, kind: input, shape index: {}]   ;;  %s6970_s4 = inlined_call_operand.vmem [shape: f32[1,128], index: 4, kind: input, shape index: {}]   ;;  %s6971_s5 = inlined_call_operand.vmem [shape: f32[128,128], index: 5, kind: input, shape index: {}]   ;;  %s6972_s6 = inlined_call_operand.vmem [shape: f32[1,128], index: 6, kind: input, shape index: {}]   ;;  %s6973_s7 = inlined_call_operand.vmem [shape: bf16[128,384], index: 7, kind: input, shape index: {}]   ;;  %s6974_s8 = inlined_call_operand.vmem [shape: f32[1,384], index: 8, kind: input, shape index: {}]   ;;  %s6975_s9 = inlined_call_operand.vmem [shape: bf16[1024,384], index: 9, kind: output, shape index: {}]  }
   0x1 LB: > { %s3755_s10 = sadd.s32 4294967295, %s4654_s30   ;;  %p3759_p0 = scmp.ge.s32.totalorder %s4654_s30, 1  ;;  %s4654_s30 = sphi %s4706_s30, %s19_s30  }
   0x2   : > { %p289_p1 = scmp.lt.s32.totalorder %s4654_s30, 5 }
   0x4   : > { %p290_p2 = pnand %p3759_p0, %p289_p1 }
   0x5   : > { %s3760_s29 = sshll.u32 (!%p290_p2), %s3755_s10, 5 }
   0x6   : > { %293 = sbr.rel (%p290_p2) target bundleno = 944 (0x3b0), region = 56  ;;  %p328_p3 = scmp.lt.s32.totalorder (!%p290_p2), %s3760_s29, 127 }
   0xb   : > { %v4205_v0 = vld [vmem:[%s6967_s1 + $0x38] sm:$0xff]  ;;  %v4204_v3 = vld [vmem:[%s6967_s1 + $0x30] sm:$0xff]  ;;  %v4203_v6 = vld [vmem:[%s6967_s1 + $0x28] sm:$0xff]  ;;  %s7091_s29 = smov (!%p328_p3, %s3760_s29), 127 }
   0xc   : > { %v4213_v1 = vld [vmem:[%s6967_s1 + $0x78] sm:$0xff]  ;;  %857 = vmatpush.bf16.msra.mxu0 %v4205_v0  ;;  %v4212_v4 = vld [vmem:[%s6967_s1 + $0x70] sm:$0xff]  ;;  %v4211_v7 = vld [vmem:[%s6967_s1 + $0x68] sm:$0xff]  ;;  %s4246_s26 = smul.u32 12, %s7091_s29 }
   0xd   : > { %v4221_v2 = vld [vmem:[%s6967_s1 + $0xb8] sm:$0xff]  ;;  %946 = vmatpush.bf16.msra.mxu1 %v4213_v1  ;;  %v4220_v5 = vld [vmem:[%s6967_s1 + $0xb0] sm:$0xff]  ;;  %v4219_v8 = vld [vmem:[%s6967_s1 + $0xa8] sm:$0xff] }
   0xe   : > { %1035 = vmatpush.bf16.msra.mxu2 %v4221_v2  ;;  %v4202_v9 = vld [vmem:[%s6967_s1 + $0x20] sm:$0xff]  ;;  %v4201_v12 = vld [vmem:[%s6967_s1 + $0x18] sm:$0xff]  ;;  %v4200_v15 = vld [vmem:[%s6967_s1 + $0x10] sm:$0xff]  ;;  %s4782_s17 = scalar_lea.vmem %s6966_s0, %s4246_s26  ;;  %s6555_s11 = scalar_lea.vmem %s6975_s9, %s4246_s26 }
   0xf   : > { %v4210_v10 = vld [vmem:[%s6967_s1 + $0x60] sm:$0xff]  ;;  %v4209_v13 = vld [vmem:[%s6967_s1 + $0x58] sm:$0xff]  ;;  %v4208_v16 = vld [vmem:[%s6967_s1 + $0x50] sm:$0xff] }
  0x10   : > { %858 = vmatpush.bf16.msra.mxu0 %v4204_v3  ;;  %v4218_v11 = vld [vmem:[%s6967_s1 + $0xa0] sm:$0xff]  ;;  %v4217_v14 = vld [vmem:[%s6967_s1 + $0x98] sm:$0xff]  ;;  %v4216_v17 = vld [vmem:[%s6967_s1 + $0x90] sm:$0xff] }
  0x11   : > { %947 = vmatpush.bf16.msra.mxu1 %v4212_v4  ;;  %v4199_v18 = vld [vmem:[%s6967_s1 + $0x8] sm:$0xff]  ;;  %v4198_v21 = vld [vmem:[%s6967_s1] sm:$0xff]  ;;  %v3768_v26 = vld [vmem:[%s4782_s17 + $0xc] sm:$0xf0] }
  0x12   : > { %1036 = vmatpush.bf16.msra.mxu2 %v4220_v5  ;;  %v4207_v19 = vld [vmem:[%s6967_s1 + $0x48] sm:$0xff]  ;;  %v4206_v22 = vld [vmem:[%s6967_s1 + $0x40] sm:$0xff]  ;;  %v4152_v29 = vld [vmem:[%s4782_s17 + $0x10] sm:$0xf0] }
  0x13   : > { %v4215_v20 = vld [vmem:[%s6967_s1 + $0x88] sm:$0xff]  ;;  %v3766_v23 = vld [vmem:[%s4782_s17] sm:$0xf]  ;;  %v4150_v25 = vld [vmem:[%s4782_s17 + $0x4] sm:$0xf] }
  0x14   : > { %859 = vmatpush.bf16.msra.mxu0 %v4203_v6  ;;  %v4151_v24 = vld [vmem:[%s4782_s17 + $0x8] sm:$0xf0]  ;;  %v4214_v27 = vld [vmem:[%s6967_s1 + $0x80] sm:$0xff]  ;;  %v3774_v28 = vld [vmem:[%s4782_s17 + $0x8] sm:$0xf]  ;;  %v3771_v31 = vor.u32 %v4150_v25, %v3768_v26 }
  0x15   : > { %948 = vmatpush.bf16.msra.mxu1 %v4211_v7  ;;  %v3767_v30 = vor.u32 %v4151_v24, %v3766_v23  ;;  %v3775_v32 = vor.u32 %v4152_v29, %v3774_v28  ;;  %v3778_v33 = vld [vmem:[%s4782_s17 + $0x18] sm:$0xf]  ;;  %v4154_v34 = vld [vmem:[%s4782_s17 + $0x20] sm:$0xf0]  ;;  %v4153_v35 = vld [vmem:[%s4782_s17 + $0x1c] sm:$0xf] }
  0x16   : > { %1037 = vmatpush.bf16.msra.mxu2 %v4219_v8  ;;  %v3780_v36 = vld [vmem:[%s4782_s17 + $0x24] sm:$0xf0]  ;;  %v3786_v37 = vld [vmem:[%s4782_s17 + $0x20] sm:$0xf]  ;;  %v4155_v38 = vld [vmem:[%s4782_s17 + $0x28] sm:$0xf0]  ;;  %v3779_v39 = vor.u32 %v4154_v34, %v3778_v33 }
  0x17   : > { %v3783_v40 = vor.u32 %v4153_v35, %v3780_v36  ;;  %v3787_v41 = vor.u32 %v4155_v38, %v3786_v37  ;;  %v3790_v42 = vld [vmem:[%s4782_s17 + $0x30] sm:$0xf]  ;;  %v4157_v43 = vld [vmem:[%s4782_s17 + $0x38] sm:$0xf0]  ;;  %v4156_v44 = vld [vmem:[%s4782_s17 + $0x34] sm:$0xf] }
  0x18   : > { %860 = vmatpush.bf16.msra.mxu0 %v4202_v9  ;;  %v3792_v45 = vld [vmem:[%s4782_s17 + $0x3c] sm:$0xf0]  ;;  %v3798_v46 = vld [vmem:[%s4782_s17 + $0x38] sm:$0xf]  ;;  %v4158_v47 = vld [vmem:[%s4782_s17 + $0x40] sm:$0xf0]  ;;  %v3791_v48 = vor.u32 %v4157_v43, %v3790_v42 }
  0x19   : > { %949 = vmatpush.bf16.msra.mxu1 %v4210_v10  ;;  %v3795_v49 = vor.u32 %v4156_v44, %v3792_v45  ;;  %v3799_v50 = vor.u32 %v4158_v47, %v3798_v46  ;;  %v2424_v51 = vld [vmem:[%s6971_s5 + $0x78] sm:$0xff]  ;;  %v3802_v52 = vld [vmem:[%s4782_s17 + $0x48] sm:$0xf]  ;;  %v4160_v53 = vld [vmem:[%s4782_s17 + $0x50] sm:$0xf0] }
  0x1a   : > { %1038 = vmatpush.bf16.msra.mxu2 %v4218_v11  ;;  %v4159_v54 = vld [vmem:[%s4782_s17 + $0x4c] sm:$0xf]  ;;  %v3804_v55 = vld [vmem:[%s4782_s17 + $0x54] sm:$0xf0]  ;;  %v3810_v56 = vld [vmem:[%s4782_s17 + $0x50] sm:$0xf]  ;;  %v3803_v58 = vor.u32 %v4160_v53, %v3802_v52 }
  0x1b   : > { %v4161_v57 = vld [vmem:[%s4782_s17 + $0x58] sm:$0xf0]  ;;  %v3807_v59 = vor.u32 %v4159_v54, %v3804_v55  ;;  %v2423_v61 = vld [vmem:[%s6971_s5 + $0x70] sm:$0xff]  ;;  %v3814_v62 = vld [vmem:[%s4782_s17 + $0x60] sm:$0xf] }
  0x1c   : > { %861 = vmatpush.bf16.msra.mxu0 %v4201_v12  ;;  %v3811_v60 = vor.u32 %v4161_v57, %v3810_v56  ;;  %v4163_v63 = vld [vmem:[%s4782_s17 + $0x68] sm:$0xf0]  ;;  %v4162_v0 = vld [vmem:[%s4782_s17 + $0x64] sm:$0xf]  ;;  %v3816_v1 = vld [vmem:[%s4782_s17 + $0x6c] sm:$0xf0] }
  0x1d   : > { %950 = vmatpush.bf16.msra.mxu1 %v4209_v13  ;;  %v3822_v2 = vld [vmem:[%s4782_s17 + $0x68] sm:$0xf]  ;;  %v4164_v3 = vld [vmem:[%s4782_s17 + $0x70] sm:$0xf0]  ;;  %v3815_v4 = vor.u32 %v4163_v63, %v3814_v62  ;;  %v3819_v5 = vor.u32 %v4162_v0, %v3816_v1  ;;  %v3826_v8 = vld [vmem:[%s4782_s17 + $0x78] sm:$0xf] }
  0x1e   : > { %1039 = vmatpush.bf16.msra.mxu2 %v4217_v14  ;;  %v3823_v6 = vor.u32 %v4164_v3, %v3822_v2  ;;  %v2422_v7 = vld [vmem:[%s6971_s5 + $0x68] sm:$0xff]  ;;  %v4166_v9 = vld [vmem:[%s4782_s17 + $0x80] sm:$0xf0]  ;;  %v4165_v10 = vld [vmem:[%s4782_s17 + $0x7c] sm:$0xf] }
  0x1f   : > { %v3828_v11 = vld [vmem:[%s4782_s17 + $0x84] sm:$0xf0]  ;;  %v3834_v12 = vld [vmem:[%s4782_s17 + $0x80] sm:$0xf]  ;;  %v4167_v13 = vld [vmem:[%s4782_s17 + $0x88] sm:$0xf0]  ;;  %v3827_v14 = vor.u32 %v4166_v9, %v3826_v8 }
  0x20   : > { %862 = vmatpush.bf16.msra.mxu0 %v4200_v15  ;;  %v3831_v15 = vor.u32 %v4165_v10, %v3828_v11  ;;  %v4170_v23 = vld [vmem:[%s4782_s17 + $0xa0] sm:$0xf0]  ;;  %v1714_v28 = vld [vmem:[%s6969_s3 + $0x70] sm:$0xff]  ;;  %v3850_v29 = vld [vmem:[%s4782_s17 + $0xa8] sm:$0xf] }
  0x21   : > { %951 = vmatpush.bf16.msra.mxu1 %v4208_v16  ;;  %v3835_v16 = vor.u32 %v4167_v13, %v3834_v12  ;;  %v1713_v33 = vld [vmem:[%s6969_s3 + $0x68] sm:$0xff]  ;;  %v3858_v34 = vld [vmem:[%s4782_s17 + $0xb0] sm:$0xf]  ;;  %v4173_v35 = vld [vmem:[%s4782_s17 + $0xb8] sm:$0xf0] }
  0x22   : > { %1040 = vmatpush.bf16.msra.mxu2 %v4216_v17  ;;  %v2421_v17 = vld [vmem:[%s6971_s5 + $0x60] sm:$0xff]  ;;  %v1709_v42 = vld [vmem:[%s6969_s3 + $0x48] sm:$0xff]  ;;  %v2420_v44 = vld [vmem:[%s6971_s5 + $0x58] sm:$0xff] }
  0x23   : > { %v1712_v36 = vld [vmem:[%s6969_s3 + $0x60] sm:$0xff]  ;;  %v1707_v45 = vld [vmem:[%s6969_s3 + $0x38] sm:$0xff]  ;;  %v1706_v46 = vld [vmem:[%s6969_s3 + $0x30] sm:$0xff] }
  0x24   : > { %863 = vmatpush.bf16.msra.mxu0 %v4199_v18  ;;  %v3838_v18 = vld [vmem:[%s4782_s17 + $0x90] sm:$0xf]  ;;  %v1708_v43 = vld [vmem:[%s6969_s3 + $0x40] sm:$0xff]  ;;  %v3870_v53 = vld [vmem:[%s4782_s17 + $0xc8] sm:$0xf] }
  0x25   : > { %952 = vmatpush.bf16.msra.mxu1 %v4207_v19  ;;  %v4169_v19 = vld [vmem:[%s4782_s17 + $0x98] sm:$0xf0]  ;;  %v3862_v47 = vld [vmem:[%s4782_s17 + $0xc0] sm:$0xf]  ;;  %v4176_v54 = vld [vmem:[%s4782_s17 + $0xd0] sm:$0xf0] }
  0x26   : > { %1041 = vmatpush.bf16.msra.mxu2 %v4215_v20  ;;  %v4168_v20 = vld [vmem:[%s4782_s17 + $0x94] sm:$0xf]  ;;  %v3839_v24 = vor.u32 %v4169_v19, %v3838_v18  ;;  %v4899_v52 = vld [vmem:[%s6968_s2] ss:$0 sm:$0xff]  ;;  %v1701_v1 = vld [vmem:[%s6969_s3 + $0x8] sm:$0xff] }
  0x27   : > { %v1704_v55 = vld [vmem:[%s6969_s3 + $0x20] sm:$0xff]  ;;  %v1702_v63 = vld [vmem:[%s6969_s3 + $0x10] sm:$0xff]  ;;  %v3874_v10 = vld [vmem:[%s4782_s17 + $0xd8] sm:$0xf] }
  0x28   : > { %864 = vmatpush.bf16.msra.mxu0 %v4198_v21  ;;  %v3840_v21 = vld [vmem:[%s4782_s17 + $0x9c] sm:$0xf0]  ;;  %v4178_v11 = vld [vmem:[%s4782_s17 + $0xe0] sm:$0xf0]  ;;  %v4177_v13 = vld [vmem:[%s4782_s17 + $0xdc] sm:$0xf] }
  0x29   : > { %953 = vmatpush.bf16.msra.mxu1 %v4206_v22  ;;  %v3846_v22 = vld [vmem:[%s4782_s17 + $0x98] sm:$0xf]  ;;  %v3843_v25 = vor.u32 %v4168_v20, %v3840_v21  ;;  %v1700_v2 = vld [vmem:[%s6969_s3] sm:$0xff]  ;;  %v3875_v19 = vor.u32 %v4178_v11, %v3874_v10 }
  0x2a   : > { %1042 = vmatpush.bf16.msra.mxu2 %v4214_v27  ;;  %v3847_v26 = vor.u32 %v4170_v23, %v3846_v22  ;;  %v1715_v27 = vld [vmem:[%s6969_s3 + $0x78] sm:$0xff]  ;;  %v2417_v11 = vld [vmem:[%s6971_s5 + $0x40] sm:$0xff] }
  0x2b   : > { %865 = vmatmul.bf16.vlgmr.msra.gmra.mxu0 %v3767_v30  ;;  %1720 = vmatpush.msra.mxu3 %v1715_v27  ;;  %v4172_v30 = vld [vmem:[%s4782_s17 + $0xb0] sm:$0xf0] }
  0x2c   : > { %954 = vmatmul.bf16.vlgmr.msra.gmra.mxu1 %v3771_v31  ;;  %2429 = vmatpush.msrb.mxu0 %v2424_v51  ;;  %v4171_v31 = vld [vmem:[%s4782_s17 + $0xac] sm:$0xf]  ;;  %v3851_v37 = vor.u32 %v4172_v30, %v3850_v29 }
  0x2d   : > { %1043 = vmatmul.bf16.vlgmr.msra.gmra.mxu2 %v3775_v32  ;;  %1721 = vmatpush.msra.mxu3 %v1714_v28  ;;  %v3852_v32 = vld [vmem:[%s4782_s17 + $0xb4] sm:$0xf0]  ;;  %v1705_v51 = vld [vmem:[%s6969_s3 + $0x28] sm:$0xff] }
  0x2e   : > { %2430 = vmatpush.msrb.mxu0 %v2423_v61  ;;  %v3855_v38 = vor.u32 %v4171_v31, %v3852_v32  ;;  %v1703_v61 = vld [vmem:[%s6969_s3 + $0x18] sm:$0xff]  ;;  %v2418_v32 = vld [vmem:[%s6971_s5 + $0x48] sm:$0xff] }
  0x2f   : > { %1722 = vmatpush.msra.mxu3 %v1713_v33 }
  0x30   : > { %2431 = vmatpush.msrb.mxu0 %v2422_v7 }
  0x31   : > { %1723 = vmatpush.msra.mxu3 %v1712_v36 }
  0x32   : > { %2432 = vmatpush.msrb.mxu0 %v2421_v17 }
  0x34   : > { %2433 = vmatpush.msrb.mxu0 %v2420_v44 }
  0x3b   : > { %870 = vmatmul.bf16.gmra.mxu0 %v3779_v39  ;;  %v3859_v39 = vor.u32 %v4173_v35, %v3858_v34 }
  0x3c   : > { %959 = vmatmul.bf16.gmra.mxu1 %v3783_v40  ;;  %v1711_v40 = vld [vmem:[%s6969_s3 + $0x58] sm:$0xff] }
  0x3d   : > { %1048 = vmatmul.bf16.gmra.mxu2 %v3787_v41  ;;  %1724 = vmatpush.msra.mxu3 %v1711_v40  ;;  %v1710_v41 = vld [vmem:[%s6969_s3 + $0x50] sm:$0xff] }
  0x3f   : > { %1725 = vmatpush.msra.mxu3 %v1710_v41 }
  0x41   : > { %1726 = vmatpush.msra.mxu3 %v1709_v42  ;;  %v4180_v42 = vld [vmem:[%s4782_s17 + $0xf4] sm:$0xf] }
  0x43   : > { %1727 = vmatpush.msra.mxu3 %v1708_v43  ;;  %v3888_v43 = vld [vmem:[%s4782_s17 + $0xfc] sm:$0xf0] }
  0x45   : > { %1728 = vmatpush.msra.mxu3 %v1707_v45 }
  0x47   : > { %1729 = vmatpush.msra.mxu3 %v1706_v46  ;;  %v3894_v46 = vld [vmem:[%s4782_s17 + $0xf8] sm:$0xf] }
  0x49   : > { %1730 = vmatpush.msra.mxu3 %v1705_v51 }
  0x4b   : > { %875 = vmatmul.bf16.gmra.mxu0 %v3791_v48  ;;  %v4175_v48 = vld [vmem:[%s4782_s17 + $0xc8] sm:$0xf0]  ;;  %1731 = vmatpush.msra.mxu3 %v1704_v55 }
  0x4c   : > { %964 = vmatmul.bf16.gmra.mxu1 %v3795_v49  ;;  %v4174_v49 = vld [vmem:[%s4782_s17 + $0xc4] sm:$0xf]  ;;  %v3863_v56 = vor.u32 %v4175_v48, %v3862_v47 }
  0x4d   : > { %1053 = vmatmul.bf16.gmra.mxu2 %v3799_v50  ;;  %v3864_v50 = vld [vmem:[%s4782_s17 + $0xcc] sm:$0xf0]  ;;  %1732 = vmatpush.msra.mxu3 %v1703_v61  ;;  %v4182_v47 = vld [vmem:[%s4782_s17 + $0x100] sm:$0xf0] }
  0x4e   : > { %v3867_v57 = vor.u32 %v4174_v49, %v3864_v50 }
  0x4f   : > { %1733 = vmatpush.msra.mxu3 %v1702_v63 }
  0x51   : > { %1734 = vmatpush.msra.mxu3 %v1701_v1 }
  0x53   : > { %1735 = vmatpush.msra.mxu3 %v1700_v2 }
  0x5b   : > { %880 = vmatmul.bf16.gmra.mxu0 %v3803_v58 }
  0x5c   : > { %969 = vmatmul.bf16.gmra.mxu1 %v3807_v59 }
  0x5d   : > { %1058 = vmatmul.bf16.gmra.mxu2 %v3811_v60  ;;  %v3871_v60 = vor.u32 %v4176_v54, %v3870_v53  ;;  %v3891_v53 = vor.u32 %v4180_v42, %v3888_v43 }
  0x6b   : > { %885 = vmatmul.bf16.gmra.mxu0 %v3815_v4  ;;  %v2419_v4 = vld [vmem:[%s6971_s5 + $0x50] sm:$0xff] }
  0x6c   : > { %974 = vmatmul.bf16.gmra.mxu1 %v3819_v5  ;;  %2434 = vmatpush.msrb.mxu0 %v2419_v4 }
  0x6d   : > { %1063 = vmatmul.bf16.gmra.mxu2 %v3823_v6 }
  0x6e   : > { %2435 = vmatpush.msrb.mxu0 %v2418_v32  ;;  %v4185_v32 = vld [vmem:[%s4782_s17 + $0x118] sm:$0xf0] }
  0x70   : > { %2436 = vmatpush.msrb.mxu0 %v2417_v11 }
  0x7b   : > { %890 = vmatmul.bf16.gmra.mxu0 %v3827_v14  ;;  %v3876_v14 = vld [vmem:[%s4782_s17 + $0xe4] sm:$0xf0] }
  0x7c   : > { %979 = vmatmul.bf16.gmra.mxu1 %v3831_v15  ;;  %v3882_v15 = vld [vmem:[%s4782_s17 + $0xe0] sm:$0xf]  ;;  %v3879_v20 = vor.u32 %v4177_v13, %v3876_v14 }
  0x7d   : > { %1068 = vmatmul.bf16.gmra.mxu2 %v3835_v16  ;;  %v4179_v16 = vld [vmem:[%s4782_s17 + $0xe8] sm:$0xf0] }
  0x8b   : > { %895 = vmatmul.bf16.gmra.mxu0 %v3839_v24  ;;  %v3883_v24 = vor.u32 %v4179_v16, %v3882_v15 }
  0x8c   : > { %984 = vmatmul.bf16.gmra.mxu1 %v3843_v25 }
  0x8d   : > { %1073 = vmatmul.bf16.gmra.mxu2 %v3847_v26 }
  0x9b   : > { %900 = vmatmul.bf16.gmra.mxu0 %v3851_v37 }
  0x9c   : > { %989 = vmatmul.bf16.gmra.mxu1 %v3855_v38  ;;  %v3886_v38 = vld [vmem:[%s4782_s17 + $0xf0] sm:$0xf] }
  0x9d   : > { %1078 = vmatmul.bf16.gmra.mxu2 %v3859_v39  ;;  %v4181_v39 = vld [vmem:[%s4782_s17 + $0xf8] sm:$0xf0] }
  0x9e   : > { %v3887_v51 = vor.u32 %v4181_v39, %v3886_v38 }
  0xa8   : > { %v866_v58 = vpop.f32.mrf.mxu0 }
  0xa9   : > { %v955_v59 = vpop.f32.mrf.mxu1  ;;  %v867_v62 = vadd.f32 %v4899_v52, %v866_v58 }
  0xab   : > { %905 = vmatmul.bf16.gmra.mxu0 %v3863_v56  ;;  %v956_v0 = vadd.f32 %v955_v59, %v867_v62 }
  0xac   : > { %994 = vmatmul.bf16.gmra.mxu1 %v3867_v57  ;;  %v3895_v57 = vor.u32 %v4182_v47, %v3894_v46 }
  0xad   : > { %1083 = vmatmul.bf16.gmra.mxu2 %v3871_v60 }
  0xb0   : > { %v1044_v3 = vpop.f32.mrf.mxu2  ;;  %v868_v6 = vpop.f32.mrf.mxu0 }
  0xb1   : > { %v1045_v5 = vadd.f32 %v1044_v3, %v956_v0  ;;  %v957_v7 = vpop.f32.mrf.mxu1  ;;  %v869_v9 = vadd.f32 %v4899_v52, %v868_v6 }
  0xb3   : > { %v1124_v8 = vsub.f32 0.0, %v1045_v5  ;;  %v958_v17 = vadd.f32 %v957_v7, %v869_v9 }
  0xb5   : > { %v1156_v12 = vmul.f32 1.442695, %v1124_v8 }
  0xb7   : > { %4258 = vpow2.f32 %v1156_v12 }
  0xb8   : > { %v1046_v18 = vpop.f32.mrf.mxu2  ;;  %v871_v22 = vpop.f32.mrf.mxu0 }
  0xb9   : > { %v1047_v21 = vadd.f32 %v1046_v18, %v958_v17  ;;  %v960_v23 = vpop.f32.mrf.mxu1  ;;  %v872_v25 = vadd.f32 %v4899_v52, %v871_v22  ;;  %v4184_v22 = vld [vmem:[%s4782_s17 + $0x110] sm:$0xf0] }
  0xbb   : > { %v1125_v26 = vsub.f32 0.0, %v1047_v21  ;;  %910 = vmatmul.bf16.gmra.mxu0 %v3875_v19  ;;  %v961_v29 = vadd.f32 %v960_v23, %v872_v25  ;;  %v3898_v21 = vld [vmem:[%s4782_s17 + $0x108] sm:$0xf]  ;;  %v4183_v23 = vld [vmem:[%s4782_s17 + $0x10c] sm:$0xf] }
  0xbc   : > { %999 = vmatmul.bf16.gmra.mxu1 %v3879_v20  ;;  %v3899_v38 = vor.u32 %v4184_v22, %v3898_v21 }
  0xbd   : > { %v4259_v27 = vpop.eup %4258  ;;  %v1158_v28 = vmul.f32 1.442695, %v1125_v26  ;;  %1088 = vmatmul.bf16.gmra.mxu2 %v3883_v24 }
  0xbe   : > { %v1220_v30 = vadd.f32 1.0, %v4259_v27  ;;  %v3900_v27 = vld [vmem:[%s4782_s17 + $0x114] sm:$0xf0] }
  0xbf   : > { %4260 = vpow2.f32 %v1158_v28  ;;  %v3906_v28 = vld [vmem:[%s4782_s17 + $0x110] sm:$0xf]  ;;  %v3903_v39 = vor.u32 %v4183_v23, %v3900_v27 }
  0xc0   : > { %4262 = vrcp.f32 %v1220_v30  ;;  %v1049_v31 = vpop.f32.mrf.mxu2  ;;  %v873_v34 = vpop.f32.mrf.mxu0  ;;  %v1263_v60 = vand.u32 2147483648, %v1220_v30  ;;  %v1261_v63 = vand.u32 2147483647, %v1220_v30  ;;  %vm1257_vm1 = vweird.f32 %v1220_v30 }
  0xc1   : > { %v1050_v33 = vadd.f32 %v1049_v31, %v961_v29  ;;  %v962_v35 = vpop.f32.mrf.mxu1  ;;  %v874_v37 = vadd.f32 %v4899_v52, %v873_v34  ;;  %v3907_v43 = vor.u32 %v4185_v32, %v3906_v28 }
  0xc2   : > { %v1264_v6 = vor.u32 1.1754944e-38, %v1263_v60  ;;  %vm1262_vm3 = vcmp.eq.f32.partialorder %v1261_v63, 8.507059e+37 }
  0xc3   : > { %v1126_v36 = vsub.f32 0.0, %v1050_v33  ;;  %v963_v48 = vadd.f32 %v962_v35, %v874_v37 }
  0xc5   : > { %v4261_v40 = vpop.eup %4260  ;;  %v1160_v41 = vmul.f32 1.442695, %v1126_v36 }
  0xc6   : > { %v4263_v44 = vpop.eup %4262  ;;  %v4938_v45 = vadd.f32 1.0, %v4261_v40 }
  0xc7   : > { %4264 = vpow2.f32 %v1160_v41  ;;  %v1253_v49 = vmul.f32 %v4263_v44, %v1220_v30  ;;  %vm1258_vm0 = vweird.f32 %v4263_v44 }
  0xc8   : > { %4266 = vrcp.f32 %v4938_v45  ;;  %v1051_v50 = vpop.f32.mrf.mxu2  ;;  %v876_v55 = vpop.f32.mrf.mxu0  ;;  %vm1259_vm2 = vmor %vm1257_vm1, %vm1258_vm0  ;;  %v1275_v16 = vand.u32 2147483647, %v4938_v45  ;;  %v1277_v17 = vand.u32 2147483648, %v4938_v45  ;;  %vm1271_vm5 = vweird.f32 %v4938_v45 }
  0xc9   : > { %v1052_v54 = vadd.f32 %v1051_v50, %v963_v48  ;;  %v965_v56 = vpop.f32.mrf.mxu1  ;;  %v1254_v58 = vsub.f32 1.0, %v1253_v49  ;;  %v877_v59 = vadd.f32 %v4899_v52, %v876_v55 }
  0xca   : > { %vm1276_vm7 = vcmp.eq.f32.partialorder %v1275_v16, 8.507059e+37  ;;  %v1278_v31 = vor.u32 1.1754944e-38, %v1277_v17 }
  0xcb   : > { %v1127_v61 = vsub.f32 0.0, %v1052_v54  ;;  %v1255_v62 = vmul.f32 %v4263_v44, %v1254_v58  ;;  %915 = vmatmul.bf16.gmra.mxu0 %v3887_v51  ;;  %v966_v2 = vadd.f32 %v965_v56, %v877_v59 }
  0xcc   : > { %1004 = vmatmul.bf16.gmra.mxu1 %v3891_v53 }
  0xcd   : > { %v4265_v0 = vpop.eup %4264  ;;  %v1162_v1 = vmul.f32 1.442695, %v1127_v61  ;;  %1093 = vmatmul.bf16.gmra.mxu2 %v3895_v57  ;;  %v1256_v3 = vadd.f32 %v4263_v44, %v1255_v62  ;;  %v2416_v62 = vld [vmem:[%s6971_s5 + $0x38] sm:$0xff] }
  0xce   : > { %v4267_v4 = vpop.eup %4266  ;;  %v4944_v5 = vadd.f32 1.0, %v4265_v0  ;;  %2437 = vmatpush.msrb.mxu0 %v2416_v62 }
  0xcf   : > { %4268 = vpow2.f32 %v1162_v1  ;;  %v1260_v7 = vsel %vm1259_vm2, %v4263_v44, %v1256_v3  ;;  %v1267_v8 = vmul.f32 %v4267_v4, %v4938_v45  ;;  %vm1272_vm4 = vweird.f32 %v4267_v4 }
  0xd0   : > { %4270 = vrcp.f32 %v4944_v5  ;;  %v1054_v9 = vpop.f32.mrf.mxu2  ;;  %v1265_v10 = vsel %vm1262_vm3, %v1264_v6, %v1260_v7  ;;  %v878_v13 = vpop.f32.mrf.mxu0  ;;  %vm1273_vm6 = vmor %vm1271_vm5, %vm1272_vm4  ;;  %v1291_v46 = vand.u32 2147483648, %v4944_v5  ;;  %v1289_v49 = vand.u32 2147483647, %v4944_v5 }
  0xd1   : > { %v1055_v12 = vadd.f32 %v1054_v9, %v966_v2  ;;  %1736 = vmatmul.f32.vlgmr.msra.gmra.mxu3 %v1265_v10  ;;  %v967_v14 = vpop.f32.mrf.mxu1  ;;  %v1268_v15 = vsub.f32 1.0, %v1267_v8  ;;  %v879_v19 = vadd.f32 %v4899_v52, %v878_v13  ;;  %vm1285_vm9 = vweird.f32 %v4944_v5  ;;  %v3910_v8 = vld [vmem:[%s4782_s17 + $0x120] sm:$0xf]  ;;  %v4187_v9 = vld [vmem:[%s4782_s17 + $0x128] sm:$0xf0] }
  0xd2   : > { %v1292_v57 = vor.u32 1.1754944e-38, %v1291_v46  ;;  %vm1290_vm11 = vcmp.eq.f32.partialorder %v1289_v49, 8.507059e+37  ;;  %v4186_v10 = vld [vmem:[%s4782_s17 + $0x124] sm:$0xf] }
  0xd3   : > { %v1128_v18 = vsub.f32 0.0, %v1055_v12  ;;  %v1269_v20 = vmul.f32 %v4267_v4, %v1268_v15  ;;  %v968_v33 = vadd.f32 %v967_v14, %v879_v19  ;;  %v3912_v14 = vld [vmem:[%s4782_s17 + $0x12c] sm:$0xf0]  ;;  %v3918_v15 = vld [vmem:[%s4782_s17 + $0x128] sm:$0xf] }
  0xd4   : > { %v4188_v19 = vld [vmem:[%s4782_s17 + $0x130] sm:$0xf0] }
  0xd5   : > { %v4269_v24 = vpop.eup %4268  ;;  %v1164_v25 = vmul.f32 1.442695, %v1128_v18  ;;  %v1270_v26 = vadd.f32 %v4267_v4, %v1269_v20 }
  0xd6   : > { %v4271_v29 = vpop.eup %4270  ;;  %v4960_v30 = vadd.f32 1.0, %v4269_v24 }
  0xd7   : > { %4272 = vpow2.f32 %v1164_v25  ;;  %v1274_v34 = vsel %vm1273_vm6, %v4267_v4, %v1270_v26  ;;  %v1281_v35 = vmul.f32 %v4271_v29, %v4944_v5  ;;  %vm1286_vm8 = vweird.f32 %v4271_v29 }
  0xd8   : > { %4274 = vrcp.f32 %v4960_v30  ;;  %v1056_v36 = vpop.f32.mrf.mxu2  ;;  %v1279_v37 = vsel %vm1276_vm7, %v1278_v31, %v1274_v34  ;;  %v881_v41 = vpop.f32.mrf.mxu0  ;;  %vm1287_vm10 = vmor %vm1285_vm9, %vm1286_vm8  ;;  %v1303_v3 = vand.u32 2147483647, %v4960_v30  ;;  %v1305_v4 = vand.u32 2147483648, %v4960_v30 }
  0xd9   : > { %v1057_v40 = vadd.f32 %v1056_v36, %v968_v33  ;;  %1739 = vmatmul.f32.gmra.mxu3 %v1279_v37  ;;  %v970_v42 = vpop.f32.mrf.mxu1  ;;  %v1282_v44 = vsub.f32 1.0, %v1281_v35  ;;  %v882_v45 = vadd.f32 %v4899_v52, %v881_v41  ;;  %vm1299_vm13 = vweird.f32 %v4960_v30 }
  0xda   : > { %vm1304_vm15 = vcmp.eq.f32.partialorder %v1303_v3, 8.507059e+37  ;;  %v1306_v18 = vor.u32 1.1754944e-38, %v1305_v4  ;;  %v3911_v25 = vor.u32 %v4187_v9, %v3910_v8  ;;  %v3915_v26 = vor.u32 %v4186_v10, %v3912_v14 }
  0xdb   : > { %v1129_v47 = vsub.f32 0.0, %v1057_v40  ;;  %v1283_v48 = vmul.f32 %v4271_v29, %v1282_v44  ;;  %920 = vmatmul.bf16.gmra.mxu0 %v3899_v38  ;;  %v971_v53 = vadd.f32 %v970_v42, %v882_v45 }
  0xdc   : > { %1009 = vmatmul.bf16.gmra.mxu1 %v3903_v39 }
  0xdd   : > { %v4273_v50 = vpop.eup %4272  ;;  %v1166_v51 = vmul.f32 1.442695, %v1129_v47  ;;  %1098 = vmatmul.bf16.gmra.mxu2 %v3907_v43  ;;  %v1284_v54 = vadd.f32 %v4271_v29, %v1283_v48  ;;  %v2415_v48 = vld [vmem:[%s6971_s5 + $0x30] sm:$0xff] }
  0xde   : > { %v4275_v55 = vpop.eup %4274  ;;  %v4969_v56 = vadd.f32 1.0, %v4273_v50  ;;  %2438 = vmatpush.msrb.mxu0 %v2415_v48 }
  0xdf   : > { %4276 = vpow2.f32 %v1166_v51  ;;  %v1288_v58 = vsel %vm1287_vm10, %v4271_v29, %v1284_v54  ;;  %v1295_v59 = vmul.f32 %v4275_v55, %v4960_v30  ;;  %vm1300_vm12 = vweird.f32 %v4275_v55 }
  0xe0   : > { %4278 = vrcp.f32 %v4969_v56  ;;  %v1059_v60 = vpop.f32.mrf.mxu2  ;;  %v1293_v61 = vsel %vm1290_vm11, %v1292_v57, %v1288_v58  ;;  %v883_v0 = vpop.f32.mrf.mxu0  ;;  %vm1301_vm14 = vmor %vm1299_vm13, %vm1300_vm12  ;;  %v3919_v30 = vor.u32 %v4188_v19, %v3918_v15  ;;  %v1319_v33 = vand.u32 2147483648, %v4969_v56 }
  0xe1   : > { %v1060_v63 = vadd.f32 %v1059_v60, %v971_v53  ;;  %1742 = vmatmul.f32.gmra.mxu3 %v1293_v61  ;;  %v972_v1 = vpop.f32.mrf.mxu1  ;;  %v1296_v2 = vsub.f32 1.0, %v1295_v59  ;;  %v884_v6 = vadd.f32 %v4899_v52, %v883_v0  ;;  %v1317_v36 = vand.u32 2147483647, %v4969_v56  ;;  %v3922_v59 = vld [vmem:[%s4782_s17 + $0x138] sm:$0xf] }
  0xe2   : > { %vm1313_vm1 = vweird.f32 %v4969_v56  ;;  %v1320_v43 = vor.u32 1.1754944e-38, %v1319_v33  ;;  %v4190_v60 = vld [vmem:[%s4782_s17 + $0x140] sm:$0xf0]  ;;  %v4189_v61 = vld [vmem:[%s4782_s17 + $0x13c] sm:$0xf] }
  0xe3   : > { %v1130_v5 = vsub.f32 0.0, %v1060_v63  ;;  %v1297_v7 = vmul.f32 %v4275_v55, %v1296_v2  ;;  %v973_v20 = vadd.f32 %v972_v1, %v884_v6  ;;  %vm1318_vm3 = vcmp.eq.f32.partialorder %v1317_v36, 8.507059e+37  ;;  %v3924_v1 = vld [vmem:[%s4782_s17 + $0x144] sm:$0xf0]  ;;  %v3930_v2 = vld [vmem:[%s4782_s17 + $0x140] sm:$0xf] }
  0xe4   : > { %v4191_v6 = vld [vmem:[%s4782_s17 + $0x148] sm:$0xf0] }
  0xe5   : > { %v4277_v11 = vpop.eup %4276  ;;  %v1168_v12 = vmul.f32 1.442695, %v1130_v5  ;;  %v1298_v13 = vadd.f32 %v4275_v55, %v1297_v7 }
  0xe6   : > { %v4279_v16 = vpop.eup %4278  ;;  %v4985_v17 = vadd.f32 1.0, %v4277_v11 }
  0xe7   : > { %4280 = vpow2.f32 %v1168_v12  ;;  %v1302_v21 = vsel %vm1301_vm14, %v4275_v55, %v1298_v13  ;;  %v1309_v22 = vmul.f32 %v4279_v16, %v4969_v56  ;;  %vm1314_vm0 = vweird.f32 %v4279_v16 }
  0xe8   : > { %4282 = vrcp.f32 %v4985_v17  ;;  %v1061_v23 = vpop.f32.mrf.mxu2  ;;  %v1307_v24 = vsel %vm1304_vm15, %v1306_v18, %v1302_v21  ;;  %v886_v28 = vpop.f32.mrf.mxu0  ;;  %vm1315_vm2 = vmor %vm1313_vm1, %vm1314_vm0  ;;  %v1331_v54 = vand.u32 2147483647, %v4985_v17  ;;  %v1333_v55 = vand.u32 2147483648, %v4985_v17 }
  0xe9   : > { %v1062_v27 = vadd.f32 %v1061_v23, %v973_v20  ;;  %1745 = vmatmul.f32.gmra.mxu3 %v1307_v24  ;;  %v975_v29 = vpop.f32.mrf.mxu1  ;;  %v1310_v31 = vsub.f32 1.0, %v1309_v22  ;;  %v887_v32 = vadd.f32 %v4899_v52, %v886_v28  ;;  %vm1327_vm5 = vweird.f32 %v4985_v17 }
  0xea   : > { %vm1332_vm7 = vcmp.eq.f32.partialorder %v1331_v54, 8.507059e+37  ;;  %v1334_v5 = vor.u32 1.1754944e-38, %v1333_v55  ;;  %v3923_v12 = vor.u32 %v4190_v60, %v3922_v59  ;;  %v3927_v13 = vor.u32 %v4189_v61, %v3924_v1  ;;  %v4243_v1 = vld [vmem:[%s6973_s7 + $0xac] sm:$0xf] }
  0xeb   : > { %v1131_v34 = vsub.f32 0.0, %v1062_v27  ;;  %v1311_v35 = vmul.f32 %v4279_v16, %v1310_v31  ;;  %925 = vmatmul.bf16.gmra.mxu0 %v3911_v25  ;;  %v976_v39 = vadd.f32 %v975_v29, %v887_v32 }
  0xec   : > { %1014 = vmatmul.bf16.gmra.mxu1 %v3915_v26 }
  0xed   : > { %v4281_v37 = vpop.eup %4280  ;;  %v1170_v38 = vmul.f32 1.442695, %v1131_v34  ;;  %1103 = vmatmul.bf16.gmra.mxu2 %v3919_v30  ;;  %v1312_v40 = vadd.f32 %v4279_v16, %v1311_v35  ;;  %v2414_v35 = vld [vmem:[%s6971_s5 + $0x28] sm:$0xff] }
  0xee   : > { %v4283_v41 = vpop.eup %4282  ;;  %v4994_v42 = vadd.f32 1.0, %v4281_v37  ;;  %2439 = vmatpush.msrb.mxu0 %v2414_v35  ;;  %v2413_v35 = vld [vmem:[%s6971_s5 + $0x20] sm:$0xff] }
  0xef   : > { %4284 = vpow2.f32 %v1170_v38  ;;  %v1316_v44 = vsel %vm1315_vm2, %v4279_v16, %v1312_v40  ;;  %v1323_v45 = vmul.f32 %v4283_v41, %v4985_v17  ;;  %vm1328_vm4 = vweird.f32 %v4283_v41 }
  0xf0   : > { %4286 = vrcp.f32 %v4994_v42  ;;  %v1064_v46 = vpop.f32.mrf.mxu2  ;;  %v1321_v47 = vsel %vm1318_vm3, %v1320_v43, %v1316_v44  ;;  %v888_v50 = vpop.f32.mrf.mxu0  ;;  %vm1329_vm6 = vmor %vm1327_vm5, %vm1328_vm4  ;;  %v3931_v17 = vor.u32 %v4191_v6, %v3930_v2  ;;  %v1347_v20 = vand.u32 2147483648, %v4994_v42  ;;  %v4140_v2 = vld [vmem:[%s6973_s7 + $0xb4] sm:$0xf0]  ;;  %2440 = vmatpush.msrb.mxu0 %v2413_v35 }
  0xf1   : > { %v1065_v49 = vadd.f32 %v1064_v46, %v976_v39  ;;  %1748 = vmatmul.f32.gmra.mxu3 %v1321_v47  ;;  %v977_v51 = vpop.f32.mrf.mxu1  ;;  %v1324_v53 = vsub.f32 1.0, %v1323_v45  ;;  %v889_v57 = vadd.f32 %v4899_v52, %v888_v50  ;;  %v1345_v23 = vand.u32 2147483647, %v4994_v42  ;;  %v3934_v45 = vld [vmem:[%s4782_s17 + $0x150] sm:$0xf] }
  0xf2   : > { %vm1341_vm9 = vweird.f32 %v4994_v42  ;;  %v1348_v30 = vor.u32 1.1754944e-38, %v1347_v20  ;;  %v4193_v46 = vld [vmem:[%s4782_s17 + $0x158] sm:$0xf0]  ;;  %v4192_v47 = vld [vmem:[%s4782_s17 + $0x154] sm:$0xf] }
  0xf3   : > { %v1132_v56 = vsub.f32 0.0, %v1065_v49  ;;  %v1325_v58 = vmul.f32 %v4283_v41, %v1324_v53  ;;  %v978_v7 = vadd.f32 %v977_v51, %v889_v57  ;;  %vm1346_vm11 = vcmp.eq.f32.partialorder %v1345_v23, 8.507059e+37  ;;  %v3936_v51 = vld [vmem:[%s4782_s17 + $0x15c] sm:$0xf0]  ;;  %v3942_v53 = vld [vmem:[%s4782_s17 + $0x158] sm:$0xf] }
  0xf4   : > { %v4194_v57 = vld [vmem:[%s4782_s17 + $0x160] sm:$0xf0] }
  0xf5   : > { %v4285_v62 = vpop.eup %4284  ;;  %v1172_v63 = vmul.f32 1.442695, %v1132_v56  ;;  %v1326_v0 = vadd.f32 %v4283_v41, %v1325_v58  ;;  %v3943_v6 = vor.u32 %v4194_v57, %v3942_v53  ;;  %v4197_v53 = vld [vmem:[%s4782_s17 + $0x178] sm:$0xf0] }
  0xf6   : > { %v4287_v3 = vpop.eup %4286  ;;  %v5010_v4 = vadd.f32 1.0, %v4285_v62 }
  0xf7   : > { %4288 = vpow2.f32 %v1172_v63  ;;  %v1330_v8 = vsel %vm1329_vm6, %v4283_v41, %v1326_v0  ;;  %v1337_v9 = vmul.f32 %v4287_v3, %v4994_v42  ;;  %vm1342_vm8 = vweird.f32 %v4287_v3 }
  0xf8   : > { %4290 = vrcp.f32 %v5010_v4  ;;  %v1066_v10 = vpop.f32.mrf.mxu2  ;;  %v1335_v11 = vsel %vm1332_vm7, %v1334_v5, %v1330_v8  ;;  %v891_v15 = vpop.f32.mrf.mxu0  ;;  %vm1343_vm10 = vmor %vm1341_vm9, %vm1342_vm8  ;;  %v1359_v40 = vand.u32 2147483647, %v5010_v4  ;;  %v1361_v41 = vand.u32 2147483648, %v5010_v4 }
  0xf9   : > { %v1067_v14 = vadd.f32 %v1066_v10, %v978_v7  ;;  %1751 = vmatmul.f32.gmra.mxu3 %v1335_v11  ;;  %v980_v16 = vpop.f32.mrf.mxu1  ;;  %v1338_v18 = vsub.f32 1.0, %v1337_v9  ;;  %v892_v19 = vadd.f32 %v4899_v52, %v891_v15  ;;  %vm1355_vm13 = vweird.f32 %v5010_v4  ;;  %v4146_v9 = vld [vmem:[%s6973_s7 + $0xb0] sm:$0xf]  ;;  %v4245_v10 = vld [vmem:[%s6973_s7 + $0xb8] sm:$0xf0] }
  0xfa   : > { %vm1360_vm15 = vcmp.eq.f32.partialorder %v1359_v40, 8.507059e+37  ;;  %v1362_v56 = vor.u32 1.1754944e-38, %v1361_v41  ;;  %v3935_v63 = vor.u32 %v4193_v46, %v3934_v45  ;;  %v3939_v0 = vor.u32 %v4192_v47, %v3936_v51  ;;  %v3946_v41 = vld [vmem:[%s4782_s17 + $0x168] sm:$0xf]  ;;  %v3948_v47 = vld [vmem:[%s4782_s17 + $0x174] sm:$0xf0] }
  0xfb   : > { %v1133_v21 = vsub.f32 0.0, %v1067_v14  ;;  %v1339_v22 = vmul.f32 %v4287_v3, %v1338_v18  ;;  %930 = vmatmul.bf16.gmra.mxu0 %v3923_v12  ;;  %v981_v26 = vadd.f32 %v980_v16, %v892_v19  ;;  %v4143_v8 = vor.u32 %v4243_v1, %v4140_v2 }
  0xfc   : > { %1019 = vmatmul.bf16.gmra.mxu1 %v3927_v13  ;;  %v4147_v13 = vor.u32 %v4245_v10, %v4146_v9 }
  0xfd   : > { %v4289_v24 = vpop.eup %4288  ;;  %v1174_v25 = vmul.f32 1.442695, %v1133_v21  ;;  %1108 = vmatmul.bf16.gmra.mxu2 %v3931_v17  ;;  %v1340_v27 = vadd.f32 %v4287_v3, %v1339_v22 }
  0xfe   : > { %v4291_v28 = vpop.eup %4290  ;;  %v5019_v29 = vadd.f32 1.0, %v4289_v24  ;;  %3391 = vmatpush.bf16.msrb.mxu2 %v4143_v8  ;;  %3480 = vmatpush.bf16.msrb.mxu3 %v4147_v13 }
  0xff   : > { %4292 = vpow2.f32 %v1174_v25  ;;  %v1344_v31 = vsel %vm1343_vm10, %v4287_v3, %v1340_v27  ;;  %v1351_v32 = vmul.f32 %v4291_v28, %v5010_v4  ;;  %vm1356_vm12 = vweird.f32 %v4291_v28 }
 0x100   : > { %4294 = vrcp.f32 %v5019_v29  ;;  %v1069_v33 = vpop.f32.mrf.mxu2  ;;  %v1349_v34 = vsel %vm1346_vm11, %v1348_v30, %v1344_v31  ;;  %v893_v37 = vpop.f32.mrf.mxu0  ;;  %vm1357_vm14 = vmor %vm1355_vm13, %vm1356_vm12  ;;  %v1375_v12 = vand.u32 2147483648, %v5019_v29  ;;  %v1373_v16 = vand.u32 2147483647, %v5019_v29 }
 0x101   : > { %v1070_v36 = vadd.f32 %v1069_v33, %v981_v26  ;;  %1754 = vmatmul.f32.gmra.mxu3 %v1349_v34  ;;  %v982_v38 = vpop.f32.mrf.mxu1  ;;  %v1352_v39 = vsub.f32 1.0, %v1351_v32  ;;  %v894_v43 = vadd.f32 %v4899_v52, %v893_v37  ;;  %vm1369_vm1 = vweird.f32 %v5019_v29 }
 0x102   : > { %v1376_v23 = vor.u32 1.1754944e-38, %v1375_v12  ;;  %vm1374_vm3 = vcmp.eq.f32.partialorder %v1373_v16, 8.507059e+37 }
 0x103   : > { %v1134_v42 = vsub.f32 0.0, %v1070_v36  ;;  %v1353_v44 = vmul.f32 %v4291_v28, %v1352_v39  ;;  %v983_v58 = vadd.f32 %v982_v38, %v894_v43  ;;  %v4195_v43 = vld [vmem:[%s4782_s17 + $0x16c] sm:$0xf] }
 0x105   : > { %v4293_v48 = vpop.eup %4292  ;;  %v1176_v49 = vmul.f32 1.442695, %v1134_v42  ;;  %v1354_v50 = vadd.f32 %v4291_v28, %v1353_v44  ;;  %v4196_v42 = vld [vmem:[%s4782_s17 + $0x170] sm:$0xf0] }
 0x106   : > { %v4295_v54 = vpop.eup %4294  ;;  %v5035_v55 = vadd.f32 1.0, %v4293_v48  ;;  %v3954_v48 = vld [vmem:[%s4782_s17 + $0x170] sm:$0xf] }
 0x107   : > { %4296 = vpow2.f32 %v1176_v49  ;;  %v1358_v59 = vsel %vm1357_vm14, %v4291_v28, %v1354_v50  ;;  %v1365_v60 = vmul.f32 %v4295_v54, %v5019_v29  ;;  %vm1370_vm0 = vweird.f32 %v4295_v54  ;;  %v4138_v28 = vld [vmem:[%s6973_s7 + $0xa8] sm:$0xf]  ;;  %v4244_v29 = vld [vmem:[%s6973_s7 + $0xb0] sm:$0xf0] }
 0x108   : > { %4298 = vrcp.f32 %v5035_v55  ;;  %v1071_v61 = vpop.f32.mrf.mxu2  ;;  %v1363_v62 = vsel %vm1360_vm15, %v1362_v56, %v1358_v59  ;;  %v896_v4 = vpop.f32.mrf.mxu0  ;;  %vm1371_vm2 = vmor %vm1369_vm1, %vm1370_vm0  ;;  %v4139_v34 = vor.u32 %v4244_v29, %v4138_v28  ;;  %v1387_v36 = vand.u32 2147483647, %v5035_v55 }
 0x109   : > { %v1072_v3 = vadd.f32 %v1071_v61, %v983_v58  ;;  %1757 = vmatmul.f32.gmra.mxu3 %v1363_v62  ;;  %v985_v5 = vpop.f32.mrf.mxu1  ;;  %v1366_v7 = vsub.f32 1.0, %v1365_v60  ;;  %v897_v11 = vadd.f32 %v4899_v52, %v896_v4  ;;  %v1389_v37 = vand.u32 2147483648, %v5035_v55 }
 0x10a   : > { %3302 = vmatpush.bf16.msrb.mxu1 %v4139_v34  ;;  %vm1383_vm5 = vweird.f32 %v5035_v55  ;;  %vm1388_vm7 = vcmp.eq.f32.partialorder %v1387_v36, 8.507059e+37  ;;  %v3947_v60 = vor.u32 %v4196_v42, %v3946_v41 }
 0x10b   : > { %v1135_v14 = vsub.f32 0.0, %v1072_v3  ;;  %v1367_v15 = vmul.f32 %v4295_v54, %v1366_v7  ;;  %935 = vmatmul.bf16.gmra.mxu0 %v3935_v63  ;;  %v986_v19 = vadd.f32 %v985_v5, %v897_v11  ;;  %v1390_v51 = vor.u32 1.1754944e-38, %v1389_v37 }
 0x10c   : > { %1024 = vmatmul.bf16.gmra.mxu1 %v3939_v0  ;;  %v3955_v0 = vor.u32 %v4197_v53, %v3954_v48 }
 0x10d   : > { %v4297_v17 = vpop.eup %4296  ;;  %v1178_v18 = vmul.f32 1.442695, %v1135_v14  ;;  %1113 = vmatmul.bf16.gmra.mxu2 %v3943_v6  ;;  %v1368_v20 = vadd.f32 %v4295_v54, %v1367_v15 }
 0x10e   : > { %v4299_v21 = vpop.eup %4298  ;;  %v5056_v22 = vadd.f32 1.0, %v4297_v17 }
 0x10f   : > { %4300 = vpow2.f32 %v1178_v18  ;;  %v1372_v24 = vsel %vm1371_vm2, %v4295_v54, %v1368_v20  ;;  %v1379_v25 = vmul.f32 %v4299_v21, %v5035_v55  ;;  %vm1384_vm4 = vweird.f32 %v4299_v21  ;;  %v2412_v18 = vld [vmem:[%s6971_s5 + $0x18] sm:$0xff] }
 0x110   : > { %4302 = vrcp.f32 %v5056_v22  ;;  %v1074_v26 = vpop.f32.mrf.mxu2  ;;  %v1377_v27 = vsel %vm1374_vm3, %v1376_v23, %v1372_v24  ;;  %v898_v31 = vpop.f32.mrf.mxu0  ;;  %vm1385_vm6 = vmor %vm1383_vm5, %vm1384_vm4  ;;  %v3951_v55 = vor.u32 %v4195_v43, %v3948_v47  ;;  %v1403_v3 = vand.u32 2147483648, %v5056_v22  ;;  %2441 = vmatpush.msrb.mxu0 %v2412_v18  ;;  %v4242_v47 = vld [vmem:[%s6973_s7 + $0xa0] sm:$0xf0] }
 0x111   : > { %v1075_v30 = vadd.f32 %v1074_v26, %v986_v19  ;;  %1760 = vmatmul.f32.gmra.mxu3 %v1377_v27  ;;  %v987_v32 = vpop.f32.mrf.mxu1  ;;  %v1380_v33 = vsub.f32 1.0, %v1379_v25  ;;  %v899_v39 = vadd.f32 %v4899_v52, %v898_v31  ;;  %v1401_v6 = vand.u32 2147483647, %v5056_v22 }
 0x112   : > { %vm1397_vm9 = vweird.f32 %v5056_v22  ;;  %v1404_v13 = vor.u32 1.1754944e-38, %v1403_v3 }
 0x113   : > { %v1136_v38 = vsub.f32 0.0, %v1075_v30  ;;  %v1381_v40 = vmul.f32 %v4299_v21, %v1380_v33  ;;  %v988_v54 = vadd.f32 %v987_v32, %v899_v39  ;;  %vm1402_vm11 = vcmp.eq.f32.partialorder %v1401_v6, 8.507059e+37  ;;  %v4240_v39 = vld [vmem:[%s6973_s7 + $0x94] sm:$0xf] }
 0x115   : > { %v4301_v44 = vpop.eup %4300  ;;  %v1180_v45 = vmul.f32 1.442695, %v1136_v38  ;;  %v1382_v46 = vadd.f32 %v4299_v21, %v1381_v40  ;;  %v4128_v40 = vld [vmem:[%s6973_s7 + $0x9c] sm:$0xf0] }
 0x116   : > { %v4303_v49 = vpop.eup %4302  ;;  %v5078_v50 = vadd.f32 1.0, %v4301_v44 }
 0x117   : > { %4304 = vpow2.f32 %v1180_v45  ;;  %v1386_v56 = vsel %vm1385_vm6, %v4299_v21, %v1382_v46  ;;  %v1393_v57 = vmul.f32 %v4303_v49, %v5056_v22  ;;  %vm1398_vm8 = vweird.f32 %v4303_v49  ;;  %v4134_v46 = vld [vmem:[%s6973_s7 + $0x98] sm:$0xf] }
 0x118   : > { %4306 = vrcp.f32 %v5078_v50  ;;  %v1076_v58 = vpop.f32.mrf.mxu2  ;;  %v1391_v59 = vsel %vm1388_vm7, %v1390_v51, %v1386_v56  ;;  %v901_v62 = vpop.f32.mrf.mxu0  ;;  %vm1399_vm10 = vmor %vm1397_vm9, %vm1398_vm8  ;;  %v1415_v23 = vand.u32 2147483647, %v5078_v50  ;;  %v1417_v24 = vand.u32 2147483648, %v5078_v50 }
 0x119   : > { %v1077_v61 = vadd.f32 %v1076_v58, %v988_v54  ;;  %1763 = vmatmul.f32.gmra.mxu3 %v1391_v59  ;;  %v990_v63 = vpop.f32.mrf.mxu1  ;;  %v1394_v1 = vsub.f32 1.0, %v1393_v57  ;;  %v902_v2 = vadd.f32 %v4899_v52, %v901_v62  ;;  %vm1411_vm13 = vweird.f32 %v5078_v50 }
 0x11a   : > { %vm1416_vm15 = vcmp.eq.f32.partialorder %v1415_v23, 8.507059e+37  ;;  %v1418_v33 = vor.u32 1.1754944e-38, %v1417_v24  ;;  %v4131_v45 = vor.u32 %v4240_v39, %v4128_v40 }
 0x11b   : > { %v1137_v4 = vsub.f32 0.0, %v1077_v61  ;;  %v1395_v5 = vmul.f32 %v4303_v49, %v1394_v1  ;;  %940 = vmatmul.bf16.gmra.mxu0 %v3947_v60  ;;  %v991_v9 = vadd.f32 %v990_v63, %v902_v2  ;;  %v4126_v1 = vld [vmem:[%s6973_s7 + $0x90] sm:$0xf]  ;;  %v4241_v2 = vld [vmem:[%s6973_s7 + $0x98] sm:$0xf0] }
 0x11c   : > { %1029 = vmatmul.bf16.gmra.mxu1 %v3951_v55  ;;  %3392 = vmatpush.bf16.msrb.mxu2 %v4131_v45 }
 0x11d   : > { %v4305_v7 = vpop.eup %4304  ;;  %v1182_v8 = vmul.f32 1.442695, %v1137_v4  ;;  %1118 = vmatmul.bf16.gmra.mxu2 %v3955_v0  ;;  %v1396_v10 = vadd.f32 %v4303_v49, %v1395_v5 }
 0x11e   : > { %v4307_v11 = vpop.eup %4306  ;;  %v5087_v12 = vadd.f32 1.0, %v4305_v7  ;;  %v4127_v7 = vor.u32 %v4241_v2, %v4126_v1 }
 0x11f   : > { %4308 = vpow2.f32 %v1182_v8  ;;  %v1400_v14 = vsel %vm1399_vm10, %v4303_v49, %v1396_v10  ;;  %v1407_v15 = vmul.f32 %v4307_v11, %v5078_v50  ;;  %vm1412_vm12 = vweird.f32 %v4307_v11  ;;  %v2411_v8 = vld [vmem:[%s6971_s5 + $0x10] sm:$0xff] }
 0x120   : > { %4310 = vrcp.f32 %v5087_v12  ;;  %v1079_v16 = vpop.f32.mrf.mxu2  ;;  %v1405_v17 = vsel %vm1402_vm11, %v1404_v13, %v1400_v14  ;;  %v903_v20 = vpop.f32.mrf.mxu0  ;;  %vm1413_vm14 = vmor %vm1411_vm13, %vm1412_vm12  ;;  %v1431_v49 = vand.u32 2147483648, %v5087_v12  ;;  %v4135_v50 = vor.u32 %v4242_v47, %v4134_v46  ;;  %2442 = vmatpush.msrb.mxu0 %v2411_v8  ;;  %3303 = vmatpush.bf16.msrb.mxu1 %v4127_v7 }
 0x121   : > { %v1080_v19 = vadd.f32 %v1079_v16, %v991_v9  ;;  %1766 = vmatmul.f32.gmra.mxu3 %v1405_v17  ;;  %v992_v21 = vpop.f32.mrf.mxu1  ;;  %v1408_v22 = vsub.f32 1.0, %v1407_v15  ;;  %v904_v26 = vadd.f32 %v4899_v52, %v903_v20  ;;  %v1429_v54 = vand.u32 2147483647, %v5087_v12 }
 0x122   : > { %3481 = vmatpush.bf16.msrb.mxu3 %v4135_v50  ;;  %vm1425_vm1 = vweird.f32 %v5087_v12 }
 0x123   : > { %v1138_v25 = vsub.f32 0.0, %v1080_v19  ;;  %v1409_v27 = vmul.f32 %v4307_v11, %v1408_v22  ;;  %v993_v34 = vadd.f32 %v992_v21, %v904_v26  ;;  %vm1430_vm3 = vcmp.eq.f32.partialorder %v1429_v54, 8.507059e+37 }
 0x125   : > { %v4309_v28 = vpop.eup %4308  ;;  %v1184_v29 = vmul.f32 1.442695, %v1138_v25  ;;  %v1410_v30 = vadd.f32 %v4307_v11, %v1409_v27 }
 0x126   : > { %v4311_v31 = vpop.eup %4310  ;;  %v5098_v32 = vadd.f32 1.0, %v4309_v28 }
 0x127   : > { %4312 = vpow2.f32 %v1184_v29  ;;  %v1414_v35 = vsel %vm1413_vm14, %v4307_v11, %v1410_v30  ;;  %v1421_v36 = vmul.f32 %v4311_v31, %v5087_v12  ;;  %vm1426_vm0 = vweird.f32 %v4311_v31  ;;  %v5136_v12 = vld [vmem:[%s6968_s2] ss:$0 sm:$0xff] }
 0x128   : > { %4314 = vrcp.f32 %v5098_v32  ;;  %v1081_v37 = vpop.f32.mrf.mxu2  ;;  %v1419_v38 = vsel %vm1416_vm15, %v1418_v33, %v1414_v35  ;;  %v906_v42 = vpop.f32.mrf.mxu0  ;;  %vm1427_vm2 = vmor %vm1425_vm1, %vm1426_vm0  ;;  %v1443_v9 = vand.u32 2147483647, %v5098_v32  ;;  %v1445_v10 = vand.u32 2147483648, %v5098_v32 }
 0x129   : > { %v1082_v41 = vadd.f32 %v1081_v37, %v993_v34  ;;  %1769 = vmatmul.f32.gmra.mxu3 %v1419_v38  ;;  %v995_v43 = vpop.f32.mrf.mxu1  ;;  %v1422_v44 = vsub.f32 1.0, %v1421_v36  ;;  %v907_v48 = vadd.f32 %v4899_v52, %v906_v42  ;;  %v1432_v52 = vor.u32 1.1754944e-38, %v1431_v49 }
 0x12a   : > { %vm1439_vm5 = vweird.f32 %v5098_v32  ;;  %vm1444_vm7 = vcmp.eq.f32.partialorder %v1443_v9, 8.507059e+37  ;;  %v1446_v20 = vor.u32 1.1754944e-38, %v1445_v10 }
 0x12b   : > { %v1139_v51 = vsub.f32 0.0, %v1082_v41  ;;  %v1423_v53 = vmul.f32 %v4311_v31, %v1422_v44  ;;  %v996_v58 = vadd.f32 %v995_v43, %v907_v48 }
 0x12d   : > { %v4313_v56 = vpop.eup %4312  ;;  %v1186_v57 = vmul.f32 1.442695, %v1139_v51  ;;  %v1424_v59 = vadd.f32 %v4311_v31, %v1423_v53 }
 0x12e   : > { %v4315_v60 = vpop.eup %4314  ;;  %v5118_v55 = vadd.f32 1.0, %v4313_v56 }
 0x12f   : > { %4316 = vpow2.f32 %v1186_v57  ;;  %v1428_v61 = vsel %vm1427_vm2, %v4311_v31, %v1424_v59  ;;  %v1435_v62 = vmul.f32 %v4315_v60, %v5098_v32  ;;  %vm1440_vm4 = vweird.f32 %v4315_v60  ;;  %v2410_v57 = vld [vmem:[%s6971_s5 + $0x8] sm:$0xff] }
 0x130   : > { %4318 = vrcp.f32 %v5118_v55  ;;  %v1084_v63 = vpop.f32.mrf.mxu2  ;;  %v1433_v0 = vsel %vm1430_vm3, %v1432_v52, %v1428_v61  ;;  %v908_v4 = vpop.f32.mrf.mxu0  ;;  %vm1441_vm6 = vmor %vm1439_vm5, %vm1440_vm4  ;;  %v1459_v31 = vand.u32 2147483648, %v5118_v55  ;;  %v1457_v34 = vand.u32 2147483647, %v5118_v55  ;;  %2443 = vmatpush.msrb.mxu0 %v2410_v57 }
 0x131   : > { %v1085_v3 = vadd.f32 %v1084_v63, %v996_v58  ;;  %1772 = vmatmul.f32.gmra.mxu3 %v1433_v0  ;;  %v997_v5 = vpop.f32.mrf.mxu1  ;;  %v1436_v6 = vsub.f32 1.0, %v1435_v62  ;;  %v909_v13 = vadd.f32 %v5136_v12, %v908_v4  ;;  %vm1453_vm9 = vweird.f32 %v5118_v55 }
 0x132   : > { %v1460_v41 = vor.u32 1.1754944e-38, %v1459_v31  ;;  %vm1458_vm11 = vcmp.eq.f32.partialorder %v1457_v34, 8.507059e+37  ;;  %v4238_v31 = vld [vmem:[%s6973_s7 + $0x80] sm:$0xf0] }
 0x133   : > { %v1140_v11 = vsub.f32 0.0, %v1085_v3  ;;  %v1437_v14 = vmul.f32 %v4315_v60, %v1436_v6  ;;  %v998_v21 = vadd.f32 %v997_v5, %v909_v13  ;;  %v4237_v13 = vld [vmem:[%s6973_s7 + $0x7c] sm:$0xf] }
 0x135   : > { %v4317_v15 = vpop.eup %4316  ;;  %v1188_v16 = vmul.f32 1.442695, %v1140_v11  ;;  %v1438_v17 = vadd.f32 %v4315_v60, %v1437_v14  ;;  %v4116_v14 = vld [vmem:[%s6973_s7 + $0x84] sm:$0xf0] }
 0x136   : > { %v4319_v18 = vpop.eup %4318  ;;  %v1235_v19 = vadd.f32 1.0, %v4317_v15  ;;  %v4122_v15 = vld [vmem:[%s6973_s7 + $0x80] sm:$0xf] }
 0x137   : > { %4320 = vpow2.f32 %v1188_v16  ;;  %v1442_v22 = vsel %vm1441_vm6, %v4315_v60, %v1438_v17  ;;  %v1449_v23 = vmul.f32 %v4319_v18, %v5118_v55  ;;  %vm1454_vm8 = vweird.f32 %v4319_v18 }
 0x138   : > { %4322 = vrcp.f32 %v1235_v19  ;;  %v1086_v24 = vpop.f32.mrf.mxu2  ;;  %v1447_v25 = vsel %vm1444_vm7, %v1446_v20, %v1442_v22  ;;  %v911_v27 = vpop.f32.mrf.mxu0  ;;  %vm1455_vm10 = vmor %vm1453_vm9, %vm1454_vm8  ;;  %v1471_v50 = vand.u32 2147483647, %v1235_v19  ;;  %v1473_v51 = vand.u32 2147483648, %v1235_v19 }
 0x139   : > { %v1087_v26 = vadd.f32 %v1086_v24, %v998_v21  ;;  %1775 = vmatmul.f32.gmra.mxu3 %v1447_v25  ;;  %v1000_v28 = vpop.f32.mrf.mxu1  ;;  %v1450_v29 = vsub.f32 1.0, %v1449_v23  ;;  %v912_v30 = vadd.f32 %v5136_v12, %v911_v27  ;;  %vm1467_vm13 = vweird.f32 %v1235_v19  ;;  %v4239_v21 = vld [vmem:[%s6973_s7 + $0x88] sm:$0xf0] }
 0x13a   : > { %vm1472_vm15 = vcmp.eq.f32.partialorder %v1471_v50, 8.507059e+37  ;;  %v1474_v61 = vor.u32 1.1754944e-38, %v1473_v51  ;;  %v4119_v20 = vor.u32 %v4237_v13, %v4116_v14  ;;  %v4123_v25 = vor.u32 %v4239_v21, %v4122_v15 }
 0x13b   : > { %v1141_v32 = vsub.f32 0.0, %v1087_v26  ;;  %v1451_v33 = vmul.f32 %v4319_v18, %v1450_v29  ;;  %v1001_v37 = vadd.f32 %v1000_v28, %v912_v30  ;;  %v4114_v30 = vld [vmem:[%s6973_s7 + $0x78] sm:$0xf] }
 0x13c   : > { %3393 = vmatpush.bf16.msrb.mxu2 %v4119_v20  ;;  %3482 = vmatpush.bf16.msrb.mxu3 %v4123_v25 }
 0x13d   : > { %v4321_v35 = vpop.eup %4320  ;;  %v1190_v36 = vmul.f32 1.442695, %v1141_v32  ;;  %v1452_v38 = vadd.f32 %v4319_v18, %v1451_v33 }
 0x13e   : > { %v4323_v39 = vpop.eup %4322  ;;  %v5145_v40 = vadd.f32 1.0, %v4321_v35  ;;  %v5185_v35 = vld [vmem:[%s6970_s4] ss:$0 sm:$0xff] }
 0x13f   : > { %4324 = vpow2.f32 %v1190_v36  ;;  %v1456_v42 = vsel %vm1455_vm10, %v4319_v18, %v1452_v38  ;;  %v1463_v43 = vmul.f32 %v4323_v39, %v1235_v19  ;;  %vm1468_vm12 = vweird.f32 %v4323_v39 }
 0x140   : > { %4326 = vrcp.f32 %v5145_v40  ;;  %v1089_v44 = vpop.f32.mrf.mxu2  ;;  %v1461_v45 = vsel %vm1458_vm11, %v1460_v41, %v1456_v42  ;;  %v913_v47 = vpop.f32.mrf.mxu0  ;;  %vm1469_vm14 = vmor %vm1467_vm13, %vm1468_vm12  ;;  %v1487_v8 = vand.u32 2147483648, %v5145_v40  ;;  %v1485_v11 = vand.u32 2147483647, %v5145_v40 }
 0x141   : > { %v1090_v46 = vadd.f32 %v1089_v44, %v1001_v37  ;;  %1778 = vmatmul.f32.gmra.mxu3 %v1461_v45  ;;  %v1002_v48 = vpop.f32.mrf.mxu1  ;;  %v1464_v49 = vsub.f32 1.0, %v1463_v43  ;;  %v914_v54 = vadd.f32 %v5136_v12, %v913_v47  ;;  %vm1481_vm1 = vweird.f32 %v5145_v40  ;;  %v2409_v44 = vld [vmem:[%s6971_s5] sm:$0xff] }
 0x142   : > { %v1488_v24 = vor.u32 1.1754944e-38, %v1487_v8  ;;  %vm1486_vm3 = vcmp.eq.f32.partialorder %v1485_v11, 8.507059e+37  ;;  %v4115_v37 = vor.u32 %v4238_v31, %v4114_v30  ;;  %2444 = vmatpush.msrb.mxu0 %v2409_v44 }
 0x143   : > { %v1142_v53 = vsub.f32 0.0, %v1090_v46  ;;  %v1465_v56 = vmul.f32 %v4323_v39, %v1464_v49  ;;  %v1003_v62 = vadd.f32 %v1002_v48, %v914_v54 }
 0x144   : > { %3304 = vmatpush.bf16.msrb.mxu1 %v4115_v37 }
 0x145   : > { %v4325_v58 = vpop.eup %4324  ;;  %v1192_v59 = vmul.f32 1.442695, %v1142_v53  ;;  %v1466_v60 = vadd.f32 %v4323_v39, %v1465_v56 }
 0x146   : > { %v4327_v55 = vpop.eup %4326  ;;  %v5152_v52 = vadd.f32 1.0, %v4325_v58 }
 0x147   : > { %4328 = vpow2.f32 %v1192_v59  ;;  %v1470_v63 = vsel %vm1469_vm14, %v4323_v39, %v1466_v60  ;;  %v1477_v0 = vmul.f32 %v4327_v55, %v5145_v40  ;;  %vm1482_vm0 = vweird.f32 %v4327_v55 }
 0x148   : > { %4330 = vrcp.f32 %v5152_v52  ;;  %v1091_v1 = vpop.f32.mrf.mxu2  ;;  %v1475_v2 = vsel %vm1472_vm15, %v1474_v61, %v1470_v63  ;;  %v916_v4 = vpop.f32.mrf.mxu0  ;;  %vm1483_vm2 = vmor %vm1481_vm1, %vm1482_vm0  ;;  %v1499_v39 = vand.u32 2147483647, %v5152_v52  ;;  %v1501_v40 = vand.u32 2147483648, %v5152_v52 }
 0x149   : > { %v1092_v3 = vadd.f32 %v1091_v1, %v1003_v62  ;;  %1781 = vmatmul.f32.gmra.mxu3 %v1475_v2  ;;  %v1005_v5 = vpop.f32.mrf.mxu1  ;;  %v1478_v6 = vsub.f32 1.0, %v1477_v0  ;;  %v917_v7 = vadd.f32 %v5136_v12, %v916_v4  ;;  %vm1495_vm5 = vweird.f32 %v5152_v52 }
 0x14a   : > { %vm1500_vm7 = vcmp.eq.f32.partialorder %v1499_v39, 8.507059e+37  ;;  %v1502_v53 = vor.u32 1.1754944e-38, %v1501_v40 }
 0x14b   : > { %v1143_v9 = vsub.f32 0.0, %v1092_v3  ;;  %v1479_v10 = vmul.f32 %v4327_v55, %v1478_v6  ;;  %v1006_v18 = vadd.f32 %v1005_v5, %v917_v7 }
 0x14d   : > { %v4329_v16 = vpop.eup %4328  ;;  %v1194_v17 = vmul.f32 1.442695, %v1143_v9  ;;  %v1480_v19 = vadd.f32 %v4327_v55, %v1479_v10 }
 0x14e   : > { %v4331_v22 = vpop.eup %4330  ;;  %v5172_v23 = vadd.f32 1.0, %v4329_v16 }
 0x14f   : > { %4332 = vpow2.f32 %v1194_v17  ;;  %v1484_v26 = vsel %vm1483_vm2, %v4327_v55, %v1480_v19  ;;  %v1491_v27 = vmul.f32 %v4331_v22, %v5152_v52  ;;  %vm1496_vm4 = vweird.f32 %v4331_v22 }
 0x150   : > { %4334 = vrcp.f32 %v5172_v23  ;;  %v1094_v28 = vpop.f32.mrf.mxu2  ;;  %v1489_v29 = vsel %vm1486_vm3, %v1488_v24, %v1484_v26  ;;  %v918_v33 = vpop.f32.mrf.mxu0  ;;  %vm1497_vm6 = vmor %vm1495_vm5, %vm1496_vm4  ;;  %v1513_v0 = vand.u32 2147483647, %v5172_v23  ;;  %v1515_v1 = vand.u32 2147483648, %v5172_v23 }
 0x151   : > { %v1095_v32 = vadd.f32 %v1094_v28, %v1006_v18  ;;  %1784 = vmatmul.f32.gmra.mxu3 %v1489_v29  ;;  %v1007_v34 = vpop.f32.mrf.mxu1  ;;  %v1492_v36 = vsub.f32 1.0, %v1491_v27  ;;  %v919_v38 = vadd.f32 %v5136_v12, %v918_v33  ;;  %vm1509_vm9 = vweird.f32 %v5172_v23 }
 0x152   : > { %vm1514_vm11 = vcmp.eq.f32.partialorder %v1513_v0, 8.507059e+37  ;;  %v1516_v13 = vor.u32 1.1754944e-38, %v1515_v1 }
 0x153   : > { %v1144_v41 = vsub.f32 0.0, %v1095_v32  ;;  %v1493_v42 = vmul.f32 %v4331_v22, %v1492_v36  ;;  %v1008_v51 = vadd.f32 %v1007_v34, %v919_v38 }
 0x154   : > { %v1737_v43 = vpop.f32.mrf.mxu3 }
 0x155   : > { %v4333_v45 = vpop.eup %4332  ;;  %v1196_v46 = vmul.f32 1.442695, %v1144_v41  ;;  %v1738_v47 = vadd.f32 %v5185_v35, %v1737_v43  ;;  %v1494_v48 = vadd.f32 %v4331_v22, %v1493_v42 }
 0x156   : > { %v4335_v49 = vpop.eup %4334  ;;  %v5195_v50 = vadd.f32 1.0, %v4333_v45 }
 0x157   : > { %4336 = vpow2.f32 %v1196_v46  ;;  %v1833_v54 = vsub.f32 0.0, %v1738_v47  ;;  %v1498_v56 = vsel %vm1497_vm6, %v4331_v22, %v1494_v48  ;;  %v1505_v57 = vmul.f32 %v4335_v49, %v5172_v23 }
 0x158   : > { %4338 = vrcp.f32 %v5195_v50  ;;  %v1096_v58 = vpop.f32.mrf.mxu2  ;;  %v1503_v59 = vsel %vm1500_vm7, %v1502_v53, %v1498_v56  ;;  %v921_v52 = vpop.f32.mrf.mxu0  ;;  %vm1510_vm8 = vweird.f32 %v4335_v49  ;;  %v1527_v19 = vand.u32 2147483647, %v5195_v50 }
 0x159   : > { %v1865_v60 = vmul.f32 1.442695, %v1833_v54  ;;  %v1097_v55 = vadd.f32 %v1096_v58, %v1008_v51  ;;  %1787 = vmatmul.f32.gmra.mxu3 %v1503_v59  ;;  %v1010_v61 = vpop.f32.mrf.mxu1  ;;  %v1506_v62 = vsub.f32 1.0, %v1505_v57  ;;  %v922_v63 = vadd.f32 %v5136_v12, %v921_v52  ;;  %vm1511_vm10 = vmor %vm1509_vm9, %vm1510_vm8 }
 0x15a   : > { %v1529_v20 = vand.u32 2147483648, %v5195_v50  ;;  %vm1523_vm12 = vweird.f32 %v5195_v50  ;;  %vm5215_vm14 = vcmp.eq.f32.partialorder %v1527_v19, 8.507059e+37 }
 0x15b   : > { %4340 = vpow2.f32 %v1865_v60  ;;  %v1145_v2 = vsub.f32 0.0, %v1097_v55  ;;  %v1507_v3 = vmul.f32 %v4335_v49, %v1506_v62  ;;  %v1011_v7 = vadd.f32 %v1010_v61, %v922_v63 }
 0x15c   : > { %v1740_v4 = vpop.f32.mrf.mxu3  ;;  %v1530_v33 = vor.u32 1.1754944e-38, %v1529_v20 }
 0x15d   : > { %v4337_v5 = vpop.eup %4336  ;;  %v1198_v6 = vmul.f32 1.442695, %v1145_v2  ;;  %v1741_v8 = vadd.f32 %v5185_v35, %v1740_v4  ;;  %v1508_v9 = vadd.f32 %v4335_v49, %v1507_v3 }
 0x15e   : > { %v4339_v10 = vpop.eup %4338  ;;  %v5204_v11 = vadd.f32 1.0, %v4337_v5 }
 0x15f   : > { %4342 = vpow2.f32 %v1198_v6  ;;  %v1834_v14 = vsub.f32 0.0, %v1741_v8  ;;  %v1512_v15 = vsel %vm1511_vm10, %v4335_v49, %v1508_v9  ;;  %v1519_v16 = vmul.f32 %v4339_v10, %v5195_v50 }
 0x160   : > { %4344 = vrcp.f32 %v5204_v11  ;;  %v1099_v17 = vpop.f32.mrf.mxu2  ;;  %v1517_v18 = vsel %vm1514_vm11, %v1516_v13, %v1512_v15  ;;  %v923_v24 = vpop.f32.mrf.mxu0  ;;  %vm1524_vm13 = vweird.f32 %v4339_v10  ;;  %v1541_v34 = vand.u32 2147483647, %v5204_v11 }
 0x161   : > { %v4341_v21 = vpop.eup %4340  ;;  %v1867_v22 = vmul.f32 1.442695, %v1834_v14  ;;  %v1100_v23 = vadd.f32 %v1099_v17, %v1011_v7  ;;  %1790 = vmatmul.f32.gmra.mxu3 %v1517_v18  ;;  %v1012_v25 = vpop.f32.mrf.mxu1  ;;  %v1520_v26 = vsub.f32 1.0, %v1519_v16  ;;  %v924_v28 = vadd.f32 %v5136_v12, %v923_v24  ;;  %vm1525_vm15 = vmor %vm1523_vm12, %vm1524_vm13 }
 0x162   : > { %v5210_v27 = vadd.f32 1.0, %v4341_v21  ;;  %v1543_v40 = vand.u32 2147483648, %v5204_v11  ;;  %vm1537_vm0 = vweird.f32 %v5204_v11  ;;  %vm5232_vm1 = vcmp.eq.f32.partialorder %v1541_v34, 8.507059e+37 }
 0x163   : > { %4346 = vpow2.f32 %v1867_v22  ;;  %v1146_v29 = vsub.f32 0.0, %v1100_v23  ;;  %v1521_v30 = vmul.f32 %v4339_v10, %v1520_v26  ;;  %v1013_v43 = vadd.f32 %v1012_v25, %v924_v28 }
 0x164   : > { %4348 = vrcp.f32 %v5210_v27  ;;  %v1743_v31 = vpop.f32.mrf.mxu3  ;;  %v1970_v44 = vand.u32 2147483647, %v5210_v27  ;;  %v1972_v50 = vand.u32 2147483648, %v5210_v27  ;;  %v1544_v60 = vor.u32 1.1754944e-38, %v1543_v40  ;;  %v4234_v40 = vld [vmem:[%s6973_s7 + $0x64] sm:$0xf] }
 0x165   : > { %v4343_v36 = vpop.eup %4342  ;;  %v1200_v37 = vmul.f32 1.442695, %v1146_v29  ;;  %v1744_v38 = vadd.f32 %v5185_v35, %v1743_v31  ;;  %v1522_v39 = vadd.f32 %v4339_v10, %v1521_v30  ;;  %vm1966_vm3 = vweird.f32 %v5210_v27 }
 0x166   : > { %v4345_v41 = vpop.eup %4344  ;;  %v5222_v42 = vadd.f32 1.0, %v4343_v36  ;;  %vm5245_vm4 = vcmp.eq.f32.partialorder %v1970_v44, 8.507059e+37  ;;  %v1973_v4 = vor.u32 1.1754944e-38, %v1972_v50 }
 0x167   : > { %4350 = vpow2.f32 %v1200_v37  ;;  %v1835_v45 = vsub.f32 0.0, %v1744_v38  ;;  %v1526_v46 = vsel %vm1525_vm15, %v4339_v10, %v1522_v39  ;;  %v1533_v47 = vmul.f32 %v4345_v41, %v5204_v11 }
 0x168   : > { %4352 = vrcp.f32 %v5222_v42  ;;  %v1101_v48 = vpop.f32.mrf.mxu2  ;;  %v1531_v49 = vsel %vm5215_vm14, %v1530_v33, %v1526_v46  ;;  %v926_v57 = vpop.f32.mrf.mxu0  ;;  %vm1538_vm2 = vweird.f32 %v4345_v41  ;;  %v1555_v5 = vand.u32 2147483647, %v5222_v42  ;;  %v4110_v46 = vld [vmem:[%s6973_s7 + $0x68] sm:$0xf] }
 0x169   : > { %v4347_v53 = vpop.eup %4346  ;;  %v1869_v54 = vmul.f32 1.442695, %v1835_v45  ;;  %v1102_v56 = vadd.f32 %v1101_v48, %v1013_v43  ;;  %1793 = vmatmul.f32.gmra.mxu3 %v1531_v49  ;;  %v1015_v58 = vpop.f32.mrf.mxu1  ;;  %v1534_v59 = vsub.f32 1.0, %v1533_v47  ;;  %v927_v61 = vadd.f32 %v5136_v12, %v926_v57  ;;  %vm1539_vm5 = vmor %vm1537_vm0, %vm1538_vm2  ;;  %v4236_v47 = vld [vmem:[%s6973_s7 + $0x70] sm:$0xf0] }
 0x16a   : > { %v5237_v55 = vpop.eup %4348  ;;  %v5239_v52 = vadd.f32 1.0, %v4347_v53  ;;  %vm1551_vm7 = vweird.f32 %v5222_v42  ;;  %v1557_v15 = vand.u32 2147483648, %v5222_v42  ;;  %vm5269_vm8 = vcmp.eq.f32.partialorder %v1555_v5, 8.507059e+37 }
 0x16b   : > { %4354 = vpow2.f32 %v1869_v54  ;;  %v1147_v62 = vsub.f32 0.0, %v1102_v56  ;;  %v1535_v63 = vmul.f32 %v4345_v41, %v1534_v59  ;;  %v1962_v0 = vmul.f32 %v5237_v55, %v5210_v27  ;;  %v4104_v27 = vld [vmem:[%s6973_s7 + $0x6c] sm:$0xf0] }
 0x16c   : > { %4356 = vrcp.f32 %v5239_v52  ;;  %v1016_v2 = vadd.f32 %v1015_v58, %v927_v61  ;;  %v1746_v3 = vpop.f32.mrf.mxu3  ;;  %vm1967_vm6 = vweird.f32 %v5237_v55  ;;  %v1984_v16 = vand.u32 2147483647, %v5239_v52 }
 0x16d   : > { %v4351_v6 = vpop.eup %4350  ;;  %v1202_v7 = vmul.f32 1.442695, %v1147_v62  ;;  %v1747_v8 = vadd.f32 %v5185_v35, %v1746_v3  ;;  %v1536_v9 = vadd.f32 %v4345_v41, %v1535_v63  ;;  %v1963_v10 = vsub.f32 1.0, %v1962_v0  ;;  %vm1968_vm11 = vmor %vm1966_vm3, %vm1967_vm6 }
 0x16e   : > { %v5252_v13 = vpop.eup %4352  ;;  %v5254_v14 = vadd.f32 1.0, %v4351_v6  ;;  %vm1980_vm10 = vweird.f32 %v5239_v52  ;;  %v1558_v34 = vor.u32 1.1754944e-38, %v1557_v15  ;;  %vm5288_vm12 = vcmp.eq.f32.partialorder %v1984_v16, 8.507059e+37  ;;  %v4102_v16 = vld [vmem:[%s6973_s7 + $0x60] sm:$0xf] }
 0x16f   : > { %4358 = vpow2.f32 %v1202_v7  ;;  %v1836_v17 = vsub.f32 0.0, %v1747_v8  ;;  %v1540_v18 = vsel %vm1539_vm5, %v4345_v41, %v1536_v9  ;;  %v1964_v19 = vmul.f32 %v5237_v55, %v1963_v10 }
 0x170   : > { %4360 = vrcp.f32 %v5254_v14  ;;  %v1104_v20 = vpop.f32.mrf.mxu2  ;;  %v1545_v11 = vsel %vm5232_vm1, %v1544_v60, %v1540_v18  ;;  %v1547_v21 = vmul.f32 %v5252_v13, %v5222_v42  ;;  %v928_v26 = vpop.f32.mrf.mxu0  ;;  %vm1552_vm9 = vweird.f32 %v5252_v13 }
 0x171   : > { %v4355_v23 = vpop.eup %4354  ;;  %v1871_v24 = vmul.f32 1.442695, %v1836_v17  ;;  %v1105_v25 = vadd.f32 %v1104_v20, %v1016_v2  ;;  %1796 = vmatmul.f32.gmra.mxu3 %v1545_v11  ;;  %v1017_v28 = vpop.f32.mrf.mxu1  ;;  %v1965_v29 = vadd.f32 %v5237_v55, %v1964_v19  ;;  %v929_v32 = vadd.f32 %v5136_v12, %v928_v26  ;;  %vm1553_vm14 = vmor %vm1551_vm7, %vm1552_vm9  ;;  %v4235_v17 = vld [vmem:[%s6973_s7 + $0x68] sm:$0xf0] }
 0x172   : > { %v5276_v30 = vpop.eup %4356  ;;  %v5278_v31 = vadd.f32 1.0, %v4355_v23  ;;  %v1548_v33 = vsub.f32 1.0, %v1547_v21  ;;  %v1986_v57 = vand.u32 2147483648, %v5239_v52  ;;  %v4107_v58 = vor.u32 %v4234_v40, %v4104_v27 }
 0x173   : > { %4362 = vpow2.f32 %v1871_v24  ;;  %v1148_v36 = vsub.f32 0.0, %v1105_v25  ;;  %v1969_v37 = vsel %vm1968_vm11, %v5237_v55, %v1965_v29  ;;  %v1976_v38 = vmul.f32 %v5276_v30, %v5239_v52 }
 0x174   : > { %4364 = vrcp.f32 %v5278_v31  ;;  %v1018_v41 = vadd.f32 %v1017_v28, %v929_v32  ;;  %v1749_v43 = vpop.f32.mrf.mxu3  ;;  %v1974_v44 = vsel %vm5245_vm4, %v1973_v4, %v1969_v37  ;;  %v1549_v45 = vmul.f32 %v5252_v13, %v1548_v33  ;;  %3394 = vmatpush.bf16.msrb.mxu2 %v4107_v58 }
 0x175   : > { %v4359_v48 = vpop.eup %4358  ;;  %v1204_v49 = vmul.f32 1.442695, %v1148_v36  ;;  %v1750_v51 = vadd.f32 %v5185_v35, %v1749_v43  ;;  %2445 = vmatmul.f32.vlgmr.msrb.gmra.mxu0 %v1974_v44  ;;  %v1977_v50 = vsub.f32 1.0, %v1976_v38  ;;  %vm1981_vm13 = vweird.f32 %v5276_v30 }
 0x176   : > { %v5310_v53 = vpop.eup %4360  ;;  %v5312_v54 = vadd.f32 1.0, %v4359_v48  ;;  %v1550_v56 = vadd.f32 %v5252_v13, %v1549_v45  ;;  %v4111_v55 = vor.u32 %v4236_v47, %v4110_v46  ;;  %v1987_v63 = vor.u32 1.1754944e-38, %v1986_v57  ;;  %vm1982_vm15 = vmor %vm1980_vm10, %vm1981_vm13 }
 0x177   : > { %4366 = vpow2.f32 %v1204_v49  ;;  %v1837_v59 = vsub.f32 0.0, %v1750_v51  ;;  %v1978_v60 = vmul.f32 %v5276_v30, %v1977_v50  ;;  %v1561_v0 = vmul.f32 %v5310_v53, %v5254_v14 }
 0x178   : > { %4368 = vrcp.f32 %v5312_v54  ;;  %v1106_v61 = vpop.f32.mrf.mxu2  ;;  %v1554_v62 = vsel %vm1553_vm14, %v5252_v13, %v1550_v56  ;;  %v931_v4 = vpop.f32.mrf.mxu0  ;;  %3483 = vmatpush.bf16.msrb.mxu3 %v4111_v55  ;;  %vm1565_vm0 = vweird.f32 %v5254_v14  ;;  %vm1566_vm1 = vweird.f32 %v5310_v53 }
 0x179   : > { %v4363_v1 = vpop.eup %4362  ;;  %v1873_v2 = vmul.f32 1.442695, %v1837_v59  ;;  %v1107_v3 = vadd.f32 %v1106_v61, %v1018_v41  ;;  %v1559_v42 = vsel %vm5269_vm8, %v1558_v34, %v1554_v62  ;;  %v1020_v5 = vpop.f32.mrf.mxu1  ;;  %v1979_v6 = vadd.f32 %v5276_v30, %v1978_v60  ;;  %vm1567_vm2 = vmor %vm1565_vm0, %vm1566_vm1 }
 0x17a   : > { %v5328_v7 = vpop.eup %4364  ;;  %v5330_v8 = vadd.f32 1.0, %v4363_v1  ;;  %1799 = vmatmul.f32.gmra.mxu3 %v1559_v42  ;;  %v932_v9 = vadd.f32 %v5136_v12, %v931_v4  ;;  %v1562_v10 = vsub.f32 1.0, %v1561_v0  ;;  %v1569_v23 = vand.u32 2147483647, %v5254_v14 }
 0x17b   : > { %4370 = vpow2.f32 %v1873_v2  ;;  %v1149_v13 = vsub.f32 0.0, %v1107_v3  ;;  %v1983_v15 = vsel %vm1982_vm15, %v5276_v30, %v1979_v6  ;;  %v1571_v24 = vand.u32 2147483648, %v5254_v14 }
 0x17c   : > { %4372 = vrcp.f32 %v5330_v8  ;;  %v1021_v52 = vadd.f32 %v1020_v5, %v932_v9  ;;  %v1752_v18 = vpop.f32.mrf.mxu3  ;;  %v1988_v19 = vsel %vm5288_vm12, %v1987_v63, %v1983_v15  ;;  %v1563_v20 = vmul.f32 %v5310_v53, %v1562_v10 }
 0x17d   : > { %v4367_v11 = vpop.eup %4366  ;;  %v1206_v21 = vmul.f32 1.442695, %v1149_v13  ;;  %v1753_v22 = vadd.f32 %v5185_v35, %v1752_v18  ;;  %2448 = vmatmul.f32.gmra.mxu0 %v1988_v19  ;;  %v4103_v29 = vor.u32 %v4235_v17, %v4102_v16  ;;  %v1990_v30 = vmul.f32 %v5328_v7, %v5278_v31 }
 0x17e   : > { %v5353_v25 = vpop.eup %4368  ;;  %v5355_v26 = vadd.f32 1.0, %v4367_v11  ;;  %v1564_v28 = vadd.f32 %v5310_v53, %v1563_v20  ;;  %v1572_v33 = vor.u32 1.1754944e-38, %v1571_v24  ;;  %vm1570_vm3 = vcmp.eq.f32.partialorder %v1569_v23, 8.507059e+37 }
 0x17f   : > { %4374 = vpow2.f32 %v1206_v21  ;;  %v1838_v32 = vsub.f32 0.0, %v1753_v22  ;;  %3305 = vmatpush.bf16.msrb.mxu1 %v4103_v29  ;;  %v1991_v37 = vsub.f32 1.0, %v1990_v30  ;;  %vm1995_vm4 = vweird.f32 %v5328_v7 }
 0x180   : > { %4376 = vrcp.f32 %v5355_v26  ;;  %v1109_v34 = vpop.f32.mrf.mxu2  ;;  %v1568_v36 = vsel %vm1567_vm2, %v5310_v53, %v1564_v28  ;;  %v933_v41 = vpop.f32.mrf.mxu0  ;;  %v1998_v47 = vand.u32 2147483647, %v5278_v31  ;;  %v2000_v49 = vand.u32 2147483648, %v5278_v31 }
 0x181   : > { %v4371_v38 = vpop.eup %4370  ;;  %v1875_v39 = vmul.f32 1.442695, %v1838_v32  ;;  %v1110_v40 = vadd.f32 %v1109_v34, %v1021_v52  ;;  %v1573_v27 = vsel %vm1570_vm3, %v1572_v33, %v1568_v36  ;;  %v1022_v43 = vpop.f32.mrf.mxu1  ;;  %v934_v45 = vadd.f32 %v5136_v12, %v933_v41 }
 0x182   : > { %v5367_v44 = vpop.eup %4372  ;;  %v5369_v14 = vadd.f32 1.0, %v4371_v38  ;;  %1802 = vmatmul.f32.gmra.mxu3 %v1573_v27  ;;  %v1992_v46 = vmul.f32 %v5328_v7, %v1991_v37  ;;  %v1575_v51 = vmul.f32 %v5353_v25, %v5312_v54  ;;  %vm1994_vm5 = vweird.f32 %v5278_v31 }
 0x183   : > { %4378 = vpow2.f32 %v1875_v39  ;;  %v1150_v48 = vsub.f32 0.0, %v1110_v40  ;;  %vm1996_vm6 = vmor %vm1994_vm5, %vm1995_vm4  ;;  %v2001_v59 = vor.u32 1.1754944e-38, %v2000_v49  ;;  %v1023_v61 = vadd.f32 %v1022_v43, %v934_v45 }
 0x184   : > { %4380 = vrcp.f32 %v5369_v14  ;;  %v1755_v50 = vpop.f32.mrf.mxu3  ;;  %v1993_v53 = vadd.f32 %v5328_v7, %v1992_v46  ;;  %v1576_v60 = vsub.f32 1.0, %v1575_v51  ;;  %vm1999_vm7 = vcmp.eq.f32.partialorder %v1998_v47, 8.507059e+37 }
 0x185   : > { %v4375_v56 = vpop.eup %4374  ;;  %v1208_v57 = vmul.f32 1.442695, %v1150_v48  ;;  %v1756_v58 = vadd.f32 %v5185_v35, %v1755_v50  ;;  %vm1580_vm8 = vweird.f32 %v5353_v25  ;;  %v1583_v3 = vand.u32 2147483647, %v5312_v54 }
 0x186   : > { %v5383_v55 = vpop.eup %4376  ;;  %v1997_v62 = vsel %vm1996_vm6, %v5328_v7, %v1993_v53  ;;  %v1577_v0 = vmul.f32 %v5353_v25, %v1576_v60  ;;  %v5388_v1 = vadd.f32 1.0, %v4375_v56  ;;  %v1585_v42 = vand.u32 2147483648, %v5312_v54 }
 0x187   : > { %4382 = vpow2.f32 %v1208_v57  ;;  %v1839_v63 = vsub.f32 0.0, %v1756_v58  ;;  %v2002_v31 = vsel %vm1999_vm7, %v2001_v59, %v1997_v62  ;;  %v2004_v4 = vmul.f32 %v5367_v44, %v5330_v8 }
 0x188   : > { %2451 = vmatmul.f32.gmra.mxu0 %v2002_v31  ;;  %v1111_v2 = vpop.f32.mrf.mxu2  ;;  %v1578_v9 = vadd.f32 %v5353_v25, %v1577_v0  ;;  %vm1579_vm9 = vweird.f32 %v5312_v54  ;;  %v936_v10 = vpop.f32.mrf.mxu0  ;;  %vm1584_vm11 = vcmp.eq.f32.partialorder %v1583_v3, 8.507059e+37  ;;  %v1586_v16 = vor.u32 1.1754944e-38, %v1585_v42 }
 0x189   : > { %v4379_v5 = vpop.eup %4378  ;;  %v1877_v6 = vmul.f32 1.442695, %v1839_v63  ;;  %v1112_v7 = vadd.f32 %v1111_v2, %v1023_v61  ;;  %vm1581_vm10 = vmor %vm1579_vm9, %vm1580_vm8  ;;  %v937_v17 = vadd.f32 %v5136_v12, %v936_v10  ;;  %v1025_v52 = vpop.f32.mrf.mxu1  ;;  %v2005_v20 = vsub.f32 1.0, %v2004_v4 }
 0x18a   : > { %v5396_v13 = vpop.eup %4380  ;;  %v5398_v15 = vadd.f32 1.0, %v4379_v5  ;;  %v1582_v19 = vsel %vm1581_vm10, %v5353_v25, %v1578_v9  ;;  %vm2009_vm12 = vweird.f32 %v5367_v44  ;;  %v2012_v29 = vand.u32 2147483647, %v5330_v8 }
 0x18b   : > { %4384 = vpow2.f32 %v1877_v6  ;;  %v1151_v18 = vsub.f32 0.0, %v1112_v7  ;;  %v1587_v54 = vsel %vm1584_vm11, %v1586_v16, %v1582_v19  ;;  %v1026_v11 = vadd.f32 %v1025_v52, %v937_v17 }
 0x18c   : > { %4386 = vrcp.f32 %v5388_v1  ;;  %v1758_v21 = vpop.f32.mrf.mxu3  ;;  %1805 = vmatmul.f32.gmra.mxu3 %v1587_v54  ;;  %v2006_v28 = vmul.f32 %v5367_v44, %v2005_v20  ;;  %vm2008_vm13 = vweird.f32 %v5330_v8  ;;  %v2014_v25 = vand.u32 2147483648, %v5330_v8 }
 0x18d   : > { %v4383_v22 = vpop.eup %4382  ;;  %v1210_v23 = vmul.f32 1.442695, %v1151_v18  ;;  %v1759_v24 = vadd.f32 %v5185_v35, %v1758_v21  ;;  %4388 = vrcp.f32 %v5398_v15  ;;  %v1589_v30 = vmul.f32 %v5383_v55, %v5355_v26  ;;  %vm2010_vm14 = vmor %vm2008_vm13, %vm2009_vm12 }
 0x18e   : > { %v5414_v32 = vadd.f32 1.0, %v4383_v22  ;;  %v2007_v34 = vadd.f32 %v5367_v44, %v2006_v28  ;;  %vm2013_vm15 = vcmp.eq.f32.partialorder %v2012_v29, 8.507059e+37  ;;  %v2015_v36 = vor.u32 1.1754944e-38, %v2014_v25  ;;  %v4643_v25 = vld [vmem:[%s6968_s2] ss:$0 sm:$0xff] }
 0x18f   : > { %4390 = vpow2.f32 %v1210_v23  ;;  %v1840_v33 = vsub.f32 0.0, %v1759_v24  ;;  %v1590_v38 = vsub.f32 1.0, %v1589_v30  ;;  %vm1594_vm0 = vweird.f32 %v5383_v55 }
 0x190   : > { %v1114_v37 = vpop.f32.mrf.mxu2  ;;  %v2011_v40 = vsel %vm2010_vm14, %v5367_v44, %v2007_v34  ;;  %v1597_v41 = vand.u32 2147483647, %v5355_v26  ;;  %v938_v43 = vpop.f32.mrf.mxu0  ;;  %v1599_v49 = vand.u32 2147483648, %v5355_v26  ;;  %vm1593_vm1 = vweird.f32 %v5355_v26 }
 0x191   : > { %v4385_v39 = vpop.eup %4384  ;;  %v1879_v8 = vmul.f32 1.442695, %v1840_v33  ;;  %v1115_v27 = vadd.f32 %v1114_v37, %v1026_v11  ;;  %v2016_v47 = vsel %vm2013_vm15, %v2015_v36, %v2011_v40  ;;  %v1591_v48 = vmul.f32 %v5383_v55, %v1590_v38  ;;  %v1027_v56 = vpop.f32.mrf.mxu1  ;;  %vm1595_vm3 = vmor %vm1593_vm1, %vm1594_vm0  ;;  %v4231_v37 = vld [vmem:[%s6973_s7 + $0x4c] sm:$0xf] }
 0x192   : > { %v5422_v45 = vpop.eup %4386  ;;  %v5424_v46 = vadd.f32 1.0, %v4385_v39  ;;  %2454 = vmatmul.f32.gmra.mxu0 %v2016_v47  ;;  %v939_v44 = vadd.f32 %v5136_v12, %v938_v43  ;;  %vm1598_vm2 = vcmp.eq.f32.partialorder %v1597_v41, 8.507059e+37  ;;  %v2018_v58 = vmul.f32 %v5396_v13, %v5369_v14  ;;  %v4233_v41 = vld [vmem:[%s6973_s7 + $0x58] sm:$0xf0] }
 0x193   : > { %4392 = vpow2.f32 %v1879_v8  ;;  %v1152_v51 = vsub.f32 0.0, %v1115_v27  ;;  %v5430_v50 = vpop.eup %4388  ;;  %v1592_v53 = vadd.f32 %v5383_v55, %v1591_v48  ;;  %v1600_v12 = vor.u32 1.1754944e-38, %v1599_v49  ;;  %v4098_v27 = vld [vmem:[%s6973_s7 + $0x50] sm:$0xf] }
 0x194   : > { %4394 = vrcp.f32 %v5414_v32  ;;  %v1761_v57 = vpop.f32.mrf.mxu3  ;;  %v1028_v63 = vadd.f32 %v1027_v56, %v939_v44  ;;  %v2019_v31 = vsub.f32 1.0, %v2018_v58  ;;  %v2026_v3 = vand.u32 2147483647, %v5369_v14 }
 0x195   : > { %v4391_v59 = vpop.eup %4390  ;;  %4396 = vrcp.f32 %v5424_v46  ;;  %v1212_v60 = vmul.f32 1.442695, %v1152_v51  ;;  %v1762_v26 = vadd.f32 %v5185_v35, %v1761_v57  ;;  %v1596_v62 = vsel %vm1595_vm3, %v5383_v55, %v1592_v53 }
 0x196   : > { %v5440_v61 = vadd.f32 1.0, %v4391_v59  ;;  %v1601_v0 = vsel %vm1598_vm2, %v1600_v12, %v1596_v62  ;;  %v2020_v42 = vmul.f32 %v5396_v13, %v2019_v31  ;;  %vm2023_vm4 = vweird.f32 %v5396_v13 }
 0x197   : > { %4398 = vpow2.f32 %v1212_v60  ;;  %v1841_v2 = vsub.f32 0.0, %v1762_v26  ;;  %1808 = vmatmul.f32.gmra.mxu3 %v1601_v0  ;;  %v2028_v4 = vand.u32 2147483648, %v5369_v14  ;;  %v1603_v6 = vmul.f32 %v5422_v45, %v5388_v1 }
 0x198   : > { %v1116_v5 = vpop.f32.mrf.mxu2  ;;  %4400 = vrcp.f32 %v5440_v61  ;;  %vm2022_vm5 = vweird.f32 %v5369_v14  ;;  %v941_v10 = vpop.f32.mrf.mxu0  ;;  %v2021_v52 = vadd.f32 %v5396_v13, %v2020_v42  ;;  %vm2027_vm6 = vcmp.eq.f32.partialorder %v2026_v3, 8.507059e+37  ;;  %v4232_v3 = vld [vmem:[%s6973_s7 + $0x50] sm:$0xf0] }
 0x199   : > { %v4393_v7 = vpop.eup %4392  ;;  %v1881_v55 = vmul.f32 1.442695, %v1841_v2  ;;  %v1117_v9 = vadd.f32 %v1116_v5, %v1028_v63  ;;  %v1604_v18 = vsub.f32 1.0, %v1603_v6  ;;  %vm2024_vm7 = vmor %vm2022_vm5, %vm2023_vm4  ;;  %v2029_v20 = vor.u32 1.1754944e-38, %v2028_v4  ;;  %v1030_v34 = vpop.f32.mrf.mxu1  ;;  %v4090_v2 = vld [vmem:[%s6973_s7 + $0x48] sm:$0xf] }
 0x19a   : > { %v5451_v16 = vpop.eup %4394  ;;  %v5453_v17 = vadd.f32 1.0, %v4393_v7  ;;  %vm1608_vm8 = vweird.f32 %v5422_v45  ;;  %v2025_v14 = vsel %vm2024_vm7, %v5396_v13, %v2021_v52  ;;  %v1611_v21 = vand.u32 2147483647, %v5388_v1 }
 0x19b   : > { %v5456_v19 = vpop.eup %4396  ;;  %4402 = vpow2.f32 %v1881_v55  ;;  %v1153_v54 = vsub.f32 0.0, %v1117_v9  ;;  %v1605_v11 = vmul.f32 %v5422_v45, %v1604_v18  ;;  %v1613_v22 = vand.u32 2147483648, %v5388_v1 }
 0x19c   : > { %v1764_v23 = vpop.f32.mrf.mxu3  ;;  %v2030_v28 = vsel %vm2027_vm6, %v2029_v20, %v2025_v14  ;;  %vm1607_vm9 = vweird.f32 %v5388_v1  ;;  %v942_v30 = vadd.f32 %v4643_v25, %v941_v10  ;;  %4404 = vrcp.f32 %v5453_v17  ;;  %v4092_v1 = vld [vmem:[%s6973_s7 + $0x54] sm:$0xf0] }
 0x19d   : > { %v4399_v24 = vpop.eup %4398  ;;  %v1214_v29 = vmul.f32 1.442695, %v1153_v54  ;;  %2457 = vmatmul.f32.gmra.mxu0 %v2030_v28  ;;  %v1606_v33 = vadd.f32 %v5422_v45, %v1605_v11  ;;  %v1765_v36 = vadd.f32 %v5185_v35, %v1764_v23  ;;  %vm1609_vm10 = vmor %vm1607_vm9, %vm1608_vm8  ;;  %v1614_v39 = vor.u32 1.1754944e-38, %v1613_v22 }
 0x19e   : > { %v5470_v13 = vadd.f32 1.0, %v4399_v24  ;;  %v5480_v38 = vpop.eup %4400  ;;  %v1031_v8 = vadd.f32 %v1030_v34, %v942_v30  ;;  %v2032_v40 = vmul.f32 %v5430_v50, %v5398_v15  ;;  %vm1612_vm11 = vcmp.eq.f32.partialorder %v1611_v21, 8.507059e+37 }
 0x19f   : > { %4406 = vpow2.f32 %v1214_v29  ;;  %v1610_v43 = vsel %vm1609_vm10, %v5422_v45, %v1606_v33  ;;  %v1842_v47 = vsub.f32 0.0, %v1765_v36  ;;  %vm2036_vm12 = vweird.f32 %v5398_v15 }
 0x1a0   : > { %v1119_v48 = vpop.f32.mrf.mxu2  ;;  %v1615_v51 = vsel %vm1612_vm11, %v1614_v39, %v1610_v43  ;;  %v2033_v44 = vsub.f32 1.0, %v2032_v40  ;;  %v2040_v53 = vand.u32 2147483647, %v5398_v15  ;;  %v2042_v56 = vand.u32 2147483648, %v5398_v15  ;;  %v943_v26 = vpop.f32.mrf.mxu0 }
 0x1a1   : > { %v4403_v49 = vpop.eup %4402  ;;  %1811 = vmatmul.f32.gmra.mxu3 %v1615_v51  ;;  %v1883_v58 = vmul.f32 1.442695, %v1842_v47  ;;  %v4095_v59 = vor.u32 %v4231_v37, %v4092_v1  ;;  %v4099_v60 = vor.u32 %v4233_v41, %v4098_v27  ;;  %4408 = vrcp.f32 %v5470_v13  ;;  %v1032_v21 = vpop.f32.mrf.mxu1 }
 0x1a2   : > { %v5496_v57 = vadd.f32 1.0, %v4403_v49  ;;  %v2034_v45 = vmul.f32 %v5430_v50, %v2033_v44  ;;  %vm2037_vm13 = vweird.f32 %v5430_v50  ;;  %v1120_v12 = vadd.f32 %v1119_v48, %v1031_v8  ;;  %v5501_v62 = vpop.eup %4404 }
 0x1a3   : > { %vm5504_vm14 = vcmp.eq.f32.partialorder %v2040_v53, 8.507059e+37  ;;  %v2043_v31 = vor.u32 1.1754944e-38, %v2042_v56  ;;  %3395 = vmatpush.bf16.msrb.mxu2 %v4095_v59  ;;  %3484 = vmatpush.bf16.msrb.mxu3 %v4099_v60  ;;  %v1617_v0 = vmul.f32 %v5451_v16, %v5414_v32  ;;  %v1625_v7 = vand.u32 2147483647, %v5414_v32  ;;  %vm2038_vm15 = vmor %vm2036_vm12, %vm2037_vm13 }
 0x1a4   : > { %4410 = vrcp.f32 %v5496_v57  ;;  %v1767_v42 = vpop.f32.mrf.mxu3  ;;  %v2035_v5 = vadd.f32 %v5430_v50, %v2034_v45  ;;  %v1154_v6 = vsub.f32 0.0, %v1120_v12  ;;  %v1627_v10 = vand.u32 2147483648, %v5414_v32 }
 0x1a5   : > { %v4407_v4 = vpop.eup %4406  ;;  %4412 = vpow2.f32 %v1883_v58  ;;  %v1618_v9 = vsub.f32 1.0, %v1617_v0  ;;  %v944_v52 = vadd.f32 %v4643_v25, %v943_v26  ;;  %vm1621_vm0 = vweird.f32 %v5414_v32 }
 0x1a6   : > { %v5518_v55 = vadd.f32 1.0, %v4407_v4  ;;  %v2039_v18 = vsel %vm2038_vm15, %v5430_v50, %v2035_v5  ;;  %v1216_v20 = vmul.f32 1.442695, %v1154_v6  ;;  %v4091_v54 = vor.u32 %v4232_v3, %v4090_v2 }
 0x1a7   : > { %v2044_v14 = vsel %vm5504_vm14, %v2043_v31, %v2039_v18  ;;  %v1619_v11 = vmul.f32 %v5451_v16, %v1618_v9  ;;  %vm1622_vm1 = vweird.f32 %v5451_v16  ;;  %vm5531_vm2 = vcmp.eq.f32.partialorder %v1625_v7, 8.507059e+37  ;;  %v5535_v23 = vpop.eup %4408 }
 0x1a8   : > { %v1121_v22 = vpop.f32.mrf.mxu2  ;;  %2460 = vmatmul.f32.gmra.mxu0 %v2044_v14  ;;  %4414 = vpow2.f32 %v1216_v20  ;;  %v1033_v50 = vadd.f32 %v1032_v21, %v944_v52  ;;  %3306 = vmatpush.bf16.msrb.mxu1 %v4091_v54  ;;  %v1768_v24 = vadd.f32 %v5185_v35, %v1767_v42  ;;  %v2046_v28 = vmul.f32 %v5456_v19, %v5424_v46  ;;  %vm1623_vm3 = vmor %vm1621_vm0, %vm1622_vm1 }
 0x1a9   : > { %4416 = vrcp.f32 %v5518_v55  ;;  %v1620_v25 = vadd.f32 %v5451_v16, %v1619_v11  ;;  %v1628_v30 = vor.u32 1.1754944e-38, %v1627_v10  ;;  %v2054_v33 = vand.u32 2147483647, %v5424_v46 }
 0x1aa   : > { %v5540_v29 = vpop.eup %4410  ;;  %v1843_v36 = vsub.f32 0.0, %v1768_v24  ;;  %v2047_v37 = vsub.f32 1.0, %v2046_v28  ;;  %v2056_v1 = vand.u32 2147483648, %v5424_v46  ;;  %v1122_v39 = vadd.f32 %v1121_v22, %v1033_v50 }
 0x1ab   : > { %v4413_v34 = vpop.eup %4412  ;;  %v1624_v40 = vsel %vm1623_vm3, %v5451_v16, %v1620_v25  ;;  %vm2050_vm4 = vweird.f32 %v5424_v46  ;;  %v1631_v27 = vmul.f32 %v5480_v38, %v5440_v61  ;;  %vm2051_vm5 = vweird.f32 %v5456_v19 }
 0x1ac   : > { %v5550_v8 = vadd.f32 1.0, %v4413_v34  ;;  %v1770_v41 = vpop.f32.mrf.mxu3  ;;  %v1629_v43 = vsel %vm5531_vm2, %v1628_v30, %v1624_v40  ;;  %v1885_v32 = vmul.f32 1.442695, %v1843_v36  ;;  %v2048_v47 = vmul.f32 %v5456_v19, %v2047_v37  ;;  %vm2052_vm7 = vmor %vm2050_vm4, %vm2051_vm5 }
 0x1ad   : > { %1814 = vmatmul.f32.gmra.mxu3 %v1629_v43  ;;  %vm5561_vm6 = vcmp.eq.f32.partialorder %v2054_v33, 8.507059e+37  ;;  %v1155_v16 = vsub.f32 0.0, %v1122_v39  ;;  %v1632_v49 = vsub.f32 1.0, %v1631_v27  ;;  %v2057_v53 = vor.u32 1.1754944e-38, %v2056_v1 }
 0x1ae   : > { %4418 = vrcp.f32 %v5550_v8  ;;  %v4415_v51 = vpop.eup %4414  ;;  %v2049_v44 = vadd.f32 %v5456_v19, %v2048_v47  ;;  %v1639_v56 = vand.u32 2147483647, %v5440_v61  ;;  %vm1636_vm8 = vweird.f32 %v5480_v38 }
 0x1af   : > { %4420 = vpow2.f32 %v1885_v32  ;;  %v5567_v58 = vpop.eup %4416  ;;  %v1218_v59 = vmul.f32 1.442695, %v1155_v16  ;;  %v1633_v60 = vmul.f32 %v5480_v38, %v1632_v49  ;;  %v1641_v45 = vand.u32 2147483648, %v5440_v61 }
 0x1b0   : > { %v2053_v12 = vsel %vm2052_vm7, %v5456_v19, %v2049_v44  ;;  %vm1635_vm9 = vweird.f32 %v5440_v61  ;;  %v1771_v26 = vadd.f32 %v5185_v35, %v1770_v41  ;;  %v2060_v63 = vmul.f32 %v5501_v62, %v5453_v17 }
 0x1b1   : > { %v5579_v31 = vadd.f32 1.0, %v4415_v51  ;;  %v2058_v46 = vsel %vm5561_vm6, %v2057_v53, %v2053_v12  ;;  %v1634_v0 = vadd.f32 %v5480_v38, %v1633_v60  ;;  %vm1640_vm10 = vcmp.eq.f32.partialorder %v1639_v56, 8.507059e+37  ;;  %vm1637_vm11 = vmor %vm1635_vm9, %vm1636_vm8 }
 0x1b2   : > { %2463 = vmatmul.f32.gmra.mxu0 %v2058_v46  ;;  %4422 = vpow2.f32 %v1218_v59  ;;  %v1642_v2 = vor.u32 1.1754944e-38, %v1641_v45  ;;  %v1844_v19 = vsub.f32 0.0, %v1771_v26  ;;  %v2061_v3 = vsub.f32 1.0, %v2060_v63  ;;  %v4228_v45 = vld [vmem:[%s6973_s7 + $0x34] sm:$0xf] }
 0x1b3   : > { %v1638_v35 = vsel %vm1637_vm11, %v5480_v38, %v1634_v0  ;;  %vm2065_vm12 = vweird.f32 %v5501_v62  ;;  %v2068_v42 = vand.u32 2147483647, %v5453_v17  ;;  %v2070_v4 = vand.u32 2147483648, %v5453_v17  ;;  %v4080_v63 = vld [vmem:[%s6973_s7 + $0x3c] sm:$0xf0] }
 0x1b4   : > { %v5584_v61 = vpop.eup %4418  ;;  %v1773_v5 = vpop.f32.mrf.mxu3  ;;  %v1643_v7 = vsel %vm1640_vm10, %v1642_v2, %v1638_v35  ;;  %v1887_v9 = vmul.f32 1.442695, %v1844_v19  ;;  %v2062_v10 = vmul.f32 %v5501_v62, %v2061_v3  ;;  %v1645_v52 = vmul.f32 %v5535_v23, %v5470_v13  ;;  %v4086_v46 = vld [vmem:[%s6973_s7 + $0x38] sm:$0xf]  ;;  %v4230_v0 = vld [vmem:[%s6973_s7 + $0x40] sm:$0xf0] }
 0x1b5   : > { %v4421_v6 = vpop.eup %4420  ;;  %4424 = vrcp.f32 %v5579_v31  ;;  %1817 = vmatmul.f32.gmra.mxu3 %v1643_v7  ;;  %vm2064_vm13 = vweird.f32 %v5453_v17  ;;  %vm5597_vm14 = vcmp.eq.f32.partialorder %v2068_v42, 8.507059e+37  ;;  %v2071_v54 = vor.u32 1.1754944e-38, %v2070_v4  ;;  %v5610_v17 = vld [vmem:[%s6970_s4] ss:$0 sm:$0xff] }
 0x1b6   : > { %v5594_v18 = vadd.f32 1.0, %v4421_v6  ;;  %4426 = vpow2.f32 %v1887_v9  ;;  %v2063_v20 = vadd.f32 %v5501_v62, %v2062_v10  ;;  %v1646_v14 = vsub.f32 1.0, %v1645_v52  ;;  %vm2066_vm15 = vmor %vm2064_vm13, %vm2065_vm12 }
 0x1b7   : > { %vm1649_vm0 = vweird.f32 %v5470_v13  ;;  %v1653_v11 = vand.u32 2147483647, %v5470_v13  ;;  %v1655_v15 = vand.u32 2147483648, %v5470_v13  ;;  %v1774_v21 = vadd.f32 %v5610_v17, %v1773_v5 }
 0x1b8   : > { %v4423_v22 = vpop.eup %4422  ;;  %v2067_v50 = vsel %vm2066_vm15, %v5501_v62, %v2063_v20  ;;  %v1647_v24 = vmul.f32 %v5535_v23, %v1646_v14  ;;  %vm1650_vm1 = vweird.f32 %v5535_v23  ;;  %v2074_v28 = vmul.f32 %v5540_v29, %v5496_v57 }
 0x1b9   : > { %4428 = vrcp.f32 %v5594_v18  ;;  %v5619_v25 = vadd.f32 1.0, %v4423_v22  ;;  %v2072_v30 = vsel %vm5597_vm14, %v2071_v54, %v2067_v50  ;;  %vm2078_vm2 = vweird.f32 %v5496_v57  ;;  %vm1651_vm4 = vmor %vm1649_vm0, %vm1650_vm1 }
 0x1ba   : > { %2466 = vmatmul.f32.gmra.mxu0 %v2072_v30  ;;  %v1648_v33 = vadd.f32 %v5535_v23, %v1647_v24  ;;  %vm5625_vm3 = vcmp.eq.f32.partialorder %v1653_v11, 8.507059e+37  ;;  %v1845_v34 = vsub.f32 0.0, %v1774_v21  ;;  %v2075_v36 = vsub.f32 1.0, %v2074_v28  ;;  %v4229_v11 = vld [vmem:[%s6973_s7 + $0x38] sm:$0xf0] }
 0x1bb   : > { %v5629_v37 = vpop.eup %4424  ;;  %v1656_v1 = vor.u32 1.1754944e-38, %v1655_v15  ;;  %v2082_v39 = vand.u32 2147483647, %v5496_v57  ;;  %v2084_v40 = vand.u32 2147483648, %v5496_v57  ;;  %v1659_v27 = vmul.f32 %v5567_v58, %v5518_v55 }
 0x1bc   : > { %v1776_v41 = vpop.f32.mrf.mxu3  ;;  %v4427_v43 = vpop.eup %4426  ;;  %v1652_v32 = vsel %vm1651_vm4, %v5535_v23, %v1648_v33  ;;  %v1889_v47 = vmul.f32 1.442695, %v1845_v34  ;;  %v2076_v48 = vmul.f32 %v5540_v29, %v2075_v36  ;;  %vm2079_vm5 = vweird.f32 %v5540_v29 }
 0x1bd   : > { %4430 = vrcp.f32 %v5619_v25  ;;  %v5641_v13 = vadd.f32 1.0, %v4427_v43  ;;  %v1657_v16 = vsel %vm5625_vm3, %v1656_v1, %v1652_v32  ;;  %vm1663_vm6 = vweird.f32 %v5518_v55  ;;  %vm2080_vm8 = vmor %vm2078_vm2, %vm2079_vm5 }
 0x1be   : > { %1820 = vmatmul.f32.gmra.mxu3 %v1657_v16  ;;  %4432 = vpow2.f32 %v1889_v47  ;;  %v2077_v49 = vadd.f32 %v5540_v29, %v2076_v48  ;;  %vm5647_vm7 = vcmp.eq.f32.partialorder %v2082_v39, 8.507059e+37  ;;  %v1660_v51 = vsub.f32 1.0, %v1659_v27 }
 0x1bf   : > { %v5651_v44 = vpop.eup %4428  ;;  %v2085_v53 = vor.u32 1.1754944e-38, %v2084_v40  ;;  %v1667_v56 = vand.u32 2147483647, %v5518_v55  ;;  %v1669_v59 = vand.u32 2147483648, %v5518_v55  ;;  %v1777_v60 = vadd.f32 %v5610_v17, %v1776_v41  ;;  %v4078_v55 = vld [vmem:[%s6973_s7 + $0x30] sm:$0xf] }
 0x1c0   : > { %v2081_v12 = vsel %vm2080_vm8, %v5540_v29, %v2077_v49  ;;  %v1661_v26 = vmul.f32 %v5567_v58, %v1660_v51  ;;  %vm1664_vm9 = vweird.f32 %v5567_v58  ;;  %v2088_v57 = vmul.f32 %v5584_v61, %v5550_v8 }
 0x1c1   : > { %4434 = vrcp.f32 %v5641_v13  ;;  %v2086_v29 = vsel %vm5647_vm7, %v2085_v53, %v2081_v12  ;;  %vm5678_vm10 = vcmp.eq.f32.partialorder %v1667_v56, 8.507059e+37  ;;  %v1846_v19 = vsub.f32 0.0, %v1777_v60  ;;  %vm1665_vm11 = vmor %vm1663_vm6, %vm1664_vm9 }
 0x1c2   : > { %2469 = vmatmul.f32.gmra.mxu0 %v2086_v29  ;;  %v1662_v3 = vadd.f32 %v5567_v58, %v1661_v26  ;;  %v1670_v35 = vor.u32 1.1754944e-38, %v1669_v59  ;;  %v2089_v42 = vsub.f32 1.0, %v2088_v57  ;;  %v2096_v4 = vand.u32 2147483647, %v5550_v8 }
 0x1c3   : > { %v5684_v5 = vpop.eup %4430  ;;  %v1891_v6 = vmul.f32 1.442695, %v1846_v19  ;;  %v2098_v7 = vand.u32 2147483648, %v5550_v8  ;;  %v4083_v9 = vor.u32 %v4228_v45, %v4080_v63  ;;  %v4087_v10 = vor.u32 %v4230_v0, %v4086_v46 }
 0x1c4   : > { %v1779_v52 = vpop.f32.mrf.mxu3  ;;  %v4433_v38 = vpop.eup %4432  ;;  %v1666_v20 = vsel %vm1665_vm11, %v5567_v58, %v1662_v3  ;;  %v2090_v54 = vmul.f32 %v5584_v61, %v2089_v42  ;;  %vm2093_vm12 = vweird.f32 %v5584_v61  ;;  %v1673_v14 = vmul.f32 %v5629_v37, %v5579_v31 }
 0x1c5   : > { %v5702_v15 = vadd.f32 1.0, %v4433_v38  ;;  %v1671_v58 = vsel %vm5678_vm10, %v1670_v35, %v1666_v20  ;;  %4436 = vpow2.f32 %v1891_v6  ;;  %vm2092_vm13 = vweird.f32 %v5550_v8  ;;  %3396 = vmatpush.bf16.msrb.mxu2 %v4083_v9  ;;  %3485 = vmatpush.bf16.msrb.mxu3 %v4087_v10 }
 0x1c6   : > { %1823 = vmatmul.f32.gmra.mxu3 %v1671_v58  ;;  %v2091_v21 = vadd.f32 %v5584_v61, %v2090_v54  ;;  %vm2097_vm14 = vcmp.eq.f32.partialorder %v2096_v4, 8.507059e+37  ;;  %v2099_v22 = vor.u32 1.1754944e-38, %v2098_v7  ;;  %v1674_v50 = vsub.f32 1.0, %v1673_v14  ;;  %vm2094_vm15 = vmor %vm2092_vm13, %vm2093_vm12  ;;  %v4225_v58 = vld [vmem:[%s6973_s7 + $0x1c] sm:$0xf] }
 0x1c7   : > { %v5708_v24 = vpop.eup %4434  ;;  %vm1678_vm0 = vweird.f32 %v5629_v37  ;;  %v1681_v28 = vand.u32 2147483647, %v5579_v31  ;;  %v1683_v30 = vand.u32 2147483648, %v5579_v31  ;;  %v4079_v8 = vor.u32 %v4229_v11, %v4078_v55 }
 0x1c8   : > { %v2095_v33 = vsel %vm2094_vm15, %v5584_v61, %v2091_v21  ;;  %v1675_v62 = vmul.f32 %v5629_v37, %v1674_v50  ;;  %v1780_v34 = vadd.f32 %v5610_v17, %v1779_v52  ;;  %v2102_v36 = vmul.f32 %v5651_v44, %v5594_v18  ;;  %v4068_v21 = vld [vmem:[%s6973_s7 + $0x24] sm:$0xf0]  ;;  %v4074_v50 = vld [vmem:[%s6973_s7 + $0x20] sm:$0xf] }
 0x1c9   : > { %4438 = vrcp.f32 %v5702_v15  ;;  %v2100_v1 = vsel %vm2097_vm14, %v2099_v22, %v2095_v33  ;;  %vm1677_vm1 = vweird.f32 %v5579_v31  ;;  %vm5722_vm2 = vcmp.eq.f32.partialorder %v1681_v28, 8.507059e+37  ;;  %3307 = vmatpush.bf16.msrb.mxu1 %v4079_v8  ;;  %v4227_v28 = vld [vmem:[%s6973_s7 + $0x28] sm:$0xf0] }
 0x1ca   : > { %2472 = vmatmul.f32.gmra.mxu0 %v2100_v1  ;;  %v1676_v61 = vadd.f32 %v5629_v37, %v1675_v62  ;;  %v1684_v40 = vor.u32 1.1754944e-38, %v1683_v30  ;;  %v1847_v27 = vsub.f32 0.0, %v1780_v34  ;;  %v2103_v41 = vsub.f32 1.0, %v2102_v36  ;;  %vm1679_vm3 = vmor %vm1677_vm1, %vm1678_vm0  ;;  %v4066_v36 = vld [vmem:[%s6973_s7 + $0x18] sm:$0xf] }
 0x1cb   : > { %v4437_v43 = vpop.eup %4436  ;;  %vm2107_vm4 = vweird.f32 %v5651_v44  ;;  %v2110_v32 = vand.u32 2147483647, %v5594_v18  ;;  %v2112_v31 = vand.u32 2147483648, %v5594_v18  ;;  %v1687_v47 = vmul.f32 %v5684_v5, %v5619_v25  ;;  %v4226_v1 = vld [vmem:[%s6973_s7 + $0x20] sm:$0xf0] }
 0x1cc   : > { %v1782_v48 = vpop.f32.mrf.mxu3  ;;  %v5734_v16 = vadd.f32 1.0, %v4437_v43  ;;  %v1680_v49 = vsel %vm1679_vm3, %v5629_v37, %v1676_v61  ;;  %v1893_v23 = vmul.f32 1.442695, %v1847_v27  ;;  %v2104_v51 = vmul.f32 %v5651_v44, %v2103_v41  ;;  %v4224_v61 = vld [vmem:[%s6973_s7 + $0x10] sm:$0xf0] }
 0x1cd   : > { %v1685_v53 = vsel %vm5722_vm2, %v1684_v40, %v1680_v49  ;;  %vm2106_vm5 = vweird.f32 %v5594_v18  ;;  %v2113_v56 = vor.u32 1.1754944e-38, %v2112_v31  ;;  %v1688_v59 = vsub.f32 1.0, %v1687_v47 }
 0x1ce   : > { %4440 = vrcp.f32 %v5734_v16  ;;  %1826 = vmatmul.f32.gmra.mxu3 %v1685_v53  ;;  %v2105_v60 = vadd.f32 %v5651_v44, %v2104_v51  ;;  %vm1692_vm6 = vweird.f32 %v5684_v5  ;;  %v1695_v45 = vand.u32 2147483647, %v5619_v25  ;;  %vm2108_vm7 = vmor %vm2106_vm5, %vm2107_vm4 }
 0x1cf   : > { %v5745_v37 = vpop.eup %4438  ;;  %4442 = vpow2.f32 %v1893_v23  ;;  %v1689_v12 = vmul.f32 %v5684_v5, %v1688_v59  ;;  %v1697_v18 = vand.u32 2147483648, %v5619_v25  ;;  %v1783_v26 = vadd.f32 %v5610_v17, %v1782_v48 }
 0x1d0   : > { %v2109_v57 = vsel %vm2108_vm7, %v5651_v44, %v2105_v60  ;;  %vm2111_vm8 = vcmp.eq.f32.partialorder %v2110_v32, 8.507059e+37  ;;  %v2116_v63 = vmul.f32 %v5708_v24, %v5641_v13  ;;  %vm1691_vm9 = vweird.f32 %v5619_v25 }
 0x1d1   : > { %v2114_v46 = vsel %vm2111_vm8, %v2113_v56, %v2109_v57  ;;  %v1690_v0 = vadd.f32 %v5684_v5, %v1689_v12  ;;  %v1848_v29 = vsub.f32 0.0, %v1783_v26  ;;  %vm1693_vm10 = vmor %vm1691_vm9, %vm1692_vm6  ;;  %vm1696_vm11 = vcmp.eq.f32.partialorder %v1695_v45, 8.507059e+37 }
 0x1d2   : > { %2475 = vmatmul.f32.gmra.mxu0 %v2114_v46  ;;  %v1698_v2 = vor.u32 1.1754944e-38, %v1697_v18  ;;  %v2117_v19 = vsub.f32 1.0, %v2116_v63  ;;  %v2124_v3 = vand.u32 2147483647, %v5641_v13  ;;  %v2126_v42 = vand.u32 2147483648, %v5641_v13 }
 0x1d3   : > { %v1694_v44 = vsel %vm1693_vm10, %v5684_v5, %v1690_v0  ;;  %v1895_v35 = vmul.f32 1.442695, %v1848_v29  ;;  %v2130_v6 = vmul.f32 %v5745_v37, %v5702_v15  ;;  %vm2121_vm12 = vweird.f32 %v5708_v24 }
 0x1d4   : > { %v1785_v4 = vpop.f32.mrf.mxu3  ;;  %v5764_v25 = vpop.eup %4440  ;;  %v1699_v7 = vsel %vm1696_vm11, %v1698_v2, %v1694_v44  ;;  %v2118_v9 = vmul.f32 %v5708_v24, %v2117_v19  ;;  %vm2120_vm13 = vweird.f32 %v5641_v13  ;;  %vm2125_vm14 = vcmp.eq.f32.partialorder %v2124_v3, 8.507059e+37 }
 0x1d5   : > { %v4443_v10 = vpop.eup %4442  ;;  %4444 = vpow2.f32 %v1895_v35  ;;  %v1786_v52 = vadd.f32 %v5610_v17, %v1785_v4  ;;  %v2131_v38 = vsub.f32 1.0, %v2130_v6  ;;  %vm2122_vm15 = vmor %vm2120_vm13, %vm2121_vm12  ;;  %v2127_v54 = vor.u32 1.1754944e-38, %v2126_v42 }
 0x1d6   : > { %v5769_v5 = vadd.f32 1.0, %v4443_v10  ;;  %1829 = vmatmul.f32.gmra.mxu3 %v1699_v7  ;;  %v2119_v20 = vadd.f32 %v5708_v24, %v2118_v9  ;;  %v2144_v11 = vmul.f32 %v5764_v25, %v5734_v16  ;;  %vm2135_vm0 = vweird.f32 %v5745_v37 }
 0x1d7   : > { %v1849_v14 = vsub.f32 0.0, %v1786_v52  ;;  %v2132_v55 = vmul.f32 %v5745_v37, %v2131_v38  ;;  %v2140_v22 = vand.u32 2147483648, %v5702_v15  ;;  %vm2134_vm1 = vweird.f32 %v5702_v15 }
 0x1d8   : > { %4446 = vrcp.f32 %v5769_v5  ;;  %v2123_v13 = vsel %vm2122_vm15, %v5708_v24, %v2119_v20  ;;  %v2145_v62 = vsub.f32 1.0, %v2144_v11  ;;  %v2138_v24 = vand.u32 2147483647, %v5702_v15  ;;  %vm5803_vm2 = vmor %vm2134_vm1, %vm2135_vm0 }
 0x1d9   : > { %v2128_v30 = vsel %vm2125_vm14, %v2127_v54, %v2123_v13  ;;  %v1897_v8 = vmul.f32 1.442695, %v1849_v14  ;;  %v2133_v33 = vadd.f32 %v5745_v37, %v2132_v55  ;;  %v4071_v34 = vor.u32 %v4225_v58, %v4068_v21  ;;  %v5845_v14 = vld [vmem:[%s6972_s6] ss:$0 sm:$0xff] }
 0x1da   : > { %2478 = vmatmul.f32.gmra.mxu0 %v2128_v30  ;;  %v4075_v27 = vor.u32 %v4227_v28, %v4074_v50  ;;  %v2146_v32 = vmul.f32 %v5764_v25, %v2145_v62  ;;  %v2141_v31 = vor.u32 1.1754944e-38, %v2140_v22  ;;  %v4067_v47 = vor.u32 %v4226_v1, %v4066_v36  ;;  %v4056_v62 = vld [vmem:[%s6973_s7 + $0xc] sm:$0xf0] }
 0x1db   : > { %v4445_v39 = vpop.eup %4444  ;;  %4448 = vpow2.f32 %v1897_v8  ;;  %v2137_v41 = vsel %vm5803_vm2, %v5745_v37, %v2133_v33  ;;  %3397 = vmatpush.bf16.msrb.mxu2 %v4071_v34  ;;  %vm2139_vm3 = vcmp.eq.f32.partialorder %v2138_v24, 8.507059e+37  ;;  %vm2149_vm4 = vweird.f32 %v5764_v25  ;;  %v4222_v33 = vld [vmem:[%s6973_s7 + $0x4] sm:$0xf]  ;;  %v4062_v24 = vld [vmem:[%s6973_s7 + $0x8] sm:$0xf] }
 0x1dc   : > { %v1788_v40 = vpop.f32.mrf.mxu3  ;;  %v5807_v15 = vadd.f32 1.0, %v4445_v39  ;;  %3486 = vmatpush.bf16.msrb.mxu3 %v4075_v27  ;;  %v2142_v23 = vsel %vm2139_vm3, %v2141_v31, %v2137_v41  ;;  %3308 = vmatpush.bf16.msrb.mxu1 %v4067_v47  ;;  %v2147_v56 = vadd.f32 %v5764_v25, %v2146_v32  ;;  %v2154_v60 = vand.u32 2147483648, %v5734_v16  ;;  %v4223_v32 = vld [vmem:[%s6973_s7 + $0x8] sm:$0xf0] }
 0x1dd   : > { %v1789_v43 = vadd.f32 %v5610_v17, %v1788_v40  ;;  %vm2148_vm5 = vweird.f32 %v5734_v16  ;;  %v2152_v12 = vand.u32 2147483647, %v5734_v16  ;;  %v2168_v4 = vand.u32 2147483648, %v5769_v5 }
 0x1de   : > { %v4447_v48 = vpop.eup %4446  ;;  %4450 = vrcp.f32 %v5807_v15  ;;  %vm2150_vm6 = vmor %vm2148_vm5, %vm2149_vm4  ;;  %v2155_v0 = vor.u32 1.1754944e-38, %v2154_v60  ;;  %vm2162_vm9 = vweird.f32 %v5769_v5  ;;  %v2180_v50 = vand.u32 2147483647, %v5807_v15 }
 0x1df   : > { %v1850_v49 = vsub.f32 0.0, %v1789_v43  ;;  %v2158_v51 = vmul.f32 %v4447_v48, %v5769_v5  ;;  %v2151_v57 = vsel %vm2150_vm6, %v5764_v25, %v2147_v56  ;;  %vm2153_vm7 = vcmp.eq.f32.partialorder %v2152_v12, 8.507059e+37  ;;  %v4054_v43 = vld [vmem:[%s6973_s7] sm:$0xf] }
 0x1e0   : > { %v2156_v19 = vsel %vm2153_vm7, %v2155_v0, %v2151_v57  ;;  %vm2163_vm8 = vweird.f32 %v4447_v48  ;;  %v2166_v25 = vand.u32 2147483647, %v5769_v5  ;;  %v2169_v20 = vor.u32 1.1754944e-38, %v2168_v4 }
 0x1e1   : > { %v1899_v53 = vmul.f32 1.442695, %v1850_v49  ;;  %v4449_v59 = vpop.eup %4448  ;;  %v2159_v45 = vsub.f32 1.0, %v2158_v51  ;;  %vm2164_vm10 = vmor %vm2162_vm9, %vm2163_vm8  ;;  %v2182_v28 = vand.u32 2147483648, %v5807_v15  ;;  %vm2176_vm13 = vweird.f32 %v5807_v15 }
 0x1e2   : > { %v5819_v37 = vadd.f32 1.0, %v4449_v59  ;;  %2481 = vmatmul.f32.gmra.mxu0 %v2142_v23  ;;  %vm2167_vm11 = vcmp.eq.f32.partialorder %v2166_v25, 8.507059e+37  ;;  %v4059_v39 = vor.u32 %v4222_v33, %v4056_v62  ;;  %v4063_v47 = vor.u32 %v4224_v61, %v4062_v24 }
 0x1e3   : > { %4452 = vpow2.f32 %v1899_v53  ;;  %v2160_v46 = vmul.f32 %v4447_v48, %v2159_v45  ;;  %v2183_v31 = vor.u32 1.1754944e-38, %v2182_v28  ;;  %vm2181_vm15 = vcmp.eq.f32.partialorder %v2180_v50, 8.507059e+37 }
 0x1e4   : > { %v1791_v18 = vpop.f32.mrf.mxu3  ;;  %v5823_v26 = vpop.eup %4450  ;;  %4454 = vrcp.f32 %v5819_v37  ;;  %3398 = vmatpush.bf16.msrb.mxu2 %v4059_v39  ;;  %3487 = vmatpush.bf16.msrb.mxu3 %v4063_v47  ;;  %vm2190_vm1 = vweird.f32 %v5819_v37  ;;  %v2194_v57 = vand.u32 2147483647, %v5819_v37 }
 0x1e5   : > { %v1792_v63 = vadd.f32 %v5610_v17, %v1791_v18  ;;  %v2172_v29 = vmul.f32 %v5823_v26, %v5807_v15  ;;  %v2161_v44 = vadd.f32 %v4447_v48, %v2160_v46  ;;  %vm2177_vm12 = vweird.f32 %v5823_v26 }
 0x1e6   : > { %vm5869_vm14 = vmor %vm2176_vm13, %vm2177_vm12  ;;  %v2196_v18 = vand.u32 2147483648, %v5819_v37  ;;  %vm2195_vm3 = vcmp.eq.f32.partialorder %v2194_v57, 8.507059e+37 }
 0x1e7   : > { %v1851_v2 = vsub.f32 0.0, %v1792_v63  ;;  %v2173_v35 = vsub.f32 1.0, %v2172_v29  ;;  %v2165_v9 = vsel %vm2164_vm10, %v4447_v48, %v2161_v44  ;;  %v4055_v48 = vor.u32 %v4223_v32, %v4054_v43 }
 0x1e8   : > { %v2170_v5 = vsel %vm2167_vm11, %v2169_v20, %v2165_v9 }
 0x1e9   : > { %v4453_v3 = vpop.eup %4452  ;;  %v1901_v16 = vmul.f32 1.442695, %v1851_v2  ;;  %v2174_v52 = vmul.f32 %v5823_v26, %v2173_v35  ;;  %3309 = vmatpush.bf16.msrb.mxu1 %v4055_v48 }
 0x1ea   : > { %v5830_v42 = vadd.f32 1.0, %v4453_v3  ;;  %v5833_v6 = vpop.eup %4454  ;;  %2484 = vmatmul.f32.gmra.mxu0 %v2156_v19  ;;  %v2197_v3 = vor.u32 1.1754944e-38, %v2196_v18 }
 0x1eb   : > { %4456 = vpow2.f32 %v1901_v16  ;;  %v2186_v38 = vmul.f32 %v5833_v6, %v5819_v37  ;;  %v2175_v58 = vadd.f32 %v5823_v26, %v2174_v52  ;;  %vm2191_vm0 = vweird.f32 %v5833_v6 }
 0x1ec   : > { %4458 = vrcp.f32 %v5830_v42  ;;  %v1794_v7 = vpop.f32.mrf.mxu3  ;;  %vm2192_vm2 = vmor %vm2190_vm1, %vm2191_vm0  ;;  %vm2204_vm5 = vweird.f32 %v5830_v42  ;;  %v2210_v9 = vand.u32 2147483648, %v5830_v42 }
 0x1ed   : > { %v1795_v10 = vadd.f32 %v5610_v17, %v1794_v7  ;;  %v2187_v21 = vsub.f32 1.0, %v2186_v38  ;;  %v2179_v40 = vsel %vm5869_vm14, %v5823_v26, %v2175_v58 }
 0x1ee   : > { %v2184_v51 = vsel %vm2181_vm15, %v2183_v31, %v2179_v40 }
 0x1ef   : > { %v1852_v54 = vsub.f32 0.0, %v1795_v10  ;;  %v2188_v41 = vmul.f32 %v5833_v6, %v2187_v21 }
 0x1f1   : > { %v4457_v55 = vpop.eup %4456  ;;  %v1903_v11 = vmul.f32 1.442695, %v1852_v54  ;;  %v2189_v60 = vadd.f32 %v5833_v6, %v2188_v41  ;;  %v2208_v54 = vand.u32 2147483647, %v5830_v42 }
 0x1f2   : > { %v5849_v13 = vpop.eup %4458  ;;  %v5851_v22 = vadd.f32 1.0, %v4457_v55  ;;  %v2446_v30 = vpop.f32.mrf.mxu0  ;;  %2487 = vmatmul.f32.gmra.mxu0 %v2170_v5 }
 0x1f3   : > { %4460 = vpow2.f32 %v1903_v11  ;;  %v2447_v8 = vadd.f32 %v5845_v14, %v2446_v30  ;;  %v2200_v1 = vmul.f32 %v5849_v13, %v5830_v42  ;;  %v2193_v0 = vsel %vm2192_vm2, %v5833_v6, %v2189_v60 }
 0x1f4   : > { %4462 = vrcp.f32 %v5851_v22  ;;  %v1797_v36 = vpop.f32.mrf.mxu3  ;;  %vm2205_vm4 = vweird.f32 %v5849_v13  ;;  %v2198_v4 = vsel %vm2195_vm3, %v2197_v3, %v2193_v0  ;;  %v2211_v11 = vor.u32 1.1754944e-38, %v2210_v9 }
 0x1f5   : > { %v2542_v27 = vsub.f32 0.0, %v2447_v8  ;;  %v1798_v15 = vadd.f32 %v5610_v17, %v1797_v36  ;;  %v2201_v53 = vsub.f32 1.0, %v2200_v1  ;;  %vm2206_vm6 = vmor %vm2204_vm5, %vm2205_vm4  ;;  %vm2209_vm7 = vcmp.eq.f32.partialorder %v2208_v54, 8.507059e+37 }
 0x1f6   : > { %v2222_v39 = vand.u32 2147483647, %v5851_v22  ;;  %vm2218_vm9 = vweird.f32 %v5851_v22 }
 0x1f7   : > { %v2574_v49 = vmul.f32 1.442695, %v2542_v27  ;;  %v1853_v23 = vsub.f32 0.0, %v1798_v15  ;;  %v2202_v46 = vmul.f32 %v5849_v13, %v2201_v53  ;;  %v2224_v15 = vand.u32 2147483648, %v5851_v22 }
 0x1f8   : > { %vm2223_vm11 = vcmp.eq.f32.partialorder %v2222_v39, 8.507059e+37 }
 0x1f9   : > { %v4461_v56 = vpop.eup %4460  ;;  %4464 = vpow2.f32 %v2574_v49  ;;  %v1905_v59 = vmul.f32 1.442695, %v1853_v23  ;;  %v2203_v7 = vadd.f32 %v5849_v13, %v2202_v46 }
 0x1fa   : > { %v5891_v45 = vpop.eup %4462  ;;  %v5893_v12 = vadd.f32 1.0, %v4461_v56  ;;  %v2449_v26 = vpop.f32.mrf.mxu0  ;;  %2490 = vmatmul.f32.gmra.mxu0 %v2184_v51 }
 0x1fb   : > { %4466 = vpow2.f32 %v1905_v59  ;;  %v2450_v63 = vadd.f32 %v5845_v14, %v2449_v26  ;;  %v2214_v19 = vmul.f32 %v5891_v45, %v5851_v22  ;;  %v2207_v5 = vsel %vm2206_vm6, %v5849_v13, %v2203_v7 }
 0x1fc   : > { %4468 = vrcp.f32 %v5893_v12  ;;  %v2212_v8 = vsel %vm2209_vm7, %v2211_v11, %v2207_v5  ;;  %vm2219_vm8 = vweird.f32 %v5891_v45  ;;  %v2236_v43 = vand.u32 2147483647, %v5893_v12 }
 0x1fd   : > { %v2543_v29 = vsub.f32 0.0, %v2450_v63  ;;  %v1800_v2 = vpop.f32.mrf.mxu3  ;;  %v2215_v10 = vsub.f32 1.0, %v2214_v19  ;;  %v2238_v32 = vand.u32 2147483648, %v5893_v12  ;;  %vm2220_vm10 = vmor %vm2218_vm9, %vm2219_vm8  ;;  %v2225_v22 = vor.u32 1.1754944e-38, %v2224_v15 }
 0x1fe   : > { %v1801_v16 = vadd.f32 %v5610_v17, %v1800_v2  ;;  %vm2232_vm12 = vweird.f32 %v5893_v12  ;;  %vm5953_vm14 = vcmp.eq.f32.partialorder %v2236_v43, 8.507059e+37 }
 0x1ff   : > { %v4465_v44 = vpop.eup %4464  ;;  %v2576_v37 = vmul.f32 1.442695, %v2543_v29  ;;  %v2216_v50 = vmul.f32 %v5891_v45, %v2215_v10  ;;  %v2239_v56 = vor.u32 1.1754944e-38, %v2238_v32 }
 0x200   : > { %v5906_v35 = vadd.f32 1.0, %v4465_v44  ;;  %v1854_v25 = vsub.f32 0.0, %v1801_v16 }
 0x201   : > { %v4467_v6 = vpop.eup %4466  ;;  %4470 = vpow2.f32 %v2576_v37  ;;  %v2217_v1 = vadd.f32 %v5891_v45, %v2216_v50 }
 0x202   : > { %v5911_v52 = vpop.eup %4468  ;;  %4472 = vrcp.f32 %v5906_v35  ;;  %v5914_v38 = vadd.f32 1.0, %v4467_v6  ;;  %v1907_v20 = vmul.f32 1.442695, %v1854_v25  ;;  %2493 = vmatmul.f32.gmra.mxu0 %v2198_v4  ;;  %vm2675_vm15 = vweird.f32 %v5906_v35 }
 0x203   : > { %v2228_v55 = vmul.f32 %v5911_v52, %v5893_v12  ;;  %v2221_v23 = vsel %vm2220_vm10, %v5891_v45, %v2217_v1  ;;  %vm2233_vm13 = vweird.f32 %v5911_v52  ;;  %v2679_v63 = vand.u32 2147483647, %v5906_v35 }
 0x204   : > { %4474 = vrcp.f32 %v5914_v38  ;;  %v2226_v60 = vsel %vm2223_vm11, %v2225_v22, %v2221_v23  ;;  %v2250_v2 = vand.u32 2147483647, %v5914_v38  ;;  %v2681_v16 = vand.u32 2147483648, %v5906_v35  ;;  %vm5978_vm2 = vmor %vm2232_vm12, %vm2233_vm13 }
 0x205   : > { %4476 = vpow2.f32 %v1907_v20  ;;  %v2452_v58 = vpop.f32.mrf.mxu0  ;;  %v1803_v21 = vpop.f32.mrf.mxu3  ;;  %v2229_v34 = vsub.f32 1.0, %v2228_v55  ;;  %vm2246_vm7 = vweird.f32 %v5914_v38  ;;  %vm2680_vm8 = vcmp.eq.f32.partialorder %v2679_v63, 8.507059e+37 }
 0x206   : > { %v2453_v42 = vadd.f32 %v5845_v14, %v2452_v58  ;;  %v1804_v28 = vadd.f32 %v5610_v17, %v1803_v21  ;;  %vm6027_vm11 = vcmp.eq.f32.partialorder %v2250_v2, 8.507059e+37 }
 0x207   : > { %v4471_v30 = vpop.eup %4470  ;;  %v2230_v49 = vmul.f32 %v5911_v52, %v2229_v34 }
 0x208   : > { %v5926_v33 = vpop.eup %4472  ;;  %v5928_v62 = vadd.f32 1.0, %v4471_v30  ;;  %v2544_v13 = vsub.f32 0.0, %v2453_v42  ;;  %v1855_v24 = vsub.f32 0.0, %v1804_v28 }
 0x209   : > { %v2671_v36 = vmul.f32 %v5926_v33, %v5906_v35  ;;  %v2231_v26 = vadd.f32 %v5911_v52, %v2230_v49  ;;  %vm2676_vm0 = vweird.f32 %v5926_v33 }
 0x20a   : > { %v5935_v61 = vpop.eup %4474  ;;  %4478 = vrcp.f32 %v5928_v62  ;;  %v2578_v40 = vmul.f32 1.442695, %v2544_v13  ;;  %v1909_v27 = vmul.f32 1.442695, %v1855_v24  ;;  %2496 = vmatmul.f32.gmra.mxu0 %v2212_v8  ;;  %vm2689_vm1 = vweird.f32 %v5928_v62  ;;  %vm6006_vm5 = vmor %vm2675_vm15, %vm2676_vm0 }
 0x20b   : > { %v4477_v41 = vpop.eup %4476  ;;  %v2242_v31 = vmul.f32 %v5935_v61, %v5914_v38  ;;  %v2672_v47 = vsub.f32 1.0, %v2671_v36  ;;  %v2235_v20 = vsel %vm5978_vm2, %v5911_v52, %v2231_v26  ;;  %v2693_v5 = vand.u32 2147483647, %v5928_v62 }
 0x20c   : > { %v5944_v48 = vadd.f32 1.0, %v4477_v41  ;;  %4480 = vpow2.f32 %v2578_v40  ;;  %v2695_v11 = vand.u32 2147483648, %v5928_v62  ;;  %v2240_v52 = vsel %vm5953_vm14, %v2239_v56, %v2235_v20 }
 0x20d   : > { %4482 = vpow2.f32 %v1909_v27  ;;  %v2243_v51 = vsub.f32 1.0, %v2242_v31  ;;  %v2673_v57 = vmul.f32 %v5926_v33, %v2672_v47  ;;  %vm2247_vm4 = vweird.f32 %v5935_v61 }
 0x20e   : > { %4484 = vrcp.f32 %v5944_v48  ;;  %v2252_v13 = vand.u32 2147483648, %v5914_v38  ;;  %v2682_v24 = vor.u32 1.1754944e-38, %v2681_v16  ;;  %v2696_v34 = vor.u32 1.1754944e-38, %v2695_v11  ;;  %vm6023_vm10 = vmor %vm2246_vm7, %vm2247_vm4 }
 0x20f   : > { %v2455_v45 = vpop.f32.mrf.mxu0  ;;  %v1806_v18 = vpop.f32.mrf.mxu3  ;;  %v2244_v3 = vmul.f32 %v5935_v61, %v2243_v51  ;;  %v2674_v54 = vadd.f32 %v5926_v33, %v2673_v57  ;;  %vm2694_vm9 = vcmp.eq.f32.partialorder %v2693_v5, 8.507059e+37  ;;  %v2264_v23 = vand.u32 2147483647, %v5944_v48 }
 0x210   : > { %v5958_v59 = vpop.eup %4478  ;;  %v2456_v0 = vadd.f32 %v5845_v14, %v2455_v45  ;;  %v1807_v29 = vadd.f32 %v5610_v17, %v1806_v18  ;;  %v2253_v49 = vor.u32 1.1754944e-38, %v2252_v13  ;;  %v2266_v45 = vand.u32 2147483648, %v5944_v48 }
 0x211   : > { %v2685_v46 = vmul.f32 %v5958_v59, %v5928_v62  ;;  %vm2690_vm3 = vweird.f32 %v5958_v59  ;;  %v2245_v50 = vadd.f32 %v5935_v61, %v2244_v3  ;;  %v2678_v30 = vsel %vm6006_vm5, %v5926_v33, %v2674_v54 }
 0x212   : > { %v4481_v19 = vpop.eup %4480  ;;  %2499 = vmatmul.f32.gmra.mxu0 %v2226_v60  ;;  %v2545_v25 = vsub.f32 0.0, %v2456_v0  ;;  %v1856_v7 = vsub.f32 0.0, %v1807_v29  ;;  %vm2691_vm6 = vmor %vm2689_vm1, %vm2690_vm3  ;;  %v2683_v40 = vsel %vm2680_vm8, %v2682_v24, %v2678_v30  ;;  %vm2260_vm13 = vweird.f32 %v5944_v48 }
 0x213   : > { %v4483_v44 = vpop.eup %4482  ;;  %v2686_v37 = vsub.f32 1.0, %v2685_v46  ;;  %v5972_v4 = vadd.f32 1.0, %v4481_v19  ;;  %v2249_v32 = vsel %vm6023_vm10, %v5935_v61, %v2245_v50  ;;  %vm6064_vm15 = vcmp.eq.f32.partialorder %v2264_v23, 8.507059e+37 }
 0x214   : > { %v5982_v9 = vpop.eup %4484  ;;  %v5984_v10 = vadd.f32 1.0, %v4483_v44  ;;  %v2580_v55 = vmul.f32 1.442695, %v2545_v25  ;;  %v1911_v12 = vmul.f32 1.442695, %v1856_v7  ;;  %v2254_v18 = vsel %vm6027_vm11, %v2253_v49, %v2249_v32 }
 0x215   : > { %4486 = vrcp.f32 %v5972_v4  ;;  %v2256_v58 = vmul.f32 %v5982_v9, %v5944_v48  ;;  %v2687_v21 = vmul.f32 %v5958_v59, %v2686_v37  ;;  %vm2261_vm12 = vweird.f32 %v5982_v9 }
 0x216   : > { %4488 = vrcp.f32 %v5984_v10  ;;  %vm6056_vm14 = vmor %vm2260_vm13, %vm2261_vm12  ;;  %v2278_v2 = vand.u32 2147483647, %v5984_v10  ;;  %v2267_v16 = vor.u32 1.1754944e-38, %v2266_v45  ;;  %vm2274_vm0 = vweird.f32 %v5984_v10 }
 0x217   : > { %4490 = vpow2.f32 %v2580_v55  ;;  %v2257_v28 = vsub.f32 1.0, %v2256_v58  ;;  %v2688_v8 = vadd.f32 %v5958_v59, %v2687_v21  ;;  %v2280_v37 = vand.u32 2147483648, %v5984_v10 }
 0x218   : > { %4492 = vpow2.f32 %v1911_v12  ;;  %vm2703_vm1 = vweird.f32 %v5972_v4  ;;  %v2707_v20 = vand.u32 2147483647, %v5972_v4  ;;  %v2709_v54 = vand.u32 2147483648, %v5972_v4 }
 0x219   : > { %v2692_v35 = vsel %vm2691_vm6, %v5958_v59, %v2688_v8  ;;  %v2258_v38 = vmul.f32 %v5982_v9, %v2257_v28  ;;  %vm6082_vm3 = vcmp.eq.f32.partialorder %v2278_v2, 8.507059e+37 }
 0x21a   : > { %2502 = vmatmul.f32.gmra.mxu0 %v2240_v52  ;;  %v2458_v1 = vpop.f32.mrf.mxu0  ;;  %v1809_v33 = vpop.f32.mrf.mxu3  ;;  %v2697_v27 = vsel %vm2694_vm9, %v2696_v34, %v2692_v35  ;;  %vm2708_vm9 = vcmp.eq.f32.partialorder %v2707_v20, 8.507059e+37 }
 0x21b   : > { %v6019_v36 = vpop.eup %4486  ;;  %v2459_v41 = vadd.f32 %v5845_v14, %v2458_v1  ;;  %v1810_v43 = vadd.f32 %v5610_v17, %v1809_v33  ;;  %v3118_v31 = vpack.c.bf16 %v2697_v27, %v2683_v40  ;;  %v2259_v26 = vadd.f32 %v5982_v9, %v2258_v38 }
 0x21c   : > { %v6032_v15 = vpop.eup %4488  ;;  %v2699_v51 = vmul.f32 %v6019_v36, %v5972_v4  ;;  %vm2704_vm4 = vweird.f32 %v6019_v36  ;;  %v2281_v27 = vor.u32 1.1754944e-38, %v2280_v37 }
 0x21d   : > { %v4491_v47 = vpop.eup %4490  ;;  %v2270_v22 = vmul.f32 %v6032_v15, %v5984_v10  ;;  %v2546_v59 = vsub.f32 0.0, %v2459_v41  ;;  %v1857_v60 = vsub.f32 0.0, %v1810_v43  ;;  %3310 = vmatmul.bf16.vlgmr.msrb.gmra.mxu1 %v3118_v31  ;;  %3399 = vmatmul.bf16.vlgmr.msrb.gmra.mxu2 %v3118_v31  ;;  %v2263_v19 = vsel %vm6056_vm14, %v5982_v9, %v2259_v26  ;;  %vm6115_vm7 = vmor %vm2703_vm1, %vm2704_vm4  ;;  %v6138_v26 = vld [vmem:[%s6970_s4] ss:$0 sm:$0xff] }
 0x21e   : > { %v4493_v53 = vpop.eup %4492  ;;  %v6044_v56 = vadd.f32 1.0, %v4491_v47  ;;  %3488 = vmatmul.bf16.vlgmr.msrb.gmra.mxu3 %v3118_v31  ;;  %v2700_v0 = vsub.f32 1.0, %v2699_v51  ;;  %vm2275_vm2 = vweird.f32 %v6032_v15  ;;  %v2268_v12 = vsel %vm6064_vm15, %v2267_v16, %v2263_v19 }
 0x21f   : > { %v6047_v61 = vadd.f32 1.0, %v4493_v53  ;;  %v2582_v57 = vmul.f32 1.442695, %v2546_v59  ;;  %v1913_v63 = vmul.f32 1.442695, %v1857_v60  ;;  %v2271_v46 = vsub.f32 1.0, %v2270_v22  ;;  %vm6103_vm5 = vmor %vm2274_vm0, %vm2275_vm2 }
 0x220   : > { %4494 = vrcp.f32 %v6044_v56  ;;  %v2701_v25 = vmul.f32 %v6019_v36, %v2700_v0  ;;  %v2721_v42 = vand.u32 2147483647, %v6044_v56  ;;  %v2723_v33 = vand.u32 2147483648, %v6044_v56 }
 0x221   : > { %4496 = vrcp.f32 %v6047_v61  ;;  %v2272_v44 = vmul.f32 %v6032_v15, %v2271_v46  ;;  %vm2717_vm8 = vweird.f32 %v6044_v56  ;;  %v2292_v4 = vand.u32 2147483647, %v6047_v61 }
 0x222   : > { %4498 = vpow2.f32 %v2582_v57  ;;  %2505 = vmatmul.f32.gmra.mxu0 %v2254_v18  ;;  %v2702_v13 = vadd.f32 %v6019_v36, %v2701_v25  ;;  %v2724_v31 = vor.u32 1.1754944e-38, %v2723_v33  ;;  %v2294_v47 = vand.u32 2147483648, %v6047_v61 }
 0x223   : > { %4500 = vpow2.f32 %v1913_v63  ;;  %v2273_v52 = vadd.f32 %v6032_v15, %v2272_v44  ;;  %vm2722_vm11 = vcmp.eq.f32.partialorder %v2721_v42, 8.507059e+37  ;;  %vm2288_vm13 = vweird.f32 %v6047_v61 }
 0x224   : > { %v1812_v48 = vpop.f32.mrf.mxu3  ;;  %v2706_v43 = vsel %vm6115_vm7, %v6019_v36, %v2702_v13  ;;  %vm6144_vm14 = vcmp.eq.f32.partialorder %v2292_v4, 8.507059e+37  ;;  %v2295_v2 = vor.u32 1.1754944e-38, %v2294_v47 }
 0x225   : > { %v2461_v6 = vpop.f32.mrf.mxu0  ;;  %v1813_v9 = vadd.f32 %v5610_v17, %v1812_v48  ;;  %v2277_v40 = vsel %vm6103_vm5, %v6032_v15, %v2273_v52  ;;  %v2710_v15 = vor.u32 1.1754944e-38, %v2709_v54 }
 0x226   : > { %v4495_v7 = vpop.eup %4494  ;;  %v2462_v55 = vadd.f32 %v5845_v14, %v2461_v6  ;;  %v2282_v22 = vsel %vm6082_vm3, %v2281_v27, %v2277_v40 }
 0x227   : > { %v6077_v5 = vpop.eup %4496  ;;  %v2713_v17 = vmul.f32 %v4495_v7, %v6044_v56  ;;  %v1858_v21 = vsub.f32 0.0, %v1813_v9  ;;  %vm2718_vm6 = vweird.f32 %v4495_v7  ;;  %v2711_v51 = vsel %vm2708_vm9, %v2710_v15, %v2706_v43 }
 0x228   : > { %v4499_v58 = vpop.eup %4498  ;;  %v2284_v50 = vmul.f32 %v6077_v5, %v6047_v61  ;;  %v2547_v8 = vsub.f32 0.0, %v2462_v55  ;;  %vm2719_vm10 = vmor %vm2717_vm8, %vm2718_vm6  ;;  %vm2289_vm12 = vweird.f32 %v6077_v5 }
 0x229   : > { %v4501_v28 = vpop.eup %4500  ;;  %v6092_v30 = vadd.f32 1.0, %v4499_v58  ;;  %v2714_v24 = vsub.f32 1.0, %v2713_v17  ;;  %v1915_v35 = vmul.f32 1.442695, %v1858_v21  ;;  %vm6154_vm15 = vmor %vm2288_vm13, %vm2289_vm12 }
 0x22a   : > { %v6095_v34 = vadd.f32 1.0, %v4501_v28  ;;  %v2285_v1 = vsub.f32 1.0, %v2284_v50  ;;  %v2584_v39 = vmul.f32 1.442695, %v2547_v8  ;;  %2508 = vmatmul.f32.gmra.mxu0 %v2268_v12 }
 0x22b   : > { %4502 = vrcp.f32 %v6092_v30  ;;  %v2715_v38 = vmul.f32 %v4495_v7, %v2714_v24  ;;  %v2735_v11 = vand.u32 2147483647, %v6092_v30  ;;  %v2737_v17 = vand.u32 2147483648, %v6092_v30 }
 0x22c   : > { %4504 = vrcp.f32 %v6095_v34  ;;  %v2286_v10 = vmul.f32 %v6077_v5, %v2285_v1  ;;  %v2306_v48 = vand.u32 2147483647, %v6095_v34  ;;  %v2308_v54 = vand.u32 2147483648, %v6095_v34 }
 0x22d   : > { %4506 = vpow2.f32 %v2584_v39  ;;  %v2716_v32 = vadd.f32 %v4495_v7, %v2715_v38  ;;  %vm2302_vm0 = vweird.f32 %v6095_v34  ;;  %vm2731_vm1 = vweird.f32 %v6092_v30 }
 0x22e   : > { %4508 = vpow2.f32 %v1915_v35  ;;  %v2287_v60 = vadd.f32 %v6077_v5, %v2286_v10  ;;  %vm6179_vm3 = vcmp.eq.f32.partialorder %v2306_v48, 8.507059e+37  ;;  %v2309_v24 = vor.u32 1.1754944e-38, %v2308_v54 }
 0x22f   : > { %v2720_v49 = vsel %vm2719_vm10, %v4495_v7, %v2716_v32  ;;  %v2464_v23 = vpop.f32.mrf.mxu0  ;;  %vm6185_vm5 = vcmp.eq.f32.partialorder %v2735_v11, 8.507059e+37  ;;  %v2738_v1 = vor.u32 1.1754944e-38, %v2737_v17 }
 0x230   : > { %v2725_v53 = vsel %vm2722_vm11, %v2724_v31, %v2720_v49  ;;  %v2465_v36 = vadd.f32 %v5845_v14, %v2464_v23  ;;  %v1815_v59 = vpop.f32.mrf.mxu3  ;;  %v2291_v6 = vsel %vm6154_vm15, %v6077_v5, %v2287_v60 }
 0x231   : > { %v6128_v56 = vpop.eup %4502  ;;  %v3119_v45 = vpack.c.bf16 %v2725_v53, %v2711_v51  ;;  %v1816_v57 = vadd.f32 %v6138_v26, %v1815_v59  ;;  %v2296_v5 = vsel %vm6144_vm14, %v2295_v2, %v2291_v6 }
 0x232   : > { %v6133_v18 = vpop.eup %4504  ;;  %v2727_v63 = vmul.f32 %v6128_v56, %v6092_v30  ;;  %v2548_v0 = vsub.f32 0.0, %v2465_v36  ;;  %2511 = vmatmul.f32.gmra.mxu0 %v2282_v22  ;;  %vm2732_vm4 = vweird.f32 %v6128_v56 }
 0x233   : > { %v4507_v46 = vpop.eup %4506  ;;  %3315 = vmatmul.bf16.gmra.mxu1 %v3119_v45  ;;  %v2298_v19 = vmul.f32 %v6133_v18, %v6095_v34  ;;  %v1859_v44 = vsub.f32 0.0, %v1816_v57  ;;  %3404 = vmatmul.bf16.gmra.mxu2 %v3119_v45  ;;  %vm2303_vm2 = vweird.f32 %v6133_v18  ;;  %vm6206_vm9 = vmor %vm2731_vm1, %vm2732_vm4 }
 0x234   : > { %v4509_v3 = vpop.eup %4508  ;;  %v6150_v16 = vadd.f32 1.0, %v4507_v46  ;;  %3493 = vmatmul.bf16.gmra.mxu3 %v3119_v45  ;;  %v2728_v37 = vsub.f32 1.0, %v2727_v63  ;;  %v2586_v7 = vmul.f32 1.442695, %v2548_v0  ;;  %vm6191_vm6 = vmor %vm2302_vm0, %vm2303_vm2 }
 0x235   : > { %v6159_v25 = vadd.f32 1.0, %v4509_v3  ;;  %v2299_v9 = vsub.f32 1.0, %v2298_v19  ;;  %v1917_v20 = vmul.f32 1.442695, %v1859_v44 }
 0x236   : > { %4510 = vrcp.f32 %v6150_v16  ;;  %v2729_v55 = vmul.f32 %v6128_v56, %v2728_v37  ;;  %vm2745_vm8 = vweird.f32 %v6150_v16  ;;  %v2749_v47 = vand.u32 2147483647, %v6150_v16 }
 0x237   : > { %4512 = vrcp.f32 %v6159_v25  ;;  %v2300_v12 = vmul.f32 %v6133_v18, %v2299_v9  ;;  %v2467_v58 = vpop.f32.mrf.mxu0  ;;  %vm2316_vm7 = vweird.f32 %v6159_v25  ;;  %v2320_v38 = vand.u32 2147483647, %v6159_v25 }
 0x238   : > { %4514 = vpow2.f32 %v2586_v7  ;;  %v2468_v21 = vadd.f32 %v5845_v14, %v2467_v58  ;;  %v1818_v52 = vpop.f32.mrf.mxu3  ;;  %v2730_v8 = vadd.f32 %v6128_v56, %v2729_v55  ;;  %v2322_v10 = vand.u32 2147483648, %v6159_v25 }
 0x239   : > { %4516 = vpow2.f32 %v1917_v20  ;;  %v2301_v50 = vadd.f32 %v6133_v18, %v2300_v12  ;;  %v1819_v42 = vadd.f32 %v6138_v26, %v1818_v52  ;;  %v2751_v22 = vand.u32 2147483648, %v6150_v16 }
 0x23a   : > { %v2549_v13 = vsub.f32 0.0, %v2468_v21  ;;  %2514 = vmatmul.f32.gmra.mxu0 %v2296_v5  ;;  %v2734_v4 = vsel %vm6206_vm9, %v6128_v56, %v2730_v8  ;;  %vm6226_vm12 = vcmp.eq.f32.partialorder %v2320_v38, 8.507059e+37  ;;  %v2323_v0 = vor.u32 1.1754944e-38, %v2322_v10 }
 0x23b   : > { %v1860_v39 = vsub.f32 0.0, %v1819_v42  ;;  %v2305_v41 = vsel %vm6191_vm6, %v6133_v18, %v2301_v50  ;;  %v2739_v19 = vsel %vm6185_vm5, %v2738_v1, %v2734_v4  ;;  %vm2750_vm14 = vcmp.eq.f32.partialorder %v2749_v47, 8.507059e+37 }
 0x23c   : > { %v4511_v33 = vpop.eup %4510  ;;  %v2588_v27 = vmul.f32 1.442695, %v2549_v13  ;;  %v2310_v36 = vsel %vm6179_vm3, %v2309_v24, %v2305_v41  ;;  %v2752_v3 = vor.u32 1.1754944e-38, %v2751_v22 }
 0x23d   : > { %v4513_v40 = vpop.eup %4512  ;;  %v2741_v43 = vmul.f32 %v4511_v33, %v6150_v16  ;;  %v1919_v15 = vmul.f32 1.442695, %v1860_v39  ;;  %vm2746_vm10 = vweird.f32 %v4511_v33 }
 0x23e   : > { %v4515_v32 = vpop.eup %4514  ;;  %v2312_v31 = vmul.f32 %v4513_v40, %v6159_v25  ;;  %4518 = vpow2.f32 %v2588_v27  ;;  %vm2317_vm11 = vweird.f32 %v4513_v40  ;;  %vm2747_vm13 = vmor %vm2745_vm8, %vm2746_vm10 }
 0x23f   : > { %v4517_v49 = vpop.eup %4516  ;;  %v6216_v23 = vadd.f32 1.0, %v4515_v32  ;;  %v2742_v30 = vsub.f32 1.0, %v2741_v43  ;;  %4520 = vpow2.f32 %v1919_v15  ;;  %v2470_v53 = vpop.f32.mrf.mxu0  ;;  %vm6238_vm15 = vmor %vm2316_vm7, %vm2317_vm11 }
 0x240   : > { %v6219_v51 = vadd.f32 1.0, %v4517_v49  ;;  %v2313_v59 = vsub.f32 1.0, %v2312_v31  ;;  %v2471_v56 = vadd.f32 %v5845_v14, %v2470_v53 }
 0x241   : > { %4522 = vrcp.f32 %v6216_v23  ;;  %v2743_v60 = vmul.f32 %v4511_v33, %v2742_v30  ;;  %v1821_v45 = vpop.f32.mrf.mxu3  ;;  %v2763_v17 = vand.u32 2147483647, %v6216_v23  ;;  %vm2759_vm0 = vweird.f32 %v6216_v23 }
 0x242   : > { %4524 = vrcp.f32 %v6219_v51  ;;  %v2314_v18 = vmul.f32 %v4513_v40, %v2313_v59  ;;  %v2550_v63 = vsub.f32 0.0, %v2471_v56  ;;  %v1822_v46 = vadd.f32 %v6138_v26, %v1821_v45  ;;  %2517 = vmatmul.f32.gmra.mxu0 %v2310_v36 }
 0x243   : > { %v2744_v29 = vadd.f32 %v4511_v33, %v2743_v60  ;;  %v2334_v6 = vand.u32 2147483647, %v6219_v51  ;;  %v2336_v55 = vand.u32 2147483648, %v6219_v51  ;;  %vm2330_vm1 = vweird.f32 %v6219_v51 }
 0x244   : > { %v2315_v2 = vadd.f32 %v4513_v40, %v2314_v18  ;;  %v4519_v44 = vpop.eup %4518  ;;  %v2590_v61 = vmul.f32 1.442695, %v2550_v63  ;;  %v1861_v48 = vsub.f32 0.0, %v1822_v46  ;;  %v2765_v35 = vand.u32 2147483648, %v6216_v23 }
 0x245   : > { %v2748_v7 = vsel %vm2747_vm13, %v4511_v33, %v2744_v29  ;;  %v4521_v9 = vpop.eup %4520  ;;  %v6243_v20 = vadd.f32 1.0, %v4519_v44  ;;  %vm6263_vm2 = vcmp.eq.f32.partialorder %v2334_v6, 8.507059e+37  ;;  %v2337_v24 = vor.u32 1.1754944e-38, %v2336_v55 }
 0x246   : > { %v2319_v16 = vsel %vm6238_vm15, %v4513_v40, %v2315_v2  ;;  %v2753_v54 = vsel %vm2750_vm14, %v2752_v3, %v2748_v7  ;;  %v6250_v11 = vadd.f32 1.0, %v4521_v9  ;;  %4526 = vpow2.f32 %v2590_v61 }
 0x247   : > { %v6248_v12 = vpop.eup %4522  ;;  %v1921_v25 = vmul.f32 1.442695, %v1861_v48  ;;  %4528 = vrcp.f32 %v6243_v20  ;;  %v2473_v5 = vpop.f32.mrf.mxu0  ;;  %v2324_v21 = vsel %vm6226_vm12, %v2323_v0, %v2319_v16  ;;  %v3120_v52 = vpack.c.bf16 %v2753_v54, %v2739_v19 }
 0x248   : > { %v4525_v58 = vpop.eup %4524  ;;  %v2755_v50 = vmul.f32 %v6248_v12, %v6216_v23  ;;  %4530 = vrcp.f32 %v6250_v11  ;;  %v2474_v42 = vadd.f32 %v5845_v14, %v2473_v5  ;;  %v2348_v38 = vand.u32 2147483647, %v6250_v11 }
 0x249   : > { %v2326_v28 = vmul.f32 %v4525_v58, %v6219_v51  ;;  %4532 = vpow2.f32 %v1921_v25  ;;  %v1824_v8 = vpop.f32.mrf.mxu3  ;;  %3320 = vmatmul.bf16.gmra.mxu1 %v3120_v52  ;;  %3409 = vmatmul.bf16.gmra.mxu2 %v3120_v52  ;;  %vm2331_vm3 = vweird.f32 %v4525_v58  ;;  %vm2760_vm4 = vweird.f32 %v6248_v12 }
 0x24a   : > { %v2551_v1 = vsub.f32 0.0, %v2474_v42  ;;  %v1825_v33 = vadd.f32 %v6138_v26, %v1824_v8  ;;  %2520 = vmatmul.f32.gmra.mxu0 %v2324_v21  ;;  %3498 = vmatmul.bf16.gmra.mxu3 %v3120_v52  ;;  %v2756_v62 = vsub.f32 1.0, %v2755_v50  ;;  %vm6271_vm5 = vcmp.eq.f32.partialorder %v2763_v17, 8.507059e+37  ;;  %vm2332_vm7 = vmor %vm2330_vm1, %vm2331_vm3 }
 0x24b   : > { %v2327_v39 = vsub.f32 1.0, %v2326_v28  ;;  %vm2344_vm6 = vweird.f32 %v6250_v11  ;;  %v2350_v31 = vand.u32 2147483648, %v6250_v11  ;;  %v2766_v4 = vor.u32 1.1754944e-38, %v2765_v35  ;;  %vm6303_vm9 = vmor %vm2759_vm0, %vm2760_vm4 }
 0x24c   : > { %v4527_v27 = vpop.eup %4526  ;;  %v2592_v41 = vmul.f32 1.442695, %v2551_v1  ;;  %v1862_v10 = vsub.f32 0.0, %v1825_v33  ;;  %v2757_v43 = vmul.f32 %v6248_v12, %v2756_v62  ;;  %v2777_v47 = vand.u32 2147483647, %v6243_v20 }
 0x24d   : > { %v2328_v34 = vmul.f32 %v4525_v58, %v2327_v39  ;;  %v6277_v32 = vpop.eup %4528  ;;  %v6279_v15 = vadd.f32 1.0, %v4527_v27  ;;  %vm6289_vm8 = vcmp.eq.f32.partialorder %v2348_v38, 8.507059e+37  ;;  %v2779_v18 = vand.u32 2147483648, %v6243_v20 }
 0x24e   : > { %v4531_v49 = vpop.eup %4530  ;;  %4534 = vpow2.f32 %v2592_v41  ;;  %v1923_v30 = vmul.f32 1.442695, %v1862_v10  ;;  %v2758_v53 = vadd.f32 %v6248_v12, %v2757_v43  ;;  %v2769_v45 = vmul.f32 %v6277_v32, %v6243_v20 }
 0x24f   : > { %v2329_v22 = vadd.f32 %v4525_v58, %v2328_v34  ;;  %v4533_v36 = vpop.eup %4532  ;;  %4536 = vrcp.f32 %v6279_v15  ;;  %v2476_v59 = vpop.f32.mrf.mxu0  ;;  %v2340_v56 = vmul.f32 %v4531_v49, %v6250_v11  ;;  %vm2345_vm10 = vweird.f32 %v4531_v49 }
 0x250   : > { %v6296_v57 = vadd.f32 1.0, %v4533_v36  ;;  %4538 = vpow2.f32 %v1923_v30  ;;  %v2477_v63 = vadd.f32 %v5845_v14, %v2476_v59  ;;  %v2762_v19 = vsel %vm6303_vm9, %v6248_v12, %v2758_v53  ;;  %vm6323_vm13 = vmor %vm2344_vm6, %vm2345_vm10 }
 0x251   : > { %v2333_v46 = vsel %vm2332_vm7, %v4525_v58, %v2329_v22  ;;  %v1827_v0 = vpop.f32.mrf.mxu3  ;;  %v2341_v2 = vsub.f32 1.0, %v2340_v56  ;;  %v2770_v3 = vsub.f32 1.0, %v2769_v45  ;;  %v2351_v48 = vor.u32 1.1754944e-38, %v2350_v31 }
 0x252   : > { %v2338_v29 = vsel %vm6263_vm2, %v2337_v24, %v2333_v46  ;;  %4540 = vrcp.f32 %v6296_v57  ;;  %v2552_v44 = vsub.f32 0.0, %v2477_v63  ;;  %v1828_v61 = vadd.f32 %v6138_v26, %v1827_v0 }
 0x253   : > { %2523 = vmatmul.f32.gmra.mxu0 %v2338_v29  ;;  %v2342_v23 = vmul.f32 %v4531_v49, %v2341_v2  ;;  %v2771_v37 = vmul.f32 %v6277_v32, %v2770_v3  ;;  %vm2774_vm11 = vweird.f32 %v6277_v32  ;;  %v2767_v16 = vsel %vm6271_vm5, %v2766_v4, %v2762_v19 }
 0x254   : > { %v4535_v7 = vpop.eup %4534  ;;  %v2594_v6 = vmul.f32 1.442695, %v2552_v44  ;;  %v1863_v9 = vsub.f32 0.0, %v1828_v61  ;;  %vm2773_vm12 = vweird.f32 %v6243_v20  ;;  %vm6328_vm14 = vcmp.eq.f32.partialorder %v2777_v47, 8.507059e+37 }
 0x255   : > { %v6319_v54 = vpop.eup %4536  ;;  %v2343_v55 = vadd.f32 %v4531_v49, %v2342_v23  ;;  %v2772_v25 = vadd.f32 %v6277_v32, %v2771_v37  ;;  %v2780_v58 = vor.u32 1.1754944e-38, %v2779_v18  ;;  %v6332_v21 = vadd.f32 1.0, %v4535_v7  ;;  %vm2775_vm15 = vmor %vm2773_vm12, %vm2774_vm11  ;;  %v6372_v18 = vld [vmem:[%s6972_s6] ss:$0 sm:$0xff] }
 0x256   : > { %v4539_v5 = vpop.eup %4538  ;;  %4542 = vpow2.f32 %v2594_v6  ;;  %v1925_v20 = vmul.f32 1.442695, %v1863_v9  ;;  %v2362_v11 = vand.u32 2147483647, %v6296_v57  ;;  %v2783_v8 = vmul.f32 %v6319_v54, %v6279_v15 }
 0x257   : > { %v6337_v52 = vadd.f32 1.0, %v4539_v5  ;;  %v2479_v50 = vpop.f32.mrf.mxu0  ;;  %v2347_v42 = vsel %vm6323_vm13, %v4531_v49, %v2343_v55  ;;  %v2776_v28 = vsel %vm2775_vm15, %v6277_v32, %v2772_v25  ;;  %v2364_v38 = vand.u32 2147483648, %v6296_v57 }
 0x258   : > { %v4541_v13 = vpop.eup %4540  ;;  %4544 = vpow2.f32 %v1925_v20  ;;  %v2480_v24 = vadd.f32 %v5845_v14, %v2479_v50  ;;  %v2352_v35 = vsel %vm6289_vm8, %v2351_v48, %v2347_v42  ;;  %v2781_v1 = vsel %vm6328_vm14, %v2780_v58, %v2776_v28 }
 0x259   : > { %4546 = vrcp.f32 %v6337_v52  ;;  %v1830_v33 = vpop.f32.mrf.mxu3  ;;  %v3121_v39 = vpack.c.bf16 %v2781_v1, %v2767_v16  ;;  %v2354_v62 = vmul.f32 %v4541_v13, %v6296_v57  ;;  %vm2358_vm0 = vweird.f32 %v6296_v57 }
 0x25a   : > { %4548 = vrcp.f32 %v6332_v21  ;;  %v2553_v40 = vsub.f32 0.0, %v2480_v24  ;;  %v1831_v27 = vadd.f32 %v6138_v26, %v1830_v33  ;;  %v2784_v43 = vsub.f32 1.0, %v2783_v8 }
 0x25b   : > { %2526 = vmatmul.f32.gmra.mxu0 %v2352_v35  ;;  %3325 = vmatmul.bf16.gmra.mxu1 %v3121_v39  ;;  %v2355_v14 = vsub.f32 1.0, %v2354_v62  ;;  %vm2359_vm1 = vweird.f32 %v4541_v13  ;;  %vm6355_vm2 = vcmp.eq.f32.partialorder %v2362_v11, 8.507059e+37  ;;  %v2365_v4 = vor.u32 1.1754944e-38, %v2364_v38 }
 0x25c   : > { %3414 = vmatmul.bf16.gmra.mxu2 %v3121_v39  ;;  %v4543_v41 = vpop.eup %4542  ;;  %v2596_v10 = vmul.f32 1.442695, %v2553_v40  ;;  %v1864_v34 = vsub.f32 0.0, %v1831_v27  ;;  %3503 = vmatmul.bf16.gmra.mxu3 %v3121_v39  ;;  %vm2372_vm3 = vweird.f32 %v6337_v52  ;;  %v2376_v49 = vand.u32 2147483647, %v6337_v52  ;;  %vm2360_vm4 = vmor %vm2358_vm0, %vm2359_vm1 }
 0x25d   : > { %v2356_v32 = vmul.f32 %v4541_v13, %v2355_v14  ;;  %v2785_v30 = vmul.f32 %v6319_v54, %v2784_v43  ;;  %v6362_v53 = vadd.f32 1.0, %v4543_v41  ;;  %v2378_v60 = vand.u32 2147483648, %v6337_v52 }
 0x25e   : > { %v4545_v47 = vpop.eup %4544  ;;  %4550 = vpow2.f32 %v2596_v10  ;;  %v1927_v26 = vmul.f32 1.442695, %v1864_v34  ;;  %vm2788_vm5 = vweird.f32 %v6319_v54  ;;  %v2791_v29 = vand.u32 2147483647, %v6279_v15 }
 0x25f   : > { %v4547_v22 = vpop.eup %4546  ;;  %v6364_v36 = vadd.f32 1.0, %v4545_v47  ;;  %v2482_v59 = vpop.f32.mrf.mxu0  ;;  %v2357_v56 = vadd.f32 %v4541_v13, %v2356_v32  ;;  %v2786_v0 = vadd.f32 %v6319_v54, %v2785_v30  ;;  %vm2787_vm6 = vweird.f32 %v6279_v15 }
 0x260   : > { %v6367_v45 = vpop.eup %4548  ;;  %4552 = vpow2.f32 %v1927_v26  ;;  %v2483_v63 = vadd.f32 %v6372_v18, %v2482_v59  ;;  %v2368_v46 = vmul.f32 %v4547_v22, %v6337_v52  ;;  %vm6386_vm7 = vcmp.eq.f32.partialorder %v2376_v49, 8.507059e+37  ;;  %vm6396_vm9 = vmor %vm2787_vm6, %vm2788_vm5 }
 0x261   : > { %4554 = vrcp.f32 %v6364_v36  ;;  %v2361_v51 = vsel %vm2360_vm4, %v4541_v13, %v2357_v56  ;;  %v2379_v44 = vor.u32 1.1754944e-38, %v2378_v60  ;;  %v2793_v61 = vand.u32 2147483648, %v6279_v15 }
 0x262   : > { %v2554_v2 = vsub.f32 0.0, %v2483_v63  ;;  %v2366_v19 = vsel %vm6355_vm2, %v2365_v4, %v2361_v51  ;;  %v2369_v3 = vsub.f32 1.0, %v2368_v46  ;;  %v2797_v23 = vmul.f32 %v6367_v45, %v6332_v21 }
 0x263   : > { %2529 = vmatmul.f32.gmra.mxu0 %v2366_v19  ;;  %4556 = vrcp.f32 %v6362_v53  ;;  %vm2373_vm8 = vweird.f32 %v4547_v22  ;;  %v2790_v15 = vsel %vm6396_vm9, %v6319_v54, %v2786_v0  ;;  %vm6405_vm10 = vcmp.eq.f32.partialorder %v2791_v29, 8.507059e+37 }
 0x264   : > { %v4551_v48 = vpop.eup %4550  ;;  %v2598_v37 = vmul.f32 1.442695, %v2554_v2  ;;  %v2370_v7 = vmul.f32 %v4547_v22, %v2369_v3  ;;  %v2798_v55 = vsub.f32 1.0, %v2797_v23  ;;  %vm2802_vm11 = vweird.f32 %v6367_v45  ;;  %vm2374_vm12 = vmor %vm2372_vm3, %vm2373_vm8 }
 0x265   : > { %v6400_v9 = vadd.f32 1.0, %v4551_v48  ;;  %v2807_v17 = vand.u32 2147483648, %v6332_v21  ;;  %v2794_v54 = vor.u32 1.1754944e-38, %v2793_v61  ;;  %v2805_v50 = vand.u32 2147483647, %v6332_v21 }
 0x266   : > { %v4553_v12 = vpop.eup %4552  ;;  %4558 = vpow2.f32 %v2598_v37  ;;  %v2371_v25 = vadd.f32 %v4547_v22, %v2370_v7  ;;  %v2799_v11 = vmul.f32 %v6367_v45, %v2798_v55  ;;  %vm2801_vm13 = vweird.f32 %v6332_v21 }
 0x267   : > { %v4555_v58 = vpop.eup %4554  ;;  %v6411_v5 = vadd.f32 1.0, %v4553_v12  ;;  %v2485_v20 = vpop.f32.mrf.mxu0  ;;  %4560 = vrcp.f32 %v6400_v9  ;;  %v2795_v1 = vsel %vm6405_vm10, %v2794_v54, %v2790_v15  ;;  %vm2803_vm14 = vmor %vm2801_vm13, %vm2802_vm11  ;;  %v2808_v33 = vor.u32 1.1754944e-38, %v2807_v17 }
 0x268   : > { %v2486_v42 = vadd.f32 %v6372_v18, %v2485_v20  ;;  %v2375_v28 = vsel %vm2374_vm12, %v4547_v22, %v2371_v25  ;;  %v2382_v8 = vmul.f32 %v4555_v58, %v6364_v36  ;;  %v2800_v52 = vadd.f32 %v6367_v45, %v2799_v11 }
 0x269   : > { %4562 = vrcp.f32 %v6411_v5  ;;  %v2380_v13 = vsel %vm6386_vm7, %v2379_v44, %v2375_v28  ;;  %v6425_v24 = vpop.eup %4556  ;;  %vm2806_vm15 = vcmp.eq.f32.partialorder %v2805_v50, 8.507059e+37  ;;  %vm2387_vm0 = vweird.f32 %v4555_v58 }
 0x26a   : > { %v2555_v35 = vsub.f32 0.0, %v2486_v42  ;;  %v2383_v39 = vsub.f32 1.0, %v2382_v8  ;;  %v2804_v62 = vsel %vm2803_vm14, %v6367_v45, %v2800_v52  ;;  %v2392_v38 = vand.u32 2147483648, %v6364_v36 }
 0x26b   : > { %2532 = vmatmul.f32.gmra.mxu0 %v2380_v13  ;;  %v2809_v27 = vsel %vm2806_vm15, %v2808_v33, %v2804_v62  ;;  %v2390_v41 = vand.u32 2147483647, %v6364_v36  ;;  %v2404_v43 = vand.u32 2147483647, %v6411_v5  ;;  %vm2386_vm1 = vweird.f32 %v6364_v36 }
 0x26c   : > { %v4559_v40 = vpop.eup %4558  ;;  %v2600_v21 = vmul.f32 1.442695, %v2555_v35  ;;  %v2384_v14 = vmul.f32 %v4555_v58, %v2383_v39  ;;  %v3122_v34 = vpack.c.bf16 %v2809_v27, %v2795_v1  ;;  %v2811_v4 = vmul.f32 %v6425_v24, %v6362_v53  ;;  %vm2388_vm2 = vmor %vm2386_vm1, %vm2387_vm0 }
 0x26d   : > { %v6434_v10 = vadd.f32 1.0, %v4559_v40  ;;  %v6437_v32 = vpop.eup %4560  ;;  %v2393_v49 = vor.u32 1.1754944e-38, %v2392_v38  ;;  %vm2400_vm3 = vweird.f32 %v6411_v5  ;;  %vm2391_vm4 = vcmp.eq.f32.partialorder %v2390_v41, 8.507059e+37 }
 0x26e   : > { %4564 = vpow2.f32 %v2600_v21  ;;  %v2385_v31 = vadd.f32 %v4555_v58, %v2384_v14  ;;  %3330 = vmatmul.bf16.gmra.mxu1 %v3122_v34  ;;  %3419 = vmatmul.bf16.gmra.mxu2 %v3122_v34  ;;  %vm6447_vm5 = vcmp.eq.f32.partialorder %v2404_v43, 8.507059e+37  ;;  %v2406_v60 = vand.u32 2147483648, %v6411_v5 }
 0x26f   : > { %v4563_v47 = vpop.eup %4562  ;;  %4566 = vrcp.f32 %v6434_v10  ;;  %v2488_v26 = vpop.f32.mrf.mxu0  ;;  %3508 = vmatmul.bf16.gmra.mxu3 %v3122_v34  ;;  %v2812_v45 = vsub.f32 1.0, %v2811_v4  ;;  %vm2815_vm6 = vweird.f32 %v6362_v53  ;;  %v2825_v51 = vmul.f32 %v6437_v32, %v6400_v9 }
 0x270   : > { %v2489_v30 = vadd.f32 %v6372_v18, %v2488_v26  ;;  %v2389_v22 = vsel %vm2388_vm2, %v4555_v58, %v2385_v31  ;;  %v2396_v36 = vmul.f32 %v4563_v47, %v6411_v5  ;;  %vm2816_vm7 = vweird.f32 %v6425_v24 }
 0x271   : > { %v2394_v59 = vsel %vm2391_vm4, %v2393_v49, %v2389_v22  ;;  %v2813_v0 = vmul.f32 %v6425_v24, %v2812_v45  ;;  %v2819_v29 = vand.u32 2147483647, %v6362_v53  ;;  %v2821_v2 = vand.u32 2147483648, %v6362_v53  ;;  %vm6470_vm10 = vmor %vm2815_vm6, %vm2816_vm7 }
 0x272   : > { %v2556_v63 = vsub.f32 0.0, %v2489_v30  ;;  %v2397_v46 = vsub.f32 1.0, %v2396_v36  ;;  %vm2401_vm8 = vweird.f32 %v4563_v47  ;;  %v2826_v44 = vsub.f32 1.0, %v2825_v51 }
 0x273   : > { %2535 = vmatmul.f32.gmra.mxu0 %v2394_v59  ;;  %v2814_v48 = vadd.f32 %v6425_v24, %v2813_v0  ;;  %vm2830_vm9 = vweird.f32 %v6437_v32  ;;  %v2835_v37 = vand.u32 2147483648, %v6400_v9  ;;  %v2833_v16 = vand.u32 2147483647, %v6400_v9  ;;  %vm2402_vm11 = vmor %vm2400_vm3, %vm2401_vm8 }
 0x274   : > { %v4565_v19 = vpop.eup %4564  ;;  %v2602_v3 = vmul.f32 1.442695, %v2556_v63  ;;  %v2398_v57 = vmul.f32 %v4563_v47, %v2397_v46  ;;  %v2827_v15 = vmul.f32 %v6437_v32, %v2826_v44  ;;  %v2407_v12 = vor.u32 1.1754944e-38, %v2406_v60 }
 0x275   : > { %v6459_v61 = vpop.eup %4566  ;;  %v6461_v23 = vadd.f32 1.0, %v4565_v19  ;;  %vm2829_vm12 = vweird.f32 %v6400_v9  ;;  %v2818_v58 = vsel %vm6470_vm10, %v6425_v24, %v2814_v48  ;;  %v2822_v5 = vor.u32 1.1754944e-38, %v2821_v2 }
 0x276   : > { %4568 = vpow2.f32 %v2602_v3  ;;  %v2399_v7 = vadd.f32 %v4563_v47, %v2398_v57  ;;  %v2839_v53 = vmul.f32 %v6459_v61, %v6434_v10  ;;  %v2828_v20 = vadd.f32 %v6437_v32, %v2827_v15  ;;  %vm2831_vm13 = vmor %vm2829_vm12, %vm2830_vm9 }
 0x277   : > { %4570 = vrcp.f32 %v6461_v23  ;;  %v2491_v55 = vpop.f32.mrf.mxu0  ;;  %v2836_v9 = vor.u32 1.1754944e-38, %v2835_v37  ;;  %vm2820_vm14 = vcmp.eq.f32.partialorder %v2819_v29, 8.507059e+37  ;;  %vm2834_vm15 = vcmp.eq.f32.partialorder %v2833_v16, 8.507059e+37 }
 0x278   : > { %v2492_v25 = vadd.f32 %v6372_v18, %v2491_v55  ;;  %v2403_v17 = vsel %vm2402_vm11, %v4563_v47, %v2399_v7  ;;  %v2832_v50 = vsel %vm2831_vm13, %v6437_v32, %v2828_v20  ;;  %v2823_v42 = vsel %vm2820_vm14, %v2822_v5, %v2818_v58 }
 0x279   : > { %v2408_v54 = vsel %vm6447_vm5, %v2407_v12, %v2403_v17  ;;  %v2837_v28 = vsel %vm2834_vm15, %v2836_v9, %v2832_v50  ;;  %v2840_v8 = vsub.f32 1.0, %v2839_v53  ;;  %v2863_v14 = vand.u32 2147483648, %v6461_v23 }
 0x27a   : > { %v2557_v11 = vsub.f32 0.0, %v2492_v25  ;;  %v3123_v24 = vpack.c.bf16 %v2837_v28, %v2823_v42  ;;  %vm2844_vm1 = vweird.f32 %v6459_v61  ;;  %v2861_v34 = vand.u32 2147483647, %v6461_v23 }
 0x27b   : > { %2538 = vmatmul.f32.gmra.mxu0 %v2408_v54  ;;  %v2841_v62 = vmul.f32 %v6459_v61, %v2840_v8  ;;  %v2849_v31 = vand.u32 2147483648, %v6434_v10  ;;  %vm2857_vm2 = vweird.f32 %v6461_v23  ;;  %vm2843_vm3 = vweird.f32 %v6434_v10 }
 0x27c   : > { %v4569_v13 = vpop.eup %4568  ;;  %v2604_v52 = vmul.f32 1.442695, %v2557_v11  ;;  %v2847_v49 = vand.u32 2147483647, %v6434_v10  ;;  %vm2845_vm5 = vmor %vm2843_vm3, %vm2844_vm1  ;;  %v2864_v22 = vor.u32 1.1754944e-38, %v2863_v14  ;;  %vm2862_vm6 = vcmp.eq.f32.partialorder %v2861_v34, 8.507059e+37 }
 0x27d   : > { %v4571_v35 = vpop.eup %4570  ;;  %v6492_v1 = vadd.f32 1.0, %v4569_v13  ;;  %v2842_v41 = vadd.f32 %v6459_v61, %v2841_v62  ;;  %v2850_v45 = vor.u32 1.1754944e-38, %v2849_v31 }
 0x27e   : > { %4572 = vpow2.f32 %v2604_v52  ;;  %v2853_v33 = vmul.f32 %v4571_v35, %v6461_v23  ;;  %3335 = vmatmul.bf16.gmra.mxu1 %v3123_v24  ;;  %3424 = vmatmul.bf16.gmra.mxu2 %v3123_v24  ;;  %vm2858_vm0 = vweird.f32 %v4571_v35  ;;  %vm2848_vm7 = vcmp.eq.f32.partialorder %v2847_v49, 8.507059e+37 }
 0x27f   : > { %4574 = vrcp.f32 %v6492_v1  ;;  %v2494_v39 = vpop.f32.mrf.mxu0  ;;  %3513 = vmatmul.bf16.gmra.mxu3 %v3123_v24  ;;  %vm2859_vm4 = vmor %vm2857_vm2, %vm2858_vm0  ;;  %v2846_v59 = vsel %vm2845_vm5, %v6459_v61, %v2842_v41  ;;  %v2877_v53 = vand.u32 2147483648, %v6492_v1  ;;  %vm2871_vm11 = vweird.f32 %v6492_v1  ;;  %v3166_v24 = vld [vmem:[%s6974_s8] sm:$0x7] }
 0x280   : > { %v2495_v38 = vadd.f32 %v6372_v18, %v2494_v39  ;;  %v2854_v40 = vsub.f32 1.0, %v2853_v33  ;;  %v2851_v10 = vsel %vm2848_vm7, %v2850_v45, %v2846_v59  ;;  %v2875_v20 = vand.u32 2147483647, %v6492_v1 }
 0x281   : > { %v2878_v28 = vor.u32 1.1754944e-38, %v2877_v53  ;;  %v6541_v41 = vperm.slane %v3166_v24, 2 }
 0x282   : > { %v2558_v21 = vsub.f32 0.0, %v2495_v38  ;;  %v2855_v27 = vmul.f32 %v4571_v35, %v2854_v40  ;;  %vm2876_vm15 = vcmp.eq.f32.partialorder %v2875_v20, 8.507059e+37 }
 0x284   : > { %v4573_v43 = vpop.eup %4572  ;;  %v2606_v32 = vmul.f32 1.442695, %v2558_v21  ;;  %v2856_v4 = vadd.f32 %v4571_v35, %v2855_v27  ;;  %v6536_v21 = vperm.slane %v3166_v24, 0  ;;  %v6538_v27 = vperm.slane %v3166_v24, 1 }
 0x285   : > { %v6504_v47 = vpop.eup %4574  ;;  %v2653_v26 = vadd.f32 1.0, %v4573_v43 }
 0x286   : > { %4576 = vpow2.f32 %v2606_v32  ;;  %v2860_v30 = vsel %vm2859_vm4, %v4571_v35, %v2856_v4  ;;  %v2867_v56 = vmul.f32 %v6504_v47, %v6492_v1  ;;  %vm2872_vm9 = vweird.f32 %v6504_v47 }
 0x287   : > { %4578 = vrcp.f32 %v2653_v26  ;;  %v2497_v36 = vpop.f32.mrf.mxu0  ;;  %v2865_v63 = vsel %vm2862_vm6, %v2864_v22, %v2860_v30  ;;  %v2891_v6 = vand.u32 2147483648, %v2653_v26  ;;  %v2889_v16 = vand.u32 2147483647, %v2653_v26  ;;  %vm2873_vm13 = vmor %vm2871_vm11, %vm2872_vm9 }
 0x288   : > { %v2498_v60 = vadd.f32 %v6372_v18, %v2497_v36  ;;  %v3124_v51 = vpack.c.bf16 %v2865_v63, %v2851_v10  ;;  %v2868_v0 = vsub.f32 1.0, %v2867_v56  ;;  %vm2885_vm10 = vweird.f32 %v2653_v26 }
 0x289   : > { %v2892_v5 = vor.u32 1.1754944e-38, %v2891_v6  ;;  %vm2890_vm14 = vcmp.eq.f32.partialorder %v2889_v16, 8.507059e+37 }
 0x28a   : > { %v2559_v46 = vsub.f32 0.0, %v2498_v60  ;;  %v2869_v61 = vmul.f32 %v6504_v47, %v2868_v0 }
 0x28c   : > { %v4577_v29 = vpop.eup %4576  ;;  %v2608_v2 = vmul.f32 1.442695, %v2559_v46  ;;  %v2870_v15 = vadd.f32 %v6504_v47, %v2869_v61 }
 0x28d   : > { %v4579_v19 = vpop.eup %4578  ;;  %v6512_v3 = vadd.f32 1.0, %v4577_v29 }
 0x28e   : > { %4580 = vpow2.f32 %v2608_v2  ;;  %v2881_v57 = vmul.f32 %v4579_v19, %v2653_v26  ;;  %3340 = vmatmul.bf16.gmra.mxu1 %v3124_v51  ;;  %3429 = vmatmul.bf16.gmra.mxu2 %v3124_v51  ;;  %vm2886_vm8 = vweird.f32 %v4579_v19  ;;  %v2874_v11 = vsel %vm2873_vm13, %v6504_v47, %v2870_v15 }
 0x28f   : > { %4582 = vrcp.f32 %v6512_v3  ;;  %v2500_v44 = vpop.f32.mrf.mxu0  ;;  %3518 = vmatmul.bf16.gmra.mxu3 %v3124_v51  ;;  %vm2887_vm12 = vmor %vm2885_vm10, %vm2886_vm8  ;;  %v2879_v52 = vsel %vm2876_vm15, %v2878_v28, %v2874_v11  ;;  %v2905_v26 = vand.u32 2147483648, %v6512_v3  ;;  %vm2899_vm3 = vweird.f32 %v6512_v3 }
 0x290   : > { %v2501_v23 = vadd.f32 %v6372_v18, %v2500_v44  ;;  %v2882_v48 = vsub.f32 1.0, %v2881_v57 }
 0x291   : > { %v2906_v15 = vor.u32 1.1754944e-38, %v2905_v26 }
 0x292   : > { %v2560_v37 = vsub.f32 0.0, %v2501_v23  ;;  %v2883_v7 = vmul.f32 %v4579_v19, %v2882_v48 }
 0x294   : > { %v4581_v55 = vpop.eup %4580  ;;  %v2610_v12 = vmul.f32 1.442695, %v2560_v37  ;;  %v2884_v25 = vadd.f32 %v4579_v19, %v2883_v7 }
 0x295   : > { %v6520_v17 = vpop.eup %4582  ;;  %v6522_v58 = vadd.f32 1.0, %v4581_v55 }
 0x296   : > { %4584 = vpow2.f32 %v2610_v12  ;;  %v2888_v54 = vsel %vm2887_vm12, %v4579_v19, %v2884_v25  ;;  %v2895_v50 = vmul.f32 %v6520_v17, %v6512_v3  ;;  %vm2900_vm1 = vweird.f32 %v6520_v17 }
 0x297   : > { %4586 = vrcp.f32 %v6522_v58  ;;  %v2503_v9 = vpop.f32.mrf.mxu0  ;;  %v2893_v8 = vsel %vm2890_vm14, %v2892_v5, %v2888_v54  ;;  %v2919_v49 = vand.u32 2147483648, %v6522_v58  ;;  %v2917_v45 = vand.u32 2147483647, %v6522_v58  ;;  %vm6576_vm5 = vmor %vm2899_vm3, %vm2900_vm1 }
 0x298   : > { %v2504_v42 = vadd.f32 %v6372_v18, %v2503_v9  ;;  %v3125_v35 = vpack.c.bf16 %v2893_v8, %v2879_v52  ;;  %v2896_v1 = vsub.f32 1.0, %v2895_v50  ;;  %vm2913_vm2 = vweird.f32 %v6522_v58 }
 0x299   : > { %v2903_v19 = vand.u32 2147483647, %v6512_v3  ;;  %v2920_v23 = vor.u32 1.1754944e-38, %v2919_v49  ;;  %vm2918_vm6 = vcmp.eq.f32.partialorder %v2917_v45, 8.507059e+37 }
 0x29a   : > { %v2561_v13 = vsub.f32 0.0, %v2504_v42  ;;  %v3311_v62 = vpop.f32.mrf.mxu1  ;;  %v2897_v43 = vmul.f32 %v6520_v17, %v2896_v1 }
 0x29b   : > { %v3312_v47 = vadd.f32 %v3311_v62, %v6536_v21  ;;  %vm2904_vm7 = vcmp.eq.f32.partialorder %v2903_v19, 8.507059e+37 }
 0x29c   : > { %v4585_v33 = vpop.eup %4584  ;;  %v2612_v39 = vmul.f32 1.442695, %v2561_v13  ;;  %v2898_v60 = vadd.f32 %v6520_v17, %v2897_v43 }
 0x29d   : > { %v4587_v38 = vpop.eup %4586  ;;  %v6534_v40 = vadd.f32 1.0, %v4585_v33 }
 0x29e   : > { %4588 = vpow2.f32 %v2612_v39  ;;  %v2909_v14 = vmul.f32 %v4587_v38, %v6522_v58  ;;  %3345 = vmatmul.bf16.gmra.mxu1 %v3125_v35  ;;  %3434 = vmatmul.bf16.gmra.mxu2 %v3125_v35  ;;  %vm2914_vm0 = vweird.f32 %v4587_v38  ;;  %v2902_v7 = vsel %vm6576_vm5, %v6520_v17, %v2898_v60 }
 0x29f   : > { %4590 = vrcp.f32 %v6534_v40  ;;  %v2506_v34 = vpop.f32.mrf.mxu0  ;;  %3523 = vmatmul.bf16.gmra.mxu3 %v3125_v35  ;;  %vm6569_vm4 = vmor %vm2913_vm2, %vm2914_vm0  ;;  %v2907_v20 = vsel %vm2904_vm7, %v2906_v15, %v2902_v7  ;;  %vm2927_vm10 = vweird.f32 %v6534_v40 }
 0x2a0   : > { %v2507_v32 = vadd.f32 %v6372_v18, %v2506_v34  ;;  %v2910_v31 = vsub.f32 1.0, %v2909_v14  ;;  %v3400_v4 = vpop.f32.mrf.mxu2 }
 0x2a1   : > { %v3401_v30 = vadd.f32 %v3400_v4, %v6538_v27  ;;  %v3489_v22 = vpop.f32.mrf.mxu3  ;;  %v2933_v4 = vand.u32 2147483648, %v6534_v40 }
 0x2a2   : > { %v2562_v36 = vsub.f32 0.0, %v2507_v32  ;;  %v2911_v59 = vmul.f32 %v4587_v38, %v2910_v31  ;;  %v3490_v56 = vadd.f32 %v3489_v22, %v6541_v41  ;;  %v3313_v48 = vpop.f32.mrf.mxu1 }
 0x2a3   : > { %v3569_v63 = vpack.c.bf16 %v3401_v30, %v3312_v47  ;;  %v3314_v12 = vadd.f32 %v3313_v48, %v6536_v21  ;;  %v2931_v30 = vand.u32 2147483647, %v6534_v40 }
 0x2a4   : > { %v4589_v46 = vpop.eup %4588  ;;  %v2614_v10 = vmul.f32 1.442695, %v2562_v36  ;;  %v2912_v51 = vadd.f32 %v4587_v38, %v2911_v59  ;;  %v3570_v0 = vpack.c.bf16 %v3490_v56, %v3490_v56 }
 0x2a5   : > { %v6562_v29 = vpop.eup %4590  ;;  %v6564_v2 = vadd.f32 1.0, %v4589_v46  ;;  %3633 = vst [vmem:[%s6555_s11] sm:$0xff] %v3569_v63  ;;  %vm2932_vm15 = vcmp.eq.f32.partialorder %v2931_v30, 8.507059e+37 }
 0x2a6   : > { %4592 = vpow2.f32 %v2614_v10  ;;  %v2916_v61 = vsel %vm6569_vm4, %v4587_v38, %v2912_v51  ;;  %3634 = vst [vmem:[%s6555_s11 + $0x8] sm:$0xf] %v3570_v0  ;;  %v2923_v3 = vmul.f32 %v6562_v29, %v6534_v40  ;;  %vm2928_vm8 = vweird.f32 %v6562_v29 }
 0x2a7   : > { %4594 = vrcp.f32 %v6564_v2  ;;  %v2509_v37 = vpop.f32.mrf.mxu0  ;;  %v2921_v16 = vsel %vm2918_vm6, %v2920_v23, %v2916_v61  ;;  %v2945_v39 = vand.u32 2147483647, %v6564_v2  ;;  %v2947_v62 = vand.u32 2147483648, %v6564_v2  ;;  %vm6606_vm11 = vmor %vm2927_vm10, %vm2928_vm8 }
 0x2a8   : > { %v2510_v6 = vadd.f32 %v6372_v18, %v2509_v37  ;;  %v3402_v55 = vpop.f32.mrf.mxu2  ;;  %v2924_v5 = vsub.f32 1.0, %v2923_v3  ;;  %v3126_v17 = vpack.c.bf16 %v2921_v16, %v2907_v20  ;;  %vm2941_vm12 = vweird.f32 %v6564_v2 }
 0x2a9   : > { %v3403_v53 = vadd.f32 %v3402_v55, %v6538_v27  ;;  %v3491_v25 = vpop.f32.mrf.mxu3  ;;  %vm2946_vm14 = vcmp.eq.f32.partialorder %v2945_v39, 8.507059e+37  ;;  %v2948_v36 = vor.u32 1.1754944e-38, %v2947_v62 }
 0x2aa   : > { %v2563_v58 = vsub.f32 0.0, %v2510_v6  ;;  %v3492_v54 = vadd.f32 %v3491_v25, %v6541_v41  ;;  %v2925_v13 = vmul.f32 %v6562_v29, %v2924_v5 }
 0x2ab   : > { %v3571_v9 = vpack.c.bf16 %v3403_v53, %v3314_v12 }
 0x2ac   : > { %v4593_v11 = vpop.eup %4592  ;;  %v2616_v50 = vmul.f32 1.442695, %v2563_v58  ;;  %v3572_v42 = vpack.c.bf16 %v3492_v54, %v3492_v54  ;;  %v2926_v14 = vadd.f32 %v6562_v29, %v2925_v13 }
 0x2ad   : > { %v4595_v28 = vpop.eup %4594  ;;  %v6593_v8 = vadd.f32 1.0, %v4593_v11  ;;  %3635 = vst [vmem:[%s6555_s11 + $0xc] sm:$0xff] %v3571_v9 }
 0x2ae   : > { %4596 = vpow2.f32 %v2616_v50  ;;  %3636 = vst [vmem:[%s6555_s11 + $0x14] sm:$0xf] %v3572_v42  ;;  %v2937_v52 = vmul.f32 %v4595_v28, %v6564_v2  ;;  %3350 = vmatmul.bf16.gmra.mxu1 %v3126_v17  ;;  %3439 = vmatmul.bf16.gmra.mxu2 %v3126_v17  ;;  %vm2942_vm9 = vweird.f32 %v4595_v28  ;;  %v2930_v56 = vsel %vm6606_vm11, %v6562_v29, %v2926_v14 }
 0x2af   : > { %4598 = vrcp.f32 %v6593_v8  ;;  %v2512_v24 = vpop.f32.mrf.mxu0  ;;  %3528 = vmatmul.bf16.gmra.mxu3 %v3126_v17  ;;  %vm6617_vm13 = vmor %vm2941_vm12, %vm2942_vm9  ;;  %v2934_v29 = vor.u32 1.1754944e-38, %v2933_v4  ;;  %vm2955_vm3 = vweird.f32 %v6593_v8 }
 0x2b0   : > { %v2513_v35 = vadd.f32 %v6372_v18, %v2512_v24  ;;  %v2938_v1 = vsub.f32 1.0, %v2937_v52  ;;  %v3316_v33 = vpop.f32.mrf.mxu1 }
 0x2b1   : > { %v3317_v59 = vadd.f32 %v3316_v33, %v6536_v21  ;;  %v2935_v61 = vsel %vm2932_vm15, %v2934_v29, %v2930_v56 }
 0x2b2   : > { %v2564_v38 = vsub.f32 0.0, %v2513_v35  ;;  %v2939_v34 = vmul.f32 %v4595_v28, %v2938_v1  ;;  %v2961_v1 = vand.u32 2147483648, %v6593_v8 }
 0x2b4   : > { %v4597_v43 = vpop.eup %4596  ;;  %v2618_v32 = vmul.f32 1.442695, %v2564_v38  ;;  %v2940_v47 = vadd.f32 %v4595_v28, %v2939_v34  ;;  %v2959_v38 = vand.u32 2147483647, %v6593_v8 }
 0x2b5   : > { %v6612_v26 = vpop.eup %4598  ;;  %v6614_v49 = vadd.f32 1.0, %v4597_v43 }
 0x2b6   : > { %4600 = vpow2.f32 %v2618_v32  ;;  %v2944_v60 = vsel %vm6617_vm13, %v4595_v28, %v2940_v47  ;;  %v3405_v45 = vpop.f32.mrf.mxu2  ;;  %v2951_v51 = vmul.f32 %v6612_v26, %v6593_v8  ;;  %vm2956_vm1 = vweird.f32 %v6612_v26 }
 0x2b7   : > { %v3494_v63 = vpop.f32.mrf.mxu3  ;;  %4602 = vrcp.f32 %v6614_v49  ;;  %v2515_v40 = vpop.f32.mrf.mxu0  ;;  %v3406_v46 = vadd.f32 %v3405_v45, %v6538_v27  ;;  %v2949_v2 = vsel %vm2946_vm14, %v2948_v36, %v2944_v60  ;;  %v2975_v28 = vand.u32 2147483648, %v6614_v49  ;;  %vm2957_vm5 = vmor %vm2955_vm3, %vm2956_vm1 }
 0x2b8   : > { %v3495_v10 = vadd.f32 %v3494_v63, %v6541_v41  ;;  %v2516_v0 = vadd.f32 %v6372_v18, %v2515_v40  ;;  %v3127_v23 = vpack.c.bf16 %v2949_v2, %v2935_v61  ;;  %v3318_v48 = vpop.f32.mrf.mxu1  ;;  %v2952_v3 = vsub.f32 1.0, %v2951_v51 }
 0x2b9   : > { %v3573_v19 = vpack.c.bf16 %v3406_v46, %v3317_v59  ;;  %v3319_v16 = vadd.f32 %v3318_v48, %v6536_v21  ;;  %v2973_v52 = vand.u32 2147483647, %v6614_v49  ;;  %vm2969_vm2 = vweird.f32 %v6614_v49 }
 0x2ba   : > { %v3574_v57 = vpack.c.bf16 %v3495_v10, %v3495_v10  ;;  %v2565_v44 = vsub.f32 0.0, %v2516_v0  ;;  %v2953_v54 = vmul.f32 %v6612_v26, %v2952_v3  ;;  %v2976_v43 = vor.u32 1.1754944e-38, %v2975_v28 }
 0x2bb   : > { %3637 = vst [vmem:[%s6555_s11 + $0x18] sm:$0xff] %v3573_v19  ;;  %vm2974_vm6 = vcmp.eq.f32.partialorder %v2973_v52, 8.507059e+37  ;;  %v2962_v47 = vor.u32 1.1754944e-38, %v2961_v1  ;;  %vm2960_vm7 = vcmp.eq.f32.partialorder %v2959_v38, 8.507059e+37 }
 0x2bc   : > { %v4601_v37 = vpop.eup %4600  ;;  %v2620_v7 = vmul.f32 1.442695, %v2565_v44  ;;  %3638 = vst [vmem:[%s6555_s11 + $0x20] sm:$0xf] %v3574_v57  ;;  %v2954_v13 = vadd.f32 %v6612_v26, %v2953_v54 }
 0x2bd   : > { %v4603_v6 = vpop.eup %4602  ;;  %v6635_v15 = vadd.f32 1.0, %v4601_v37 }
 0x2be   : > { %4604 = vpow2.f32 %v2620_v7  ;;  %v3407_v55 = vpop.f32.mrf.mxu2  ;;  %v2965_v53 = vmul.f32 %v4603_v6, %v6614_v49  ;;  %3355 = vmatmul.bf16.gmra.mxu1 %v3127_v23  ;;  %3444 = vmatmul.bf16.gmra.mxu2 %v3127_v23  ;;  %vm2970_vm0 = vweird.f32 %v4603_v6  ;;  %v2958_v31 = vsel %vm2957_vm5, %v6612_v26, %v2954_v13 }
 0x2bf   : > { %v3496_v12 = vpop.f32.mrf.mxu3  ;;  %4606 = vrcp.f32 %v6635_v15  ;;  %v2518_v25 = vpop.f32.mrf.mxu0  ;;  %v3408_v58 = vadd.f32 %v3407_v55, %v6538_v27  ;;  %3533 = vmatmul.bf16.gmra.mxu3 %v3127_v23  ;;  %vm2971_vm4 = vmor %vm2969_vm2, %vm2970_vm0  ;;  %v2963_v22 = vsel %vm2960_vm7, %v2962_v47, %v2958_v31  ;;  %vm2983_vm8 = vweird.f32 %v6635_v15 }
 0x2c0   : > { %v3497_v20 = vadd.f32 %v3496_v12, %v6541_v41  ;;  %v2519_v5 = vadd.f32 %v6372_v18, %v2518_v25  ;;  %v2966_v17 = vsub.f32 1.0, %v2965_v53  ;;  %v2989_v25 = vand.u32 2147483648, %v6635_v15 }
 0x2c1   : > { %v3575_v9 = vpack.c.bf16 %v3408_v58, %v3319_v16 }
 0x2c2   : > { %v3576_v11 = vpack.c.bf16 %v3497_v20, %v3497_v20  ;;  %v2566_v50 = vsub.f32 0.0, %v2519_v5  ;;  %v2967_v42 = vmul.f32 %v4603_v6, %v2966_v17  ;;  %v2990_v38 = vor.u32 1.1754944e-38, %v2989_v25 }
 0x2c3   : > { %3639 = vst [vmem:[%s6555_s11 + $0x24] sm:$0xff] %v3575_v9 }
 0x2c4   : > { %v4605_v24 = vpop.eup %4604  ;;  %v2622_v35 = vmul.f32 1.442695, %v2566_v50  ;;  %3640 = vst [vmem:[%s6555_s11 + $0x2c] sm:$0xf] %v3576_v11  ;;  %v2968_v33 = vadd.f32 %v4603_v6, %v2967_v42 }
 0x2c5   : > { %v6652_v39 = vpop.eup %4606  ;;  %v6654_v62 = vadd.f32 1.0, %v4605_v24 }
 0x2c6   : > { %4608 = vpow2.f32 %v2622_v35  ;;  %v3321_v14 = vpop.f32.mrf.mxu1  ;;  %v2972_v34 = vsel %vm2971_vm4, %v4603_v6, %v2968_v33  ;;  %v2979_v4 = vmul.f32 %v6652_v39, %v6635_v15  ;;  %vm2984_vm10 = vweird.f32 %v6652_v39 }
 0x2c7   : > { %4610 = vrcp.f32 %v6654_v62  ;;  %v2521_v32 = vpop.f32.mrf.mxu0  ;;  %v2977_v49 = vsel %vm2974_vm6, %v2976_v43, %v2972_v34  ;;  %v3322_v26 = vadd.f32 %v3321_v14, %v6536_v21  ;;  %v3003_v48 = vand.u32 2147483648, %v6654_v62  ;;  %vm6701_vm13 = vmor %vm2983_vm8, %vm2984_vm10 }
 0x2c8   : > { %v2522_v8 = vadd.f32 %v6372_v18, %v2521_v32  ;;  %v3128_v36 = vpack.c.bf16 %v2977_v49, %v2963_v22  ;;  %v2980_v59 = vsub.f32 1.0, %v2979_v4  ;;  %v2987_v6 = vand.u32 2147483647, %v6635_v15 }
 0x2c9   : > { %v3001_v16 = vand.u32 2147483647, %v6654_v62  ;;  %vm2997_vm11 = vweird.f32 %v6654_v62  ;;  %v3004_v50 = vor.u32 1.1754944e-38, %v3003_v48 }
 0x2ca   : > { %v2567_v30 = vsub.f32 0.0, %v2522_v8  ;;  %v2981_v57 = vmul.f32 %v6652_v39, %v2980_v59  ;;  %vm2988_vm15 = vcmp.eq.f32.partialorder %v2987_v6, 8.507059e+37 }
 0x2cb   : > { %vm3002_vm14 = vcmp.eq.f32.partialorder %v3001_v16, 8.507059e+37 }
 0x2cc   : > { %v4609_v56 = vpop.eup %4608  ;;  %v2624_v60 = vmul.f32 1.442695, %v2567_v30  ;;  %v3410_v45 = vpop.f32.mrf.mxu2  ;;  %v2982_v7 = vadd.f32 %v6652_v39, %v2981_v57 }
 0x2cd   : > { %v4611_v63 = vpop.eup %4610  ;;  %v6666_v40 = vadd.f32 1.0, %v4609_v56  ;;  %v3411_v46 = vadd.f32 %v3410_v45, %v6538_v27  ;;  %v3499_v10 = vpop.f32.mrf.mxu3 }
 0x2ce   : > { %4612 = vpow2.f32 %v2624_v60  ;;  %v3500_v51 = vadd.f32 %v3499_v10, %v6541_v41  ;;  %v3323_v0 = vpop.f32.mrf.mxu1  ;;  %v2993_v29 = vmul.f32 %v4611_v63, %v6654_v62  ;;  %3360 = vmatmul.bf16.gmra.mxu1 %v3128_v36  ;;  %3449 = vmatmul.bf16.gmra.mxu2 %v3128_v36  ;;  %vm2998_vm9 = vweird.f32 %v4611_v63 }
 0x2cf   : > { %4614 = vrcp.f32 %v6666_v40  ;;  %v3577_v2 = vpack.c.bf16 %v3411_v46, %v3322_v26  ;;  %3538 = vmatmul.bf16.gmra.mxu3 %v3128_v36  ;;  %v3324_v5 = vadd.f32 %v3323_v0, %v6536_v21  ;;  %vm6692_vm12 = vmor %vm2997_vm11, %vm2998_vm9  ;;  %v2986_v1 = vsel %vm6701_vm13, %v6652_v39, %v2982_v7 }
 0x2d0   : > { %v2524_v19 = vpop.f32.mrf.mxu0  ;;  %v3578_v44 = vpack.c.bf16 %v3500_v51, %v3500_v51  ;;  %v2994_v23 = vsub.f32 1.0, %v2993_v29  ;;  %v2991_v43 = vsel %vm2988_vm15, %v2990_v38, %v2986_v1  ;;  %vm3011_vm2 = vweird.f32 %v6666_v40 }
 0x2d1   : > { %v2525_v61 = vadd.f32 %v6372_v18, %v2524_v19  ;;  %3641 = vst [vmem:[%s6555_s11 + $0x30] sm:$0xff] %v3577_v2  ;;  %v3015_v7 = vand.u32 2147483647, %v6666_v40 }
 0x2d2   : > { %3642 = vst [vmem:[%s6555_s11 + $0x38] sm:$0xf] %v3578_v44  ;;  %v2995_v37 = vmul.f32 %v4611_v63, %v2994_v23 }
 0x2d3   : > { %v2568_v3 = vsub.f32 0.0, %v2525_v61  ;;  %v3017_v61 = vand.u32 2147483648, %v6666_v40  ;;  %vm3016_vm7 = vcmp.eq.f32.partialorder %v3015_v7, 8.507059e+37 }
 0x2d4   : > { %v4613_v55 = vpop.eup %4612  ;;  %v3412_v53 = vpop.f32.mrf.mxu2  ;;  %v2996_v58 = vadd.f32 %v4611_v63, %v2995_v37 }
 0x2d5   : > { %v2626_v12 = vmul.f32 1.442695, %v2568_v3  ;;  %v6685_v20 = vpop.eup %4614  ;;  %v6687_v54 = vadd.f32 1.0, %v4613_v55  ;;  %v3413_v17 = vadd.f32 %v3412_v53, %v6538_v27  ;;  %v3501_v9 = vpop.f32.mrf.mxu3 }
 0x2d6   : > { %v3502_v42 = vadd.f32 %v3501_v9, %v6541_v41  ;;  %v3000_v13 = vsel %vm6692_vm12, %v4611_v63, %v2996_v58  ;;  %v3007_v52 = vmul.f32 %v6685_v20, %v6666_v40  ;;  %vm3012_vm0 = vweird.f32 %v6685_v20 }
 0x2d7   : > { %4616 = vpow2.f32 %v2626_v12  ;;  %v3579_v24 = vpack.c.bf16 %v3413_v17, %v3324_v5  ;;  %v3005_v14 = vsel %vm3002_vm14, %v3004_v50, %v3000_v13  ;;  %v3029_v10 = vand.u32 2147483647, %v6687_v54  ;;  %vm6734_vm3 = vmor %vm3011_vm2, %vm3012_vm0  ;;  %v6763_v50 = vld [vmem:[%s6972_s6] ss:$0 sm:$0xff] }
 0x2d8   : > { %4618 = vrcp.f32 %v6687_v54  ;;  %v2527_v35 = vpop.f32.mrf.mxu0  ;;  %v3580_v15 = vpack.c.bf16 %v3502_v42, %v3502_v42  ;;  %v3326_v62 = vpop.f32.mrf.mxu1  ;;  %v3008_v32 = vsub.f32 1.0, %v3007_v52  ;;  %v3129_v31 = vpack.c.bf16 %v3005_v14, %v2991_v43 }
 0x2d9   : > { %v2528_v33 = vadd.f32 %v6372_v18, %v2527_v35  ;;  %3643 = vst [vmem:[%s6555_s11 + $0x3c] sm:$0xff] %v3579_v24  ;;  %v3327_v36 = vadd.f32 %v3326_v62, %v6536_v21  ;;  %v3031_v51 = vand.u32 2147483648, %v6687_v54  ;;  %vm3025_vm4 = vweird.f32 %v6687_v54 }
 0x2da   : > { %3644 = vst [vmem:[%s6555_s11 + $0x44] sm:$0xf] %v3580_v15  ;;  %v3009_v30 = vmul.f32 %v6685_v20, %v3008_v32  ;;  %vm3030_vm6 = vcmp.eq.f32.partialorder %v3029_v10, 8.507059e+37  ;;  %v3018_v17 = vor.u32 1.1754944e-38, %v3017_v61 }
 0x2db   : > { %v2569_v34 = vsub.f32 0.0, %v2528_v33  ;;  %v3032_v53 = vor.u32 1.1754944e-38, %v3031_v51 }
 0x2dc   : > { %v3010_v2 = vadd.f32 %v6685_v20, %v3009_v30 }
 0x2dd   : > { %v4617_v4 = vpop.eup %4616  ;;  %v2628_v8 = vmul.f32 1.442695, %v2569_v34 }
 0x2de   : > { %v4619_v47 = vpop.eup %4618  ;;  %v6716_v49 = vadd.f32 1.0, %v4617_v4  ;;  %3365 = vmatmul.bf16.gmra.mxu1 %v3129_v31  ;;  %3454 = vmatmul.bf16.gmra.mxu2 %v3129_v31  ;;  %v3014_v55 = vsel %vm6734_vm3, %v6685_v20, %v3010_v2 }
 0x2df   : > { %4620 = vpow2.f32 %v2628_v8  ;;  %v3415_v39 = vpop.f32.mrf.mxu2  ;;  %v3021_v22 = vmul.f32 %v4619_v47, %v6687_v54  ;;  %v3504_v56 = vpop.f32.mrf.mxu3  ;;  %3543 = vmatmul.bf16.gmra.mxu3 %v3129_v31  ;;  %vm3026_vm1 = vweird.f32 %v4619_v47  ;;  %v3019_v13 = vsel %vm3016_vm7, %v3018_v17, %v3014_v55 }
 0x2e0   : > { %4622 = vrcp.f32 %v6716_v49  ;;  %v3416_v59 = vadd.f32 %v3415_v39, %v6538_v27  ;;  %v3505_v60 = vadd.f32 %v3504_v56, %v6541_v41  ;;  %v2530_v45 = vpop.f32.mrf.mxu0  ;;  %v3328_v29 = vpop.f32.mrf.mxu1  ;;  %vm6745_vm5 = vmor %vm3025_vm4, %vm3026_vm1  ;;  %vm3039_vm11 = vweird.f32 %v6716_v49 }
 0x2e1   : > { %v3022_v63 = vsub.f32 1.0, %v3021_v22  ;;  %v2531_v46 = vadd.f32 %v6372_v18, %v2530_v45  ;;  %v3329_v25 = vadd.f32 %v3328_v29, %v6536_v21 }
 0x2e2   : > { %v3581_v26 = vpack.c.bf16 %v3416_v59, %v3327_v36  ;;  %v3582_v0 = vpack.c.bf16 %v3505_v60, %v3505_v60 }
 0x2e3   : > { %v3023_v19 = vmul.f32 %v4619_v47, %v3022_v63  ;;  %v2570_v57 = vsub.f32 0.0, %v2531_v46  ;;  %v3045_v63 = vand.u32 2147483648, %v6716_v49 }
 0x2e4   : > { %3645 = vst [vmem:[%s6555_s11 + $0x48] sm:$0xff] %v3581_v26 }
 0x2e5   : > { %v4621_v44 = vpop.eup %4620  ;;  %3646 = vst [vmem:[%s6555_s11 + $0x50] sm:$0xf] %v3582_v0  ;;  %v3024_v23 = vadd.f32 %v4619_v47, %v3023_v19  ;;  %v2630_v37 = vmul.f32 1.442695, %v2570_v57  ;;  %v3043_v0 = vand.u32 2147483647, %v6716_v49 }
 0x2e6   : > { %v6740_v48 = vpop.eup %4622  ;;  %v6742_v3 = vadd.f32 1.0, %v4621_v44 }
 0x2e7   : > { %v3417_v16 = vpop.f32.mrf.mxu2  ;;  %v3028_v12 = vsel %vm6745_vm5, %v4619_v47, %v3024_v23  ;;  %v3506_v58 = vpop.f32.mrf.mxu3  ;;  %v3035_v54 = vmul.f32 %v6740_v48, %v6716_v49  ;;  %vm3040_vm8 = vweird.f32 %v6740_v48  ;;  %vm3044_vm15 = vcmp.eq.f32.partialorder %v3043_v0, 8.507059e+37 }
 0x2e8   : > { %4624 = vrcp.f32 %v6742_v3  ;;  %v3418_v40 = vadd.f32 %v3417_v16, %v6538_v27  ;;  %v3507_v20 = vadd.f32 %v3506_v58, %v6541_v41  ;;  %v2533_v5 = vpop.f32.mrf.mxu0  ;;  %v3033_v9 = vsel %vm3030_vm6, %v3032_v53, %v3028_v12  ;;  %vm6794_vm13 = vmor %vm3039_vm11, %vm3040_vm8 }
 0x2e9   : > { %4626 = vpow2.f32 %v2630_v37  ;;  %v2534_v42 = vadd.f32 %v6763_v50, %v2533_v5  ;;  %v3130_v24 = vpack.c.bf16 %v3033_v9, %v3019_v13  ;;  %v3036_v35 = vsub.f32 1.0, %v3035_v54 }
 0x2ea   : > { %v3583_v11 = vpack.c.bf16 %v3418_v40, %v3329_v25  ;;  %v3584_v28 = vpack.c.bf16 %v3507_v20, %v3507_v20  ;;  %v3057_v47 = vand.u32 2147483647, %v6742_v3  ;;  %v3059_v39 = vand.u32 2147483648, %v6742_v3 }
 0x2eb   : > { %v2571_v52 = vsub.f32 0.0, %v2534_v42  ;;  %v3331_v1 = vpop.f32.mrf.mxu1  ;;  %v3037_v34 = vmul.f32 %v6740_v48, %v3036_v35  ;;  %vm3053_vm10 = vweird.f32 %v6742_v3 }
 0x2ec   : > { %3647 = vst [vmem:[%s6555_s11 + $0x54] sm:$0xff] %v3583_v11  ;;  %v3332_v30 = vadd.f32 %v3331_v1, %v6536_v21  ;;  %v3060_v18 = vor.u32 1.1754944e-38, %v3059_v39  ;;  %vm3058_vm14 = vcmp.eq.f32.partialorder %v3057_v47, 8.507059e+37 }
 0x2ed   : > { %3648 = vst [vmem:[%s6555_s11 + $0x5c] sm:$0xf] %v3584_v28  ;;  %v2632_v33 = vmul.f32 1.442695, %v2571_v52  ;;  %v3038_v56 = vadd.f32 %v6740_v48, %v3037_v34 }
 0x2ee   : > { %v4625_v15 = vpop.eup %4624  ;;  %3370 = vmatmul.bf16.gmra.mxu1 %v3130_v24  ;;  %3459 = vmatmul.bf16.gmra.mxu2 %v3130_v24 }
 0x2ef   : > { %v4627_v62 = vpop.eup %4626  ;;  %v3049_v38 = vmul.f32 %v4625_v15, %v6742_v3  ;;  %4628 = vpow2.f32 %v2632_v33  ;;  %3548 = vmatmul.bf16.gmra.mxu3 %v3130_v24  ;;  %vm3054_vm9 = vweird.f32 %v4625_v15  ;;  %v3042_v49 = vsel %vm6794_vm13, %v6740_v48, %v3038_v56 }
 0x2f0   : > { %v6769_v14 = vadd.f32 1.0, %v4627_v62  ;;  %v2536_v43 = vpop.f32.mrf.mxu0  ;;  %vm6786_vm12 = vmor %vm3053_vm10, %vm3054_vm9  ;;  %v3046_v3 = vor.u32 1.1754944e-38, %v3045_v63 }
 0x2f1   : > { %v3050_v32 = vsub.f32 1.0, %v3049_v38  ;;  %v2537_v31 = vadd.f32 %v6763_v50, %v2536_v43  ;;  %v3420_v4 = vpop.f32.mrf.mxu2 }
 0x2f2   : > { %4630 = vrcp.f32 %v6769_v14  ;;  %v3421_v22 = vadd.f32 %v3420_v4, %v6538_v27  ;;  %v3509_v36 = vpop.f32.mrf.mxu3  ;;  %v3047_v12 = vsel %vm3044_vm15, %v3046_v3, %v3042_v49  ;;  %vm3067_vm2 = vweird.f32 %v6769_v14 }
 0x2f3   : > { %v3051_v8 = vmul.f32 %v4625_v15, %v3050_v32  ;;  %v2572_v59 = vsub.f32 0.0, %v2537_v31  ;;  %v3510_v60 = vadd.f32 %v3509_v36, %v6541_v41  ;;  %v3333_v45 = vpop.f32.mrf.mxu1  ;;  %v3073_v31 = vand.u32 2147483648, %v6769_v14 }
 0x2f4   : > { %v3585_v10 = vpack.c.bf16 %v3421_v22, %v3332_v30  ;;  %v3334_v16 = vadd.f32 %v3333_v45, %v6536_v21  ;;  %v3071_v39 = vand.u32 2147483647, %v6769_v14 }
 0x2f5   : > { %v3052_v26 = vadd.f32 %v4625_v15, %v3051_v8  ;;  %v4629_v46 = vpop.eup %4628  ;;  %v2634_v51 = vmul.f32 1.442695, %v2572_v59  ;;  %v3586_v19 = vpack.c.bf16 %v3510_v60, %v3510_v60 }
 0x2f6   : > { %v6790_v2 = vadd.f32 1.0, %v4629_v46  ;;  %3649 = vst [vmem:[%s6555_s11 + $0x60] sm:$0xff] %v3585_v10  ;;  %vm3072_vm7 = vcmp.eq.f32.partialorder %v3071_v39, 8.507059e+37 }
 0x2f7   : > { %v3056_v44 = vsel %vm6786_vm12, %v4625_v15, %v3052_v26  ;;  %4632 = vpow2.f32 %v2634_v51  ;;  %3650 = vst [vmem:[%s6555_s11 + $0x68] sm:$0xf] %v3586_v19 }
 0x2f8   : > { %v6800_v61 = vpop.eup %4630  ;;  %4634 = vrcp.f32 %v6790_v2  ;;  %v2539_v23 = vpop.f32.mrf.mxu0  ;;  %v3061_v37 = vsel %vm3058_vm14, %v3060_v18, %v3056_v44  ;;  %v3085_v1 = vand.u32 2147483647, %v6790_v2  ;;  %v3087_v15 = vand.u32 2147483648, %v6790_v2 }
 0x2f9   : > { %v3063_v7 = vmul.f32 %v6800_v61, %v6769_v14  ;;  %v2540_v6 = vadd.f32 %v6763_v50, %v2539_v23  ;;  %v3422_v55 = vpop.f32.mrf.mxu2  ;;  %v3131_v40 = vpack.c.bf16 %v3061_v37, %v3047_v12  ;;  %vm3068_vm0 = vweird.f32 %v6800_v61 }
 0x2fa   : > { %v3423_v48 = vadd.f32 %v3422_v55, %v6538_v27  ;;  %v3511_v53 = vpop.f32.mrf.mxu3  ;;  %vm6830_vm3 = vmor %vm3067_vm2, %vm3068_vm0  ;;  %vm3081_vm4 = vweird.f32 %v6790_v2  ;;  %v3088_v56 = vor.u32 1.1754944e-38, %v3087_v15  ;;  %vm3086_vm6 = vcmp.eq.f32.partialorder %v3085_v1, 8.507059e+37 }
 0x2fb   : > { %v2573_v25 = vsub.f32 0.0, %v2540_v6  ;;  %v3064_v58 = vsub.f32 1.0, %v3063_v7  ;;  %v3512_v54 = vadd.f32 %v3511_v53, %v6541_v41  ;;  %v3336_v20 = vpop.f32.mrf.mxu1  ;;  %v3074_v14 = vor.u32 1.1754944e-38, %v3073_v31 }
 0x2fc   : > { %v3587_v17 = vpack.c.bf16 %v3423_v48, %v3334_v16  ;;  %v3337_v24 = vadd.f32 %v3336_v20, %v6536_v21 }
 0x2fd   : > { %v4633_v5 = vpop.eup %4632  ;;  %v2636_v9 = vmul.f32 1.442695, %v2573_v25  ;;  %v3588_v42 = vpack.c.bf16 %v3512_v54, %v3512_v54  ;;  %v3065_v28 = vmul.f32 %v6800_v61, %v3064_v58 }
 0x2fe   : > { %v4635_v11 = vpop.eup %4634  ;;  %v6814_v50 = vadd.f32 1.0, %v4633_v5  ;;  %3651 = vst [vmem:[%s6555_s11 + $0x6c] sm:$0xff] %v3587_v17  ;;  %3375 = vmatmul.bf16.gmra.mxu1 %v3131_v40  ;;  %3464 = vmatmul.bf16.gmra.mxu2 %v3131_v40 }
 0x2ff   : > { %4636 = vpow2.f32 %v2636_v9  ;;  %v3077_v13 = vmul.f32 %v4635_v11, %v6790_v2  ;;  %3652 = vst [vmem:[%s6555_s11 + $0x74] sm:$0xf] %v3588_v42  ;;  %3553 = vmatmul.bf16.gmra.mxu3 %v3131_v40  ;;  %v3066_v38 = vadd.f32 %v6800_v61, %v3065_v28  ;;  %vm3082_vm1 = vweird.f32 %v4635_v11 }
 0x300   : > { %4638 = vrcp.f32 %v6814_v50  ;;  %vm3083_vm5 = vmor %vm3081_vm4, %vm3082_vm1  ;;  %vm3095_vm10 = vweird.f32 %v6814_v50  ;;  %v3101_v54 = vand.u32 2147483648, %v6814_v50  ;;  %v3099_v17 = vand.u32 2147483647, %v6814_v50 }
 0x301   : > { %v3078_v52 = vsub.f32 1.0, %v3077_v13  ;;  %v3425_v35 = vpop.f32.mrf.mxu2  ;;  %v3070_v60 = vsel %vm6830_vm3, %v6800_v61, %v3066_v38 }
 0x302   : > { %v3426_v33 = vadd.f32 %v3425_v35, %v6538_v27  ;;  %v3514_v62 = vpop.f32.mrf.mxu3  ;;  %v3075_v10 = vsel %vm3072_vm7, %v3074_v14, %v3070_v60  ;;  %vm3100_vm15 = vcmp.eq.f32.partialorder %v3099_v17, 8.507059e+37 }
 0x303   : > { %v3079_v34 = vmul.f32 %v4635_v11, %v3078_v52  ;;  %v3515_v43 = vadd.f32 %v3514_v62, %v6541_v41  ;;  %v3338_v32 = vpop.f32.mrf.mxu1  ;;  %v3102_v52 = vor.u32 1.1754944e-38, %v3101_v54 }
 0x304   : > { %v3589_v8 = vpack.c.bf16 %v3426_v33, %v3337_v24  ;;  %v3339_v51 = vadd.f32 %v3338_v32, %v6536_v21 }
 0x305   : > { %v4637_v4 = vpop.eup %4636  ;;  %v3080_v30 = vadd.f32 %v4635_v11, %v3079_v34  ;;  %v3590_v59 = vpack.c.bf16 %v3515_v43, %v3515_v43 }
 0x306   : > { %v6836_v22 = vpop.eup %4638  ;;  %v2669_v36 = vadd.f32 1.0, %v4637_v4  ;;  %3653 = vst [vmem:[%s6555_s11 + $0x78] sm:$0xff] %v3589_v8 }
 0x307   : > { %v3084_v45 = vsel %vm3083_vm5, %v4635_v11, %v3080_v30  ;;  %v3091_v63 = vmul.f32 %v6836_v22, %v6814_v50  ;;  %3654 = vst [vmem:[%s6555_s11 + $0x80] sm:$0xf] %v3590_v59  ;;  %vm3096_vm8 = vweird.f32 %v6836_v22 }
 0x308   : > { %4640 = vrcp.f32 %v2669_v36  ;;  %v3089_v26 = vsel %vm3086_vm6, %v3088_v56, %v3084_v45  ;;  %v3113_v16 = vand.u32 2147483647, %v2669_v36  ;;  %v3115_v55 = vand.u32 2147483648, %v2669_v36  ;;  %vm6858_vm11 = vmor %vm3095_vm10, %vm3096_vm8 }
 0x309   : > { %v3427_v46 = vpop.f32.mrf.mxu2  ;;  %v3132_v2 = vpack.c.bf16 %v3089_v26, %v3075_v10  ;;  %v3092_v19 = vsub.f32 1.0, %v3091_v63  ;;  %vm3109_vm12 = vweird.f32 %v2669_v36 }
 0x30a   : > { %v3428_v0 = vadd.f32 %v3427_v46, %v6538_v27  ;;  %v3516_v29 = vpop.f32.mrf.mxu3  ;;  %v3116_v42 = vor.u32 1.1754944e-38, %v3115_v55  ;;  %vm3114_vm14 = vcmp.eq.f32.partialorder %v3113_v16, 8.507059e+37 }
 0x30b   : > { %v3517_v57 = vadd.f32 %v3516_v29, %v6541_v41  ;;  %v3341_v44 = vpop.f32.mrf.mxu1  ;;  %v3093_v23 = vmul.f32 %v6836_v22, %v3092_v19 }
 0x30c   : > { %v3591_v18 = vpack.c.bf16 %v3428_v0, %v3339_v51  ;;  %v3342_v7 = vadd.f32 %v3341_v44, %v6536_v21 }
 0x30d   : > { %v3592_v49 = vpack.c.bf16 %v3517_v57, %v3517_v57  ;;  %v3094_v53 = vadd.f32 %v6836_v22, %v3093_v23 }
 0x30e   : > { %v4641_v61 = vpop.eup %4640  ;;  %3655 = vst [vmem:[%s6555_s11 + $0x84] sm:$0xff] %v3591_v18  ;;  %3380 = vmatmul.bf16.gmra.mxu1 %v3132_v2  ;;  %3469 = vmatmul.bf16.gmra.mxu2 %v3132_v2 }
 0x30f   : > { %v3105_v3 = vmul.f32 %v4641_v61, %v2669_v36  ;;  %3656 = vst [vmem:[%s6555_s11 + $0x8c] sm:$0xf] %v3592_v49  ;;  %3558 = vmatmul.bf16.gmra.mxu3 %v3132_v2  ;;  %vm3110_vm9 = vweird.f32 %v4641_v61  ;;  %v3098_v28 = vsel %vm6858_vm11, %v6836_v22, %v3094_v53 }
 0x310   : > { %vm3111_vm13 = vmor %vm3109_vm12, %vm3110_vm9  ;;  %v3103_v50 = vsel %vm3100_vm15, %v3102_v52, %v3098_v28 }
 0x311   : > { %v3106_v37 = vsub.f32 1.0, %v3105_v3  ;;  %v3430_v6 = vpop.f32.mrf.mxu2 }
 0x312   : > { %v3431_v12 = vadd.f32 %v3430_v6, %v6538_v27  ;;  %v3519_v48 = vpop.f32.mrf.mxu3 }
 0x313   : > { %v3107_v25 = vmul.f32 %v4641_v61, %v3106_v37  ;;  %v3520_v40 = vadd.f32 %v3519_v48, %v6541_v41  ;;  %v3343_v58 = vpop.f32.mrf.mxu1 }
 0x314   : > { %v3593_v20 = vpack.c.bf16 %v3431_v12, %v3342_v7  ;;  %v3344_v1 = vadd.f32 %v3343_v58, %v6536_v21 }
 0x315   : > { %v3108_v9 = vadd.f32 %v4641_v61, %v3107_v25  ;;  %v3594_v11 = vpack.c.bf16 %v3520_v40, %v3520_v40 }
 0x316   : > { %3657 = vst [vmem:[%s6555_s11 + $0x90] sm:$0xff] %v3593_v20 }
 0x317   : > { %v3112_v13 = vsel %vm3111_vm13, %v4641_v61, %v3108_v9  ;;  %3658 = vst [vmem:[%s6555_s11 + $0x98] sm:$0xf] %v3594_v11 }
 0x318   : > { %v3117_v24 = vsel %vm3114_vm14, %v3116_v42, %v3112_v13 }
 0x319   : > { %v3432_v35 = vpop.f32.mrf.mxu2  ;;  %v3133_v62 = vpack.c.bf16 %v3117_v24, %v3103_v50 }
 0x31a   : > { %v3433_v15 = vadd.f32 %v3432_v35, %v6538_v27  ;;  %v3521_v33 = vpop.f32.mrf.mxu3 }
 0x31b   : > { %v3522_v38 = vadd.f32 %v3521_v33, %v6541_v41  ;;  %v3346_v34 = vpop.f32.mrf.mxu1 }
 0x31c   : > { %v3595_v43 = vpack.c.bf16 %v3433_v15, %v3344_v1  ;;  %v3347_v4 = vadd.f32 %v3346_v34, %v6536_v21 }
 0x31d   : > { %v3596_v32 = vpack.c.bf16 %v3522_v38, %v3522_v38 }
 0x31e   : > { %3659 = vst [vmem:[%s6555_s11 + $0x9c] sm:$0xff] %v3595_v43  ;;  %3385 = vmatmul.bf16.gmra.mxu1 %v3133_v62  ;;  %3474 = vmatmul.bf16.gmra.mxu2 %v3133_v62 }
 0x31f   : > { %3660 = vst [vmem:[%s6555_s11 + $0xa4] sm:$0xf] %v3596_v32  ;;  %3563 = vmatmul.bf16.gmra.mxu3 %v3133_v62 }
 0x321   : > { %v3435_v31 = vpop.f32.mrf.mxu2 }
 0x322   : > { %v3436_v8 = vadd.f32 %v3435_v31, %v6538_v27  ;;  %v3524_v47 = vpop.f32.mrf.mxu3 }
 0x323   : > { %v3525_v39 = vadd.f32 %v3524_v47, %v6541_v41  ;;  %v3348_v30 = vpop.f32.mrf.mxu1 }
 0x324   : > { %v3597_v22 = vpack.c.bf16 %v3436_v8, %v3347_v4  ;;  %v3349_v56 = vadd.f32 %v3348_v30, %v6536_v21 }
 0x325   : > { %v3598_v36 = vpack.c.bf16 %v3525_v39, %v3525_v39 }
 0x326   : > { %3661 = vst [vmem:[%s6555_s11 + $0xa8] sm:$0xff] %v3597_v22 }
 0x327   : > { %3662 = vst [vmem:[%s6555_s11 + $0xb0] sm:$0xf] %v3598_v36 }
 0x329   : > { %v3437_v59 = vpop.f32.mrf.mxu2 }
 0x32a   : > { %v3438_v60 = vadd.f32 %v3437_v59, %v6538_v27  ;;  %v3526_v45 = vpop.f32.mrf.mxu3 }
 0x32b   : > { %v3527_v63 = vadd.f32 %v3526_v45, %v6541_v41  ;;  %v3351_v14 = vpop.f32.mrf.mxu1 }
 0x32c   : > { %v3599_v26 = vpack.c.bf16 %v3438_v60, %v3349_v56  ;;  %v3352_v51 = vadd.f32 %v3351_v14, %v6536_v21 }
 0x32d   : > { %v3600_v46 = vpack.c.bf16 %v3527_v63, %v3527_v63 }
 0x32e   : > { %3663 = vst [vmem:[%s6555_s11 + $0xb4] sm:$0xff] %v3599_v26 }
 0x32f   : > { %3664 = vst [vmem:[%s6555_s11 + $0xbc] sm:$0xf] %v3600_v46 }
 0x331   : > { %v3440_v10 = vpop.f32.mrf.mxu2 }
 0x332   : > { %v3441_v0 = vadd.f32 %v3440_v10, %v6538_v27  ;;  %v3529_v29 = vpop.f32.mrf.mxu3 }
 0x333   : > { %v3530_v2 = vadd.f32 %v3529_v29, %v6541_v41  ;;  %v3353_v19 = vpop.f32.mrf.mxu1 }
 0x334   : > { %v3601_v57 = vpack.c.bf16 %v3441_v0, %v3352_v51  ;;  %v3354_v61 = vadd.f32 %v3353_v19, %v6536_v21 }
 0x335   : > { %v3602_v44 = vpack.c.bf16 %v3530_v2, %v3530_v2 }
 0x336   : > { %3665 = vst [vmem:[%s6555_s11 + $0xc0] sm:$0xff] %v3601_v57 }
 0x337   : > { %3666 = vst [vmem:[%s6555_s11 + $0xc8] sm:$0xf] %v3602_v44 }
 0x339   : > { %v3442_v18 = vpop.f32.mrf.mxu2 }
 0x33a   : > { %v3443_v49 = vadd.f32 %v3442_v18, %v6538_v27  ;;  %v3531_v23 = vpop.f32.mrf.mxu3 }
 0x33b   : > { %v3532_v3 = vadd.f32 %v3531_v23, %v6541_v41  ;;  %v3356_v37 = vpop.f32.mrf.mxu1 }
 0x33c   : > { %v3603_v7 = vpack.c.bf16 %v3443_v49, %v3354_v61  ;;  %v3357_v55 = vadd.f32 %v3356_v37, %v6536_v21 }
 0x33d   : > { %v3604_v6 = vpack.c.bf16 %v3532_v3, %v3532_v3 }
 0x33e   : > { %3667 = vst [vmem:[%s6555_s11 + $0xcc] sm:$0xff] %v3603_v7 }
 0x33f   : > { %3668 = vst [vmem:[%s6555_s11 + $0xd4] sm:$0xf] %v3604_v6 }
 0x341   : > { %v3445_v16 = vpop.f32.mrf.mxu2 }
 0x342   : > { %v3446_v12 = vadd.f32 %v3445_v16, %v6538_v27  ;;  %v3534_v48 = vpop.f32.mrf.mxu3 }
 0x343   : > { %v3535_v53 = vadd.f32 %v3534_v48, %v6541_v41  ;;  %v3358_v25 = vpop.f32.mrf.mxu1 }
 0x344   : > { %v3605_v40 = vpack.c.bf16 %v3446_v12, %v3357_v55  ;;  %v3359_v20 = vadd.f32 %v3358_v25, %v6536_v21 }
 0x345   : > { %v3606_v58 = vpack.c.bf16 %v3535_v53, %v3535_v53 }
 0x346   : > { %3669 = vst [vmem:[%s6555_s11 + $0xd8] sm:$0xff] %v3605_v40 }
 0x347   : > { %3670 = vst [vmem:[%s6555_s11 + $0xe0] sm:$0xf] %v3606_v58 }
 0x349   : > { %v3447_v54 = vpop.f32.mrf.mxu2 }
 0x34a   : > { %v3448_v5 = vadd.f32 %v3447_v54, %v6538_v27  ;;  %v3536_v17 = vpop.f32.mrf.mxu3 }
 0x34b   : > { %v3537_v9 = vadd.f32 %v3536_v17, %v6541_v41  ;;  %v3361_v11 = vpop.f32.mrf.mxu1 }
 0x34c   : > { %v3607_v42 = vpack.c.bf16 %v3448_v5, %v3359_v20  ;;  %v3362_v52 = vadd.f32 %v3361_v11, %v6536_v21 }
 0x34d   : > { %v3608_v28 = vpack.c.bf16 %v3537_v9, %v3537_v9 }
 0x34e   : > { %3671 = vst [vmem:[%s6555_s11 + $0xe4] sm:$0xff] %v3607_v42 }
 0x34f   : > { %3672 = vst [vmem:[%s6555_s11 + $0xec] sm:$0xf] %v3608_v28 }
 0x351   : > { %v3450_v13 = vpop.f32.mrf.mxu2 }
 0x352   : > { %v3451_v24 = vadd.f32 %v3450_v13, %v6538_v27  ;;  %v3539_v35 = vpop.f32.mrf.mxu3 }
 0x353   : > { %v3540_v50 = vadd.f32 %v3539_v35, %v6541_v41  ;;  %v3363_v1 = vpop.f32.mrf.mxu1 }
 0x354   : > { %v3609_v15 = vpack.c.bf16 %v3451_v24, %v3362_v52  ;;  %v3364_v38 = vadd.f32 %v3363_v1, %v6536_v21 }
 0x355   : > { %v3610_v33 = vpack.c.bf16 %v3540_v50, %v3540_v50 }
 0x356   : > { %3673 = vst [vmem:[%s6555_s11 + $0xf0] sm:$0xff] %v3609_v15 }
 0x357   : > { %3674 = vst [vmem:[%s6555_s11 + $0xf8] sm:$0xf] %v3610_v33 }
 0x359   : > { %v3452_v62 = vpop.f32.mrf.mxu2 }
 0x35a   : > { %v3453_v34 = vadd.f32 %v3452_v62, %v6538_v27  ;;  %v3541_v43 = vpop.f32.mrf.mxu3 }
 0x35b   : > { %v3542_v32 = vadd.f32 %v3541_v43, %v6541_v41  ;;  %v3366_v31 = vpop.f32.mrf.mxu1 }
 0x35c   : > { %v3611_v4 = vpack.c.bf16 %v3453_v34, %v3364_v38  ;;  %v3367_v39 = vadd.f32 %v3366_v31, %v6536_v21 }
 0x35d   : > { %v3612_v8 = vpack.c.bf16 %v3542_v32, %v3542_v32 }
 0x35e   : > { %3675 = vst [vmem:[%s6555_s11 + $0xfc] sm:$0xff] %v3611_v4 }
 0x35f   : > { %3676 = vst [vmem:[%s6555_s11 + $0x104] sm:$0xf] %v3612_v8 }
 0x361   : > { %v3455_v47 = vpop.f32.mrf.mxu2 }
 0x362   : > { %v3456_v30 = vadd.f32 %v3455_v47, %v6538_v27  ;;  %v3544_v22 = vpop.f32.mrf.mxu3 }
 0x363   : > { %v3545_v36 = vadd.f32 %v3544_v22, %v6541_v41  ;;  %v3368_v59 = vpop.f32.mrf.mxu1 }
 0x364   : > { %v3613_v56 = vpack.c.bf16 %v3456_v30, %v3367_v39  ;;  %v3369_v63 = vadd.f32 %v3368_v59, %v6536_v21 }
 0x365   : > { %v3614_v60 = vpack.c.bf16 %v3545_v36, %v3545_v36 }
 0x366   : > { %3677 = vst [vmem:[%s6555_s11 + $0x108] sm:$0xff] %v3613_v56 }
 0x367   : > { %3678 = vst [vmem:[%s6555_s11 + $0x110] sm:$0xf] %v3614_v60 }
 0x369   : > { %v3457_v45 = vpop.f32.mrf.mxu2 }
 0x36a   : > { %v3458_v14 = vadd.f32 %v3457_v45, %v6538_v27  ;;  %v3546_v26 = vpop.f32.mrf.mxu3 }
 0x36b   : > { %v3547_v46 = vadd.f32 %v3546_v26, %v6541_v41  ;;  %v3371_v10 = vpop.f32.mrf.mxu1 }
 0x36c   : > { %v3615_v51 = vpack.c.bf16 %v3458_v14, %v3369_v63  ;;  %v3372_v2 = vadd.f32 %v3371_v10, %v6536_v21 }
 0x36d   : > { %v3616_v0 = vpack.c.bf16 %v3547_v46, %v3547_v46 }
 0x36e   : > { %3679 = vst [vmem:[%s6555_s11 + $0x114] sm:$0xff] %v3615_v51 }
 0x36f   : > { %3680 = vst [vmem:[%s6555_s11 + $0x11c] sm:$0xf] %v3616_v0 }
 0x371   : > { %v3460_v29 = vpop.f32.mrf.mxu2 }
 0x372   : > { %v3461_v19 = vadd.f32 %v3460_v29, %v6538_v27  ;;  %v3549_v57 = vpop.f32.mrf.mxu3 }
 0x373   : > { %v3550_v44 = vadd.f32 %v3549_v57, %v6541_v41  ;;  %v3373_v18 = vpop.f32.mrf.mxu1 }
 0x374   : > { %v3617_v61 = vpack.c.bf16 %v3461_v19, %v3372_v2  ;;  %v3374_v3 = vadd.f32 %v3373_v18, %v6536_v21 }
 0x375   : > { %v3618_v49 = vpack.c.bf16 %v3550_v44, %v3550_v44 }
 0x376   : > { %3681 = vst [vmem:[%s6555_s11 + $0x120] sm:$0xff] %v3617_v61 }
 0x377   : > { %3682 = vst [vmem:[%s6555_s11 + $0x128] sm:$0xf] %v3618_v49 }
 0x379   : > { %v3462_v23 = vpop.f32.mrf.mxu2 }
 0x37a   : > { %v3463_v37 = vadd.f32 %v3462_v23, %v6538_v27  ;;  %v3551_v7 = vpop.f32.mrf.mxu3 }
 0x37b   : > { %v3552_v6 = vadd.f32 %v3551_v7, %v6541_v41  ;;  %v3376_v16 = vpop.f32.mrf.mxu1 }
 0x37c   : > { %v3619_v55 = vpack.c.bf16 %v3463_v37, %v3374_v3  ;;  %v3377_v53 = vadd.f32 %v3376_v16, %v6536_v21 }
 0x37d   : > { %v3620_v12 = vpack.c.bf16 %v3552_v6, %v3552_v6 }
 0x37e   : > { %3683 = vst [vmem:[%s6555_s11 + $0x12c] sm:$0xff] %v3619_v55 }
 0x37f   : > { %3684 = vst [vmem:[%s6555_s11 + $0x134] sm:$0xf] %v3620_v12 }
 0x381   : > { %v3465_v48 = vpop.f32.mrf.mxu2 }
 0x382   : > { %v3466_v25 = vadd.f32 %v3465_v48, %v6538_v27  ;;  %v3554_v40 = vpop.f32.mrf.mxu3 }
 0x383   : > { %v3555_v58 = vadd.f32 %v3554_v40, %v6541_v41  ;;  %v3378_v54 = vpop.f32.mrf.mxu1 }
 0x384   : > { %v3621_v20 = vpack.c.bf16 %v3466_v25, %v3377_v53  ;;  %v3379_v9 = vadd.f32 %v3378_v54, %v6536_v21 }
 0x385   : > { %v3622_v5 = vpack.c.bf16 %v3555_v58, %v3555_v58 }
 0x386   : > { %3685 = vst [vmem:[%s6555_s11 + $0x138] sm:$0xff] %v3621_v20 }
 0x387   : > { %3686 = vst [vmem:[%s6555_s11 + $0x140] sm:$0xf] %v3622_v5 }
 0x389   : > { %v3467_v17 = vpop.f32.mrf.mxu2 }
 0x38a   : > { %v3468_v11 = vadd.f32 %v3467_v17, %v6538_v27  ;;  %v3556_v42 = vpop.f32.mrf.mxu3 }
 0x38b   : > { %v3557_v28 = vadd.f32 %v3556_v42, %v6541_v41  ;;  %v3381_v13 = vpop.f32.mrf.mxu1 }
 0x38c   : > { %v3623_v52 = vpack.c.bf16 %v3468_v11, %v3379_v9  ;;  %v3382_v50 = vadd.f32 %v3381_v13, %v6536_v21 }
 0x38d   : > { %v3624_v24 = vpack.c.bf16 %v3557_v28, %v3557_v28 }
 0x38e   : > { %3687 = vst [vmem:[%s6555_s11 + $0x144] sm:$0xff] %v3623_v52 }
 0x38f   : > { %3688 = vst [vmem:[%s6555_s11 + $0x14c] sm:$0xf] %v3624_v24 }
 0x391   : > { %v3470_v35 = vpop.f32.mrf.mxu2 }
 0x392   : > { %v3471_v1 = vadd.f32 %v3470_v35, %v6538_v27  ;;  %v3559_v15 = vpop.f32.mrf.mxu3 }
 0x393   : > { %v3560_v33 = vadd.f32 %v3559_v15, %v6541_v41  ;;  %v3383_v62 = vpop.f32.mrf.mxu1 }
 0x394   : > { %v3625_v38 = vpack.c.bf16 %v3471_v1, %v3382_v50  ;;  %v3384_v32 = vadd.f32 %v3383_v62, %v6536_v21 }
 0x395   : > { %v3626_v34 = vpack.c.bf16 %v3560_v33, %v3560_v33 }
 0x396   : > { %3689 = vst [vmem:[%s6555_s11 + $0x150] sm:$0xff] %v3625_v38 }
 0x397   : > { %3690 = vst [vmem:[%s6555_s11 + $0x158] sm:$0xf] %v3626_v34 }
 0x399   : > { %v3472_v43 = vpop.f32.mrf.mxu2 }
 0x39a   : > { %v3473_v31 = vadd.f32 %v3472_v43, %v6538_v27  ;;  %v3561_v4 = vpop.f32.mrf.mxu3 }
 0x39b   : > { %v3562_v8 = vadd.f32 %v3561_v4, %v6541_v41  ;;  %v3386_v30 = vpop.f32.mrf.mxu1 }
 0x39c   : > { %v3627_v47 = vpack.c.bf16 %v3473_v31, %v3384_v32  ;;  %v3387_v36 = vadd.f32 %v3386_v30, %v6536_v21 }
 0x39d   : > { %v3628_v39 = vpack.c.bf16 %v3562_v8, %v3562_v8 }
 0x39e   : > { %3691 = vst [vmem:[%s6555_s11 + $0x15c] sm:$0xff] %v3627_v47 }
 0x39f   : > { %3692 = vst [vmem:[%s6555_s11 + $0x164] sm:$0xf] %v3628_v39 }
 0x3a1   : > { %v3475_v22 = vpop.f32.mrf.mxu2 }
 0x3a2   : > { %v3476_v59 = vadd.f32 %v3475_v22, %v6538_v27  ;;  %v3564_v56 = vpop.f32.mrf.mxu3 }
 0x3a3   : > { %v3565_v60 = vadd.f32 %v3564_v56, %v6541_v41  ;;  %v3388_v14 = vpop.f32.mrf.mxu1 }
 0x3a4   : > { %v3629_v45 = vpack.c.bf16 %v3476_v59, %v3387_v36  ;;  %v3389_v46 = vadd.f32 %v3388_v14, %v6536_v21 }
 0x3a5   : > { %v3630_v63 = vpack.c.bf16 %v3565_v60, %v3565_v60 }
 0x3a6   : > { %3693 = vst [vmem:[%s6555_s11 + $0x168] sm:$0xff] %v3629_v45 }
 0x3a7   : > { %3694 = vst [vmem:[%s6555_s11 + $0x170] sm:$0xf] %v3630_v63 }
 0x3a9   : > { %v3477_v26 = vpop.f32.mrf.mxu2 }
 0x3aa   : > { %v3478_v10 = vadd.f32 %v3477_v26, %v6538_v27  ;;  %v3566_v51 = vpop.f32.mrf.mxu3 }
 0x3ab   : > { %v3567_v0 = vadd.f32 %v3566_v51, %v6541_v41 }
 0x3ac   : > { %v3631_v29 = vpack.c.bf16 %v3478_v10, %v3389_v46 }
 0x3ad   : > { %v3632_v2 = vpack.c.bf16 %v3567_v0, %v3567_v0 }
 0x3ae   : > { %3695 = vst [vmem:[%s6555_s11 + $0x174] sm:$0xff] %v3631_v29 }
 0x3af   : > { %3696 = vst [vmem:[%s6555_s11 + $0x17c] sm:$0xf] %v3632_v2 }
 0x3b0 PF: > { %s19_s30 = sadd.s32 1, %s4654_s30  }
 0x3b1   : > { %p16_p4 = scmp.ge.s32.totalorder %s19_s30, 6  }
 0x3b3   :  { %18 = sbr.rel (!%p16_p4) target bundleno = 1 (0x1), region = 86 }

</bundles_post_ra>
